<compile_context>
chip_gen: v6e
topology: v6e:2x2x1
jax: 0.10.0
libtpu: 0.0.40
codegen_flags: <defaults>
</compile_context>

<pallas_src>
import functools

import jax
import jax.numpy as jnp
from jax.experimental import pallas as pl
from jax.experimental.pallas import tpu as pltpu


def _round_up(x, m):
    return (x + m - 1) // m * m


# ---------------------------------------------------------------------------
# Kernel 1: folded implicit-GEMM conv + masked partial BN-statistics epilogue
# ---------------------------------------------------------------------------
def _conv_stats_kernel(cur_ref, nxt_ref, w_ref, mask_ref, y_ref, stats_ref,
                       col_ref, *, tile_m, cin, cout_s, d_off):
    # Assemble the (tile_m, Q*Cin) im2col operand in VMEM.  Each tap window is
    # the current tile shifted by a static offset d; rows past the tile end
    # come from the halo (= leading rows of the next tile's block).
    for q, d in enumerate(d_off):
        c0 = q * cin
        if d == 0:
            col_ref[:, c0:c0 + cin] = cur_ref[...]
        else:
            col_ref[:tile_m - d, c0:c0 + cin] = cur_ref[d:, :]
            col_ref[tile_m - d:, c0:c0 + cin] = nxt_ref[:d, :]

    # ONE MXU matmul per tile: (tile_m, Q*Cin) x (Q*Cin, cout_p), f32 acc.
    acc = jnp.dot(col_ref[...].astype(jnp.bfloat16), w_ref[...],
                  preferred_element_type=jnp.float32)

    # Masked partial sums for the training-mode BatchNorm batch statistics.
    # The host-precomputed mask is 1.0 only for rows that are real (strided)
    # output positions AND lie below m_full (padding tail excluded).
    m = mask_ref[...]                                   # (tile_m, 1) in {0,1}
    masked = acc * m
    ssum = jnp.sum(masked, axis=0, keepdims=True)
    ssq = jnp.sum(masked * acc, axis=0, keepdims=True)
    stats_ref[...] = jnp.concatenate([ssum, ssq], axis=0)[None]

    # Channel-major, lane-dense, bf16 conv intermediate: only the (rounded up
    # to 16) real channels reach HBM.  Rows near the right edge of each padded
    # image row wrap into the next row and hold garbage conv values; they are
    # excluded from the statistics by the mask and sliced away by the wrapper.
    y_ref[...] = acc.T[:cout_s, :].astype(y_ref.dtype)


# ---------------------------------------------------------------------------
# Kernel 2: tiled normalize (precomputed per-channel scale/shift) + ReLU
# ---------------------------------------------------------------------------
def _scale_shift_relu_kernel(y_ref, scale_ref, shift_ref, o_ref):
    y = y_ref[...].astype(jnp.float32)
    o_ref[...] = jnp.maximum(y * scale_ref[...] + shift_ref[...], 0.0)


# ---------------------------------------------------------------------------
# Wrapper
# ---------------------------------------------------------------------------
def _pick_tile_m(m_full, target):
    # Even number of tiles (>= 2) to balance the two v7x TensorCores on the
    # "parallel" M axis; tile_m a multiple of 128 for lane-dense channel-major
    # stores (and trivially a multiple of 8 for the input/mask blocks).
    num_tiles = max(2, 2 * (-(-m_full // (2 * target))))
    tile_m = _round_up(-(-m_full // num_tiles), 128)
    return tile_m, num_tiles


def conv2d_bn_relu(x_nchw, w, b, gamma, beta, *, stride=1, same_padding=True,
                   eps=1e-3, target_tile_m=1024):
    N, Cin, H, W = x_nchw.shape
    Cout, Cin_w, KH, KW = w.shape
    assert Cin == Cin_w

    pad = (KH - 1) // 2 if same_padding else 0
    OH = (H + 2 * pad - KH) // stride + 1
    OW = (W + 2 * pad - KW) // stride + 1
    HP, WP = H + 2 * pad, W + 2 * pad
    Q = KH * KW
    halo = (KH - 1) * WP + (KW - 1)
    cout_p = _round_up(Cout, 128)    # MXU matmul N (lane-dense)
    cout_s = _round_up(Cout, 16)     # channels actually stored to HBM (bf16 tile)

    m_full = N * HP * WP
    tile_m, num_tiles = _pick_tile_m(m_full, target_tile_m)
    tile_m = max(tile_m, _round_up(halo + 1, 128))   # halo must fit in one tile
    m_pad = num_tiles * tile_m
    assert halo < tile_m

    # Conv bias is intentionally unused: training-mode BatchNorm (momentum=0,
    # batch statistics) subtracts the per-channel batch mean right after the
    # conv, so a constant per-channel bias cancels exactly.  (Eval mode with
    # running stats would need it added back.)
    _ = b

    # NCHW -> NHWC (channels minor), zero-pad spatially, flatten (n, h, w).
    x = jnp.transpose(x_nchw, (0, 2, 3, 1)).astype(jnp.float32)
    xp = jnp.pad(x, ((0, 0), (pad, pad), (pad, pad), (0, 0)))
    xflat = xp.reshape(m_full, Cin)
    # One extra tile of zero rows so the "next tile" (halo) BlockSpec at block
    # index i+1 stays in range on the last grid step.
    xflat = jnp.pad(xflat, ((0, m_pad + tile_m - m_full), (0, 0)))

    # Weights (Cout, Cin, KH, KW) -> (KH*KW*Cin, Cout_p) bf16: the whole conv
    # becomes one matmul per tile with contraction depth K = KH*KW*Cin.
    w2 = jnp.transpose(w, (2, 3, 1, 0)).reshape(Q * Cin, Cout)
    w2 = jnp.pad(w2, ((0, 0), (0, cout_p - Cout))).astype(jnp.bfloat16)

    # Host-precomputed per-row validity mask (no int div/mod in the kernel).
    idx = jnp.arange(m_pad, dtype=jnp.int32)
    s = idx % (HP * WP)
    hh = s // WP
    ww = s % WP
    ohe = (OH - 1) * stride + 1
    owe = (OW - 1) * stride + 1
    valid = (idx < m_full) & (hh < ohe) & (ww < owe)
    if stride > 1:
        valid = valid & (hh % stride == 0) & (ww % stride == 0)
    mask = valid.astype(jnp.float32).reshape(m_pad, 1)

    d_off = tuple(kh * WP + kw for kh in range(KH) for kw in range(KW))
    conv_kernel = functools.partial(
        _conv_stats_kernel, tile_m=tile_m, cin=Cin, cout_s=cout_s, d_off=d_off)

    yflat, part = pl.pallas_call(
        conv_kernel,
        out_shape=(jax.ShapeDtypeStruct((cout_s, m_pad), jnp.bfloat16),
                   jax.ShapeDtypeStruct((num_tiles, 2, cout_p), jnp.float32)),
        grid_spec=pltpu.PrefetchScalarGridSpec(
            num_scalar_prefetch=0,
            grid=(num_tiles,),
            in_specs=[
                pl.BlockSpec((tile_m, Cin), lambda i: (i, 0)),      # tile rows
                pl.BlockSpec((tile_m, Cin), lambda i: (i + 1, 0)),  # halo rows
                pl.BlockSpec((Q * Cin, cout_p), lambda i: (0, 0)),  # weights
                pl.BlockSpec((tile_m, 1), lambda i: (i, 0)),        # row mask
            ],
            out_specs=(
                pl.BlockSpec((cout_s, tile_m), lambda i: (0, i)),   # conv (ch-major)
                pl.BlockSpec((1, 2, cout_p), lambda i: (i, 0, 0)),  # partial stats
            ),
            scratch_shapes=[
                pltpu.VMEM((tile_m, Q * Cin), jnp.float32),         # im2col
            ]),
        compiler_params=pltpu.CompilerParams(
            dimension_semantics=("parallel",)),
    )(xflat, xflat, w2, mask)

    # Finalize global batch statistics -> per-channel scale / shift (tiny).
    count = jnp.float32(N * OH * OW)
    tot = jnp.sum(part, axis=0)[:, :cout_s]             # (2, cout_s)
    mean = tot[0] / count
    var = jnp.maximum(tot[1] / count - mean * mean, 0.0)
    gamma_p = jnp.pad(gamma.astype(jnp.float32), (0, cout_s - Cout))
    beta_p = jnp.pad(beta.astype(jnp.float32), (0, cout_s - Cout))
    scale = gamma_p * jax.lax.rsqrt(var + eps)
    shift = beta_p - mean * scale
    scale = scale.reshape(cout_s, 1)
    shift = shift.reshape(cout_s, 1)

    # Tiled normalize + ReLU (channel-major, bf16 in, f32 out).
    y = pl.pallas_call(
        _scale_shift_relu_kernel,
        out_shape=jax.ShapeDtypeStruct((cout_s, m_pad), jnp.float32),
        grid_spec=pltpu.PrefetchScalarGridSpec(
            num_scalar_prefetch=0,
            grid=(num_tiles,),
            in_specs=[
                pl.BlockSpec((cout_s, tile_m), lambda i: (0, i)),
                pl.BlockSpec((cout_s, 1), lambda i: (0, 0)),
                pl.BlockSpec((cout_s, 1), lambda i: (0, 0)),
            ],
            out_specs=pl.BlockSpec((cout_s, tile_m), lambda i: (0, i))),
        compiler_params=pltpu.CompilerParams(
            dimension_semantics=("parallel",)),
    )(yflat, scale, shift)

    # Gather valid (strided) rows / real channels; transpose is over major
    # dims only (channel-major layout), so it moves whole HxW planes.
    y2 = y[:Cout, :m_full].reshape(Cout, N, HP, WP)
    y2 = y2[:, :, ::stride, ::stride][:, :, :OH, :OW]
    return jnp.transpose(y2, (1, 0, 2, 3))


# ---------------------------------------------------------------------------
# Pure-JAX reference (for a correctness check)
# ---------------------------------------------------------------------------
def _reference(x_nchw, w, b, gamma, beta, *, stride=1, same_padding=True,
               eps=1e-3):
    k = w.shape[2]
    pad = (k - 1) // 2 if same_padding else 0
    conv = jax.lax.conv_general_dilated(
        x_nchw, w, window_strides=(stride, stride),
        padding=[(pad, pad), (pad, pad)],
        dimension_numbers=("NCHW", "OIHW", "NCHW"),
        precision=jax.lax.Precision.HIGHEST)
    conv = conv + b.reshape(1, -1, 1, 1)
    mean = jnp.mean(conv, axis=(0, 2, 3), keepdims=True)
    var = jnp.mean((conv - mean) ** 2, axis=(0, 2, 3), keepdims=True)
    y = (conv - mean) * jax.lax.rsqrt(var + eps)
    y = y * gamma.reshape(1, -1, 1, 1) + beta.reshape(1, -1, 1, 1)
    return jnp.maximum(y, 0.0)


if __name__ == "__main__":
    key = jax.random.PRNGKey(0)
    k_x, k_w, k_b, k_g, k_bt = jax.random.split(key, 5)

    N, Cin, H, W = 2, 4, 16, 16
    Cout, ksize, stride = 8, 3, 1

    x = jax.random.normal(k_x, (N, Cin, H, W), dtype=jnp.float32)
    w = jax.random.normal(k_w, (Cout, Cin, ksize, ksize), dtype=jnp.float32) * 0.1
    b = jax.random.normal(k_b, (Cout,), dtype=jnp.float32) * 0.1
    gamma = 1.0 + 0.1 * jax.random.normal(k_g, (Cout,), dtype=jnp.float32)
    beta = 0.1 * jax.random.normal(k_bt, (Cout,), dtype=jnp.float32)

    out = conv2d_bn_relu(x, w, b, gamma, beta, stride=stride, same_padding=True)
    out = jax.block_until_ready(out)

    # Reference on the same bf16-rounded conv operands the kernel feeds to the
    # MXU (f32 accumulation on both sides).  The kernel additionally stores
    # the conv intermediate in bf16, so the tolerance covers that rounding of
    # the normalized (O(1)) values.
    xq = x.astype(jnp.bfloat16).astype(jnp.float32)
    wq = w.astype(jnp.bfloat16).astype(jnp.float32)
    ref = _reference(xq, wq, b, gamma, beta, stride=stride, same_padding=True)

    assert out.shape == ref.shape == (N, Cout, H, W)
    err = float(jnp.max(jnp.abs(out - ref)))
    assert jnp.allclose(out, ref, atol=2e-2, rtol=2e-2), f"max abs err = {err}"

    print("KERNEL_OK")
</pallas_src>

<mosaic_0001>
module attributes {stable_mosaic.version = 11 : i64} {
  func.func @_conv_stats_kernel(%arg0: i32, %arg1: memref<384x4xf32, #tpu.memory_space<vmem>>, %arg2: memref<384x4xf32, #tpu.memory_space<vmem>>, %arg3: memref<36x128xbf16, #tpu.memory_space<vmem>>, %arg4: memref<384x1xf32, #tpu.memory_space<vmem>>, %arg5: memref<16x384xbf16, #tpu.memory_space<vmem>>, %arg6: memref<1x2x128xf32, #tpu.memory_space<vmem>>, %arg7: memref<384x36xf32, #tpu.memory_space<vmem>>) attributes {dimension_semantics = [#tpu.dimension_semantics<parallel>], iteration_bounds = array<i64: 2>, scalar_prefetch = 0 : i64, scratch_operands = 1 : i64, tpu.core_type = #tpu.core_type<tc>, window_params = [{transform_indices = @transform_0, window_bounds = array<i64: 384, 4>}, {transform_indices = @transform_1, window_bounds = array<i64: 384, 4>}, {pipeline_mode = #tpu.pipeline_mode<synchronous>, transform_indices = @transform_2, window_bounds = array<i64: 36, 128>}, {transform_indices = @transform_3, window_bounds = array<i64: 384, 1>}, {transform_indices = @transform_4, window_bounds = array<i64: 16, 384>}, {transform_indices = @transform_5, window_bounds = array<i64: 1, 2, 128>}]} {
    %c0 = arith.constant 0 : index
    %c0_0 = arith.constant 0 : index
    %0 = vector.load %arg1[%c0, %c0_0] : memref<384x4xf32, #tpu.memory_space<vmem>>, vector<384x4xf32>
    %c0_1 = arith.constant 0 : index
    %c0_2 = arith.constant 0 : index
    %1 = vector.load %arg7[%c0_1, %c0_2] : memref<384x36xf32, #tpu.memory_space<vmem>>, vector<384x4xf32>
    tpu.vector_store %arg7[%c0_1, %c0_2], %0 {strides = array<i32>} : memref<384x36xf32, #tpu.memory_space<vmem>>, vector<384x4xf32>,
    %c1 = arith.constant 1 : index
    %c0_3 = arith.constant 0 : index
    %2 = vector.load %arg1[%c1, %c0_3] : memref<384x4xf32, #tpu.memory_space<vmem>>, vector<383x4xf32>
    %c0_4 = arith.constant 0 : index
    %c4 = arith.constant 4 : index
    %3 = vector.load %arg7[%c0_4, %c4] : memref<384x36xf32, #tpu.memory_space<vmem>>, vector<383x4xf32>
    tpu.vector_store %arg7[%c0_4, %c4], %2 {strides = array<i32>} : memref<384x36xf32, #tpu.memory_space<vmem>>, vector<383x4xf32>,
    %c0_5 = arith.constant 0 : index
    %c0_6 = arith.constant 0 : index
    %4 = vector.load %arg2[%c0_5, %c0_6] : memref<384x4xf32, #tpu.memory_space<vmem>>, vector<1x4xf32>
    %c383 = arith.constant 383 : index
    %c4_7 = arith.constant 4 : index
    %5 = vector.load %arg7[%c383, %c4_7] : memref<384x36xf32, #tpu.memory_space<vmem>>, vector<1x4xf32>
    tpu.vector_store %arg7[%c383, %c4_7], %4 {strides = array<i32>} : memref<384x36xf32, #tpu.memory_space<vmem>>, vector<1x4xf32>,
    %c2 = arith.constant 2 : index
    %c0_8 = arith.constant 0 : index
    %6 = vector.load %arg1[%c2, %c0_8] : memref<384x4xf32, #tpu.memory_space<vmem>>, vector<382x4xf32>
    %c0_9 = arith.constant 0 : index
    %c8 = arith.constant 8 : index
    %7 = vector.load %arg7[%c0_9, %c8] : memref<384x36xf32, #tpu.memory_space<vmem>>, vector<382x4xf32>
    tpu.vector_store %arg7[%c0_9, %c8], %6 {strides = array<i32>} : memref<384x36xf32, #tpu.memory_space<vmem>>, vector<382x4xf32>,
    %c0_10 = arith.constant 0 : index
    %c0_11 = arith.constant 0 : index
    %8 = vector.load %arg2[%c0_10, %c0_11] : memref<384x4xf32, #tpu.memory_space<vmem>>, vector<2x4xf32>
    %c382 = arith.constant 382 : index
    %c8_12 = arith.constant 8 : index
    %9 = vector.load %arg7[%c382, %c8_12] : memref<384x36xf32, #tpu.memory_space<vmem>>, vector<2x4xf32>
    tpu.vector_store %arg7[%c382, %c8_12], %8 {strides = array<i32>} : memref<384x36xf32, #tpu.memory_space<vmem>>, vector<2x4xf32>,
    %c18 = arith.constant 18 : index
    %c0_13 = arith.constant 0 : index
    %10 = vector.load %arg1[%c18, %c0_13] : memref<384x4xf32, #tpu.memory_space<vmem>>, vector<366x4xf32>
    %c0_14 = arith.constant 0 : index
    %c12 = arith.constant 12 : index
    %11 = vector.load %arg7[%c0_14, %c12] : memref<384x36xf32, #tpu.memory_space<vmem>>, vector<366x4xf32>
    tpu.vector_store %arg7[%c0_14, %c12], %10 {strides = array<i32>} : memref<384x36xf32, #tpu.memory_space<vmem>>, vector<366x4xf32>,
    %c0_15 = arith.constant 0 : index
    %c0_16 = arith.constant 0 : index
    %12 = vector.load %arg2[%c0_15, %c0_16] : memref<384x4xf32, #tpu.memory_space<vmem>>, vector<18x4xf32>
    %c366 = arith.constant 366 : index
    %c12_17 = arith.constant 12 : index
    %13 = vector.load %arg7[%c366, %c12_17] : memref<384x36xf32, #tpu.memory_space<vmem>>, vector<18x4xf32>
    tpu.vector_store %arg7[%c366, %c12_17], %12 {strides = array<i32>} : memref<384x36xf32, #tpu.memory_space<vmem>>, vector<18x4xf32>,
    %c19 = arith.constant 19 : index
    %c0_18 = arith.constant 0 : index
    %14 = vector.load %arg1[%c19, %c0_18] : memref<384x4xf32, #tpu.memory_space<vmem>>, vector<365x4xf32>
    %c0_19 = arith.constant 0 : index
    %c16 = arith.constant 16 : index
    %15 = vector.load %arg7[%c0_19, %c16] : memref<384x36xf32, #tpu.memory_space<vmem>>, vector<365x4xf32>
    tpu.vector_store %arg7[%c0_19, %c16], %14 {strides = array<i32>} : memref<384x36xf32, #tpu.memory_space<vmem>>, vector<365x4xf32>,
    %c0_20 = arith.constant 0 : index
    %c0_21 = arith.constant 0 : index
    %16 = vector.load %arg2[%c0_20, %c0_21] : memref<384x4xf32, #tpu.memory_space<vmem>>, vector<19x4xf32>
    %c365 = arith.constant 365 : index
    %c16_22 = arith.constant 16 : index
    %17 = vector.load %arg7[%c365, %c16_22] : memref<384x36xf32, #tpu.memory_space<vmem>>, vector<19x4xf32>
    tpu.vector_store %arg7[%c365, %c16_22], %16 {strides = array<i32>} : memref<384x36xf32, #tpu.memory_space<vmem>>, vector<19x4xf32>,
    %c20 = arith.constant 20 : index
    %c0_23 = arith.constant 0 : index
    %18 = vector.load %arg1[%c20, %c0_23] : memref<384x4xf32, #tpu.memory_space<vmem>>, vector<364x4xf32>
    %c0_24 = arith.constant 0 : index
    %c20_25 = arith.constant 20 : index
    %19 = vector.load %arg7[%c0_24, %c20_25] : memref<384x36xf32, #tpu.memory_space<vmem>>, vector<364x4xf32>
    tpu.vector_store %arg7[%c0_24, %c20_25], %18 {strides = array<i32>} : memref<384x36xf32, #tpu.memory_space<vmem>>, vector<364x4xf32>,
    %c0_26 = arith.constant 0 : index
    %c0_27 = arith.constant 0 : index
    %20 = vector.load %arg2[%c0_26, %c0_27] : memref<384x4xf32, #tpu.memory_space<vmem>>, vector<20x4xf32>
    %c364 = arith.constant 364 : index
    %c20_28 = arith.constant 20 : index
    %21 = vector.load %arg7[%c364, %c20_28] : memref<384x36xf32, #tpu.memory_space<vmem>>, vector<20x4xf32>
    tpu.vector_store %arg7[%c364, %c20_28], %20 {strides = array<i32>} : memref<384x36xf32, #tpu.memory_space<vmem>>, vector<20x4xf32>,
    %c36 = arith.constant 36 : index
    %c0_29 = arith.constant 0 : index
    %22 = vector.load %arg1[%c36, %c0_29] : memref<384x4xf32, #tpu.memory_space<vmem>>, vector<348x4xf32>
    %c0_30 = arith.constant 0 : index
    %c24 = arith.constant 24 : index
    %23 = vector.load %arg7[%c0_30, %c24] : memref<384x36xf32, #tpu.memory_space<vmem>>, vector<348x4xf32>
    tpu.vector_store %arg7[%c0_30, %c24], %22 {strides = array<i32>} : memref<384x36xf32, #tpu.memory_space<vmem>>, vector<348x4xf32>,
    %c0_31 = arith.constant 0 : index
    %c0_32 = arith.constant 0 : index
    %24 = vector.load %arg2[%c0_31, %c0_32] : memref<384x4xf32, #tpu.memory_space<vmem>>, vector<36x4xf32>
    %c348 = arith.constant 348 : index
    %c24_33 = arith.constant 24 : index
    %25 = vector.load %arg7[%c348, %c24_33] : memref<384x36xf32, #tpu.memory_space<vmem>>, vector<36x4xf32>
    tpu.vector_store %arg7[%c348, %c24_33], %24 {strides = array<i32>} : memref<384x36xf32, #tpu.memory_space<vmem>>, vector<36x4xf32>,
    %c37 = arith.constant 37 : index
    %c0_34 = arith.constant 0 : index
    %26 = vector.load %arg1[%c37, %c0_34] : memref<384x4xf32, #tpu.memory_space<vmem>>, vector<347x4xf32>
    %c0_35 = arith.constant 0 : index
    %c28 = arith.constant 28 : index
    %27 = vector.load %arg7[%c0_35, %c28] : memref<384x36xf32, #tpu.memory_space<vmem>>, vector<347x4xf32>
    tpu.vector_store %arg7[%c0_35, %c28], %26 {strides = array<i32>} : memref<384x36xf32, #tpu.memory_space<vmem>>, vector<347x4xf32>,
    %c0_36 = arith.constant 0 : index
    %c0_37 = arith.constant 0 : index
    %28 = vector.load %arg2[%c0_36, %c0_37] : memref<384x4xf32, #tpu.memory_space<vmem>>, vector<37x4xf32>
    %c347 = arith.constant 347 : index
    %c28_38 = arith.constant 28 : index
    %29 = vector.load %arg7[%c347, %c28_38] : memref<384x36xf32, #tpu.memory_space<vmem>>, vector<37x4xf32>
    tpu.vector_store %arg7[%c347, %c28_38], %28 {strides = array<i32>} : memref<384x36xf32, #tpu.memory_space<vmem>>, vector<37x4xf32>,
    %c38 = arith.constant 38 : index
    %c0_39 = arith.constant 0 : index
    %30 = vector.load %arg1[%c38, %c0_39] : memref<384x4xf32, #tpu.memory_space<vmem>>, vector<346x4xf32>
    %c0_40 = arith.constant 0 : index
    %c32 = arith.constant 32 : index
    %31 = vector.load %arg7[%c0_40, %c32] : memref<384x36xf32, #tpu.memory_space<vmem>>, vector<346x4xf32>
    tpu.vector_store %arg7[%c0_40, %c32], %30 {strides = array<i32>} : memref<384x36xf32, #tpu.memory_space<vmem>>, vector<346x4xf32>,
    %c0_41 = arith.constant 0 : index
    %c0_42 = arith.constant 0 : index
    %32 = vector.load %arg2[%c0_41, %c0_42] : memref<384x4xf32, #tpu.memory_space<vmem>>, vector<38x4xf32>
    %c346 = arith.constant 346 : index
    %c32_43 = arith.constant 32 : index
    %33 = vector.load %arg7[%c346, %c32_43] : memref<384x36xf32, #tpu.memory_space<vmem>>, vector<38x4xf32>
    tpu.vector_store %arg7[%c346, %c32_43], %32 {strides = array<i32>} : memref<384x36xf32, #tpu.memory_space<vmem>>, vector<38x4xf32>,
    %c0_44 = arith.constant 0 : index
    %c0_45 = arith.constant 0 : index
    %34 = vector.load %arg7[%c0_44, %c0_45] : memref<384x36xf32, #tpu.memory_space<vmem>>, vector<384x36xf32>
    %35 = arith.truncf %34 : vector<384x36xf32> to vector<384x36xbf16>
    %c0_46 = arith.constant 0 : index
    %c0_47 = arith.constant 0 : index
    %36 = vector.load %arg3[%c0_46, %c0_47] : memref<36x128xbf16, #tpu.memory_space<vmem>>, vector<36x128xbf16>
    %cst = arith.constant dense<0.000000e+00> : vector<384x128xf32>
    %37 = tpu.matmul %35, %36, %cst {dimension_numbers = #tpu.dot_dimension_numbers<[1], [0], [0], [1], [0, 0, 1, 1], [], []>} : vector<384x36xbf16>, vector<36x128xbf16>, vector<384x128xf32> -> vector<384x128xf32>
    %c0_48 = arith.constant 0 : index
    %c0_49 = arith.constant 0 : index
    %38 = vector.load %arg4[%c0_48, %c0_49] : memref<384x1xf32, #tpu.memory_space<vmem>>, vector<384x1xf32>
    %39 = vector.broadcast %38 : vector<384x1xf32> to vector<384x128xf32>
    %40 = arith.mulf %37, %39 : vector<384x128xf32>
    %cst_50 = arith.constant dense<0.000000e+00> : vector<128xf32>
    %41 = vector.multi_reduction <add>, %40, %cst_50 [0] : vector<384x128xf32> to vector<128xf32>
    %42 = vector.shape_cast %41 : vector<128xf32> to vector<1x128xf32>
    %43 = arith.mulf %40, %37 : vector<384x128xf32>
    %cst_51 = arith.constant dense<0.000000e+00> : vector<128xf32>
    %44 = vector.multi_reduction <add>, %43, %cst_51 [0] : vector<384x128xf32> to vector<128xf32>
    %45 = vector.shape_cast %44 : vector<128xf32> to vector<1x128xf32>
    %46 = tpu.concatenate %42, %45 in 0 : vector<1x128xf32>, vector<1x128xf32> -> vector<2x128xf32>
    %47 = vector.shape_cast %46 : vector<2x128xf32> to vector<1x2x128xf32>
    %c0_52 = arith.constant 0 : index
    %c0_53 = arith.constant 0 : index
    %c0_54 = arith.constant 0 : index
    %48 = vector.load %arg6[%c0_52, %c0_53, %c0_54] : memref<1x2x128xf32, #tpu.memory_space<vmem>>, vector<1x2x128xf32>
    tpu.vector_store %arg6[%c0_52, %c0_53, %c0_54], %47 {strides = array<i32>} : memref<1x2x128xf32, #tpu.memory_space<vmem>>, vector<1x2x128xf32>,
    %49 = tpu.transpose %37, [1, 0] : vector<384x128xf32> -> vector<128x384xf32>
    %50 = vector.extract_strided_slice %49 {offsets = [0, 0], sizes = [16, 384], strides = [1, 1]} : vector<128x384xf32> to vector<16x384xf32>
    %51 = arith.truncf %50 : vector<16x384xf32> to vector<16x384xbf16>
    %c0_55 = arith.constant 0 : index
    %c0_56 = arith.constant 0 : index
    %52 = vector.load %arg5[%c0_55, %c0_56] : memref<16x384xbf16, #tpu.memory_space<vmem>>, vector<16x384xbf16>
    tpu.vector_store %arg5[%c0_55, %c0_56], %51 {strides = array<i32>} : memref<16x384xbf16, #tpu.memory_space<vmem>>, vector<16x384xbf16>,
    return
  }
  func.func @transform_0(%arg0: i32) -> (i32, i32) {
    %c0_i32 = arith.constant 0 : i32
    %c0_i32_0 = arith.constant 0 : i32
    return %arg0, %c0_i32 : i32, i32
  }
  func.func @transform_1(%arg0: i32) -> (i32, i32) {
    %c1_i32 = arith.constant 1 : i32
    %0 = arith.addi %arg0, %c1_i32 : i32
    %c0_i32 = arith.constant 0 : i32
    %c0_i32_0 = arith.constant 0 : i32
    return %0, %c0_i32 : i32, i32
  }
  func.func @transform_2(%arg0: i32) -> (i32, i32) {
    %c0_i32 = arith.constant 0 : i32
    %c0_i32_0 = arith.constant 0 : i32
    %c0_i32_1 = arith.constant 0 : i32
    return %c0_i32, %c0_i32_0 : i32, i32
  }
  func.func @transform_3(%arg0: i32) -> (i32, i32) {
    %c0_i32 = arith.constant 0 : i32
    %c0_i32_0 = arith.constant 0 : i32
    return %arg0, %c0_i32 : i32, i32
  }
  func.func @transform_4(%arg0: i32) -> (i32, i32) {
    %c0_i32 = arith.constant 0 : i32
    %c0_i32_0 = arith.constant 0 : i32
    return %c0_i32, %arg0 : i32, i32
  }
  func.func @transform_5(%arg0: i32) -> (i32, i32, i32) {
    %c0_i32 = arith.constant 0 : i32
    %c0_i32_0 = arith.constant 0 : i32
    %c0_i32_1 = arith.constant 0 : i32
    return %arg0, %c0_i32, %c0_i32_0 : i32, i32, i32
  }
}

</mosaic_0001>

<bundles_post_ra>
// kernel: tpu_custom_call.1
= control target key start
LH: loop header
LB: loop body
LE: loop exit
PB: predicated region body
PF: predicated region fallthrough
CT: control target
= control target key end

     0   :  { %11 = vsyncpa [#allocation4], 0  ;;  %s6284_s0 = inlined_call_operand.vmem [shape: f32[1152,4], index: 0, kind: input, shape index: {}]   ;;  %s6285_s1 = inlined_call_operand.vmem [shape: f32[1152,4], index: 1, kind: input, shape index: {}]   ;;  %s6286_s2 = inlined_call_operand.vmem [shape: bf16[36,128], index: 2, kind: input, shape index: {}]   ;;  %s6287_s3 = inlined_call_operand.vmem [shape: f32[768,1], index: 3, kind: input, shape index: {}]   ;;  %s6288_s4 = inlined_call_operand.hbm [shape: bf16[16,768], index: 4, kind: output, shape index: {0}]   ;;  %s6289_s5 = inlined_call_operand.hbm [shape: f32[2,2,128], index: 5, kind: output, shape index: {1}]  }
   0x1   :  { %13 = vsyncpa [#allocation4 + $0x1], 0 }
   0x2   :  { %14 = vsyncpa [#allocation6], 0 }
   0x3   :  { %16 = vsyncpa [#allocation6 + $0x1], 0  ;;  %s4293_s18 = smov 0   ;;  %s4295_s19 = smov 0  }
   0x4   :  { %s4297_s20 = smov 0   ;;  %s4299_s21 = smov 0  }
   0x5 LB: > { %s4314_s22 = sadd.s32 4294967295, %s4248_s21   ;;  %s3917_s23 = sadd.s32 4294967294, %s4248_s21   ;;  %s4248_s21 = sphi %s4299_s21, %s6295_s21   ;;  %s4244_s20 = sphi %s4297_s20, %s6294_s20   ;;  %s4240_s19 = sphi %s4295_s19, %s6293_s19   ;;  %s4236_s18 = sphi %s4293_s18, %s6292_s18  }
   0x6   : > { %s4318_s24 = sadd.s32 1, %s4248_s21   ;;  %s130_s25 = sadd.s32 1, %s4244_s20 }
   0x7   : > { %s127_s26 = ssub.s32 %s4248_s21, %s4318_s24  ;;  %p140_p0 = scmp.ne.s32.totalorder %s4244_s20, %s4240_s19 }
   0x8   : > { %p128_p1 = scmp.eq.s32.totalorder %s127_s26, 0  ;;  %p141_p2 = scmp.eq.s32.totalorder %s4314_s22, 1 }
   0x9   : > { %p146_p3 = scmp.ne.s32.totalorder %s4240_s19, %s4236_s18  ;;  %p147_p4 = scmp.eq.s32.totalorder %s3917_s23, 1 }
   0xa   : > { %s4329_s27 = scalar_select %p128_p1, %s4244_s20, %s130_s25  }
   0xb   : > { %p4331_p5 = por %p141_p2, %p140_p0  ;;  %p4335_p6 = por %p147_p4, %p146_p3 }
   0xc   : > { %p3920_p7 = scmp.ge.s32.totalorder %s4248_s21, 1  ;;  %p223_p8 = scmp.lt.s32.totalorder %s4248_s21, 3 }
   0xe   : > { %p224_p9 = pnand %p3920_p7, %p223_p8 }
   0xf   : > { %s4342_s30 = smul.u32 (!%p224_p9), 48, %s4314_s22  ;;  %s4250_s11 = smov (!%p224_p9), 4  }
  0x10   : > { %227 = sbr.rel (%p224_p9) target bundleno = 1255 (0x4e7), region = 36  ;;  %s273_s12 = sadd.s32 (!%p224_p9), 1, %s4314_s22 }
  0x11   : > { %p268_p10 = scmp.lt.s32.totalorder (!%p224_p9), %s4342_s30, 143  ;;  %s274_s13 = smul.u32 (!%p224_p9), 48, %s273_s12 }
  0x12   : > { %s4251_s23 = smov (!%p224_p9), 8   ;;  %s4252_s25 = smov (!%p224_p9), 12  }
  0x13   : > { %p275_p11 = scmp.lt.s32.totalorder (!%p224_p9), %s274_s13, 143  ;;  %s4253_s26 = smov (!%p224_p9), 16  }
  0x14   : > { %s4256_s8 = smov (!%p224_p9), 28   ;;  %s4257_s16 = smov (!%p224_p9), 32  }
  0x15   : > { %s269_s6 = scalar_select %p268_p10, %s4342_s30, 143  ;;  %vm337_vm0 = vcmask 31744   ;;  %vm626_vm1 = vcmask 64544   ;;  %vm674_vm2 = vcmask 63520   ;;  %vm923_vm3 = vcmask 97344  }
  0x16   : > { %s6297_s13 = smov (!%p275_p11, %s274_s13), 143  ;;  %vm681_vm4 = vcmask 57376   ;;  %vm978_vm5 = vcmask 91200   ;;  %vm971_vm6 = vcmask 95296   ;;  %vm1210_vm7 = vcmask 130144   ;;  %p282_p12 = scmp.lt.s32.totalorder %s4342_s30, 95 }
  0x17   : > { %s3922_s7 = sshll.u32 %s269_s6, 3  ;;  %s3923_s14 = sshll.u32 %s6297_s13, 3  ;;  %vm1256_vm8 = vcmask 128096   ;;  %vm1507_vm9 = vcmask 162944   ;;  %vm1275_vm10 = vcmask 124000   ;;  %vm1553_vm11 = vcmask 159872  }
  0x18   : > { %s4349_s10 = scalar_lea.vmem %s6284_s0, %s3922_s7  ;;  %s4545_s17 = scalar_lea.vmem %s6285_s1, %s3923_s14  ;;  %vm1572_vm12 = vcmask 157824   ;;  %vm1804_vm13 = vcmask 195744   ;;  %vm1850_vm14 = vcmask 191648   ;;  %vm2090_vm15 = vcmask 228544  }
  0x19   : > { %v388_v0 = vld [vmem:[%s4349_s10 + $0x11] sm:$0xff]  ;;  %v386_v1 = vld [vmem:[%s4349_s10 + $0x1] sm:$0xff]  ;;  %v389_v2 = vld [vmem:[%s4349_s10 + $0x19] sm:$0xff]  ;;  %s4254_s6 = smov 20   ;;  %s4255_s7 = smov 24  }
  0x1a   : > { %486 = vrot.lane.b32.xlu1 %v388_v0, %s4250_s11  ;;  %482 = vrot.lane.b32.xlu0 %v386_v1, %s4250_s11  ;;  %v387_v3 = vld [vmem:[%s4349_s10 + $0x9] sm:$0xff]  ;;  %v390_v5 = vld [vmem:[%s4349_s10 + $0x21] sm:$0xff]  ;;  %s6299_s30 = smov (!%p282_p12, %s4342_s30), 95 }
  0x1b   : > { %v391_v4 = vld [vmem:[%s4349_s10 + $0x29] sm:$0xff]  ;;  %v393_v6 = vld [vmem:[%s4349_s10 + $0x39] sm:$0xff]  ;;  %v392_v7 = vld [vmem:[%s4349_s10 + $0x31] sm:$0xff] }
  0x1c   : > { %v395_v8 = vld [vmem:[%s4349_s10 + $0x49] sm:$0xff]  ;;  %v394_v9 = vld [vmem:[%s4349_s10 + $0x41] sm:$0xff]  ;;  %v397_v10 = vld [vmem:[%s4349_s10 + $0x59] sm:$0xff] }
  0x1d   : > { %v396_v11 = vld [vmem:[%s4349_s10 + $0x51] sm:$0xff]  ;;  %v289_v13 = vld [vmem:[%s4349_s10] sm:$0xff]  ;;  %v399_v14 = vld [vmem:[%s4349_s10 + $0x69] sm:$0xff] }
  0x1e   : > { %488 = vrot.lane.b32.xlu1 %v389_v2, %s4250_s11  ;;  %484 = vrot.lane.b32.xlu0 %v387_v3, %s4250_s11  ;;  %v291_v12 = vld [vmem:[%s4349_s10 + $0x10] sm:$0xff]  ;;  %v398_v15 = vld [vmem:[%s4349_s10 + $0x61] sm:$0xff]  ;;  %338 = vst.msk [vmem:[#allocation2] sm:$0xff] %vm337_vm0, %v289_v13 }
  0x1f   : > { %340 = vst.msk [vmem:[#allocation2 + $0x10] sm:$0xff] %vm337_vm0, %v291_v12  ;;  %v292_v16 = vld [vmem:[%s4349_s10 + $0x18] sm:$0xff]  ;;  %v290_v17 = vld [vmem:[%s4349_s10 + $0x8] sm:$0xff]  ;;  %v293_v19 = vld [vmem:[%s4349_s10 + $0x20] sm:$0xff] }
  0x20   : > { %341 = vst.msk [vmem:[#allocation2 + $0x18] sm:$0xff] %vm337_vm0, %v292_v16  ;;  %339 = vst.msk [vmem:[#allocation2 + $0x8] sm:$0xff] %vm337_vm0, %v290_v17  ;;  %v294_v18 = vld [vmem:[%s4349_s10 + $0x28] sm:$0xff]  ;;  %v296_v20 = vld [vmem:[%s4349_s10 + $0x38] sm:$0xff] }
  0x21   : > { %343 = vst.msk [vmem:[#allocation2 + $0x28] sm:$0xff] %vm337_vm0, %v294_v18  ;;  %342 = vst.msk [vmem:[#allocation2 + $0x20] sm:$0xff] %vm337_vm0, %v293_v19  ;;  %v401_v21 = vld [vmem:[%s4349_s10 + $0x79] sm:$0xff]  ;;  %v400_v22 = vld [vmem:[%s4349_s10 + $0x71] sm:$0xff] }
  0x22   : > { %492 = vrot.lane.b32.xlu1 %v391_v4, %s4250_s11  ;;  %490 = vrot.lane.b32.xlu0 %v390_v5, %s4250_s11  ;;  %345 = vst.msk [vmem:[#allocation2 + $0x38] sm:$0xff] %vm337_vm0, %v296_v20  ;;  %v295_v23 = vld [vmem:[%s4349_s10 + $0x30] sm:$0xff]  ;;  %v298_v24 = vld [vmem:[%s4349_s10 + $0x48] sm:$0xff] }
  0x23   : > { %344 = vst.msk [vmem:[#allocation2 + $0x30] sm:$0xff] %vm337_vm0, %v295_v23  ;;  %v297_v25 = vld [vmem:[%s4349_s10 + $0x40] sm:$0xff]  ;;  %347 = vst.msk [vmem:[#allocation2 + $0x48] sm:$0xff] %vm337_vm0, %v298_v24  ;;  %v300_v26 = vld [vmem:[%s4349_s10 + $0x58] sm:$0xff] }
  0x24   : > { %346 = vst.msk [vmem:[#allocation2 + $0x40] sm:$0xff] %vm337_vm0, %v297_v25  ;;  %v299_v27 = vld [vmem:[%s4349_s10 + $0x50] sm:$0xff]  ;;  %349 = vst.msk [vmem:[#allocation2 + $0x58] sm:$0xff] %vm337_vm0, %v300_v26  ;;  %v402_v29 = vld [vmem:[%s4349_s10 + $0x81] sm:$0xff] }
  0x25   : > { %v403_v28 = vld [vmem:[%s4349_s10 + $0x89] sm:$0xff]  ;;  %348 = vst.msk [vmem:[#allocation2 + $0x50] sm:$0xff] %vm337_vm0, %v299_v27  ;;  %v301_v31 = vld [vmem:[%s4349_s10 + $0x60] sm:$0xff]  ;;  %v304_v32 = vld [vmem:[%s4349_s10 + $0x78] sm:$0xff] }
  0x26   : > { %496 = vrot.lane.b32.xlu1 %v393_v6, %s4250_s11  ;;  %494 = vrot.lane.b32.xlu0 %v392_v7, %s4250_s11  ;;  %v302_v30 = vld [vmem:[%s4349_s10 + $0x68] sm:$0xff]  ;;  %350 = vst.msk [vmem:[#allocation2 + $0x60] sm:$0xff] %vm337_vm0, %v301_v31  ;;  %v303_v33 = vld [vmem:[%s4349_s10 + $0x70] sm:$0xff]  ;;  %353 = vst.msk [vmem:[#allocation2 + $0x78] sm:$0xff] %vm337_vm0, %v304_v32 }
  0x27   : > { %351 = vst.msk [vmem:[#allocation2 + $0x68] sm:$0xff] %vm337_vm0, %v302_v30  ;;  %352 = vst.msk [vmem:[#allocation2 + $0x70] sm:$0xff] %vm337_vm0, %v303_v33  ;;  %v306_v34 = vld [vmem:[%s4349_s10 + $0x88] sm:$0xff]  ;;  %v405_v35 = vld [vmem:[%s4349_s10 + $0x99] sm:$0xff] }
  0x28   : > { %355 = vst.msk [vmem:[#allocation2 + $0x88] sm:$0xff] %vm337_vm0, %v306_v34  ;;  %v305_v36 = vld [vmem:[%s4349_s10 + $0x80] sm:$0xff]  ;;  %v404_v37 = vld [vmem:[%s4349_s10 + $0x91] sm:$0xff]  ;;  %v310_v40 = vld [vmem:[%s4349_s10 + $0xa8] sm:$0xff] }
  0x29   : > { %354 = vst.msk [vmem:[#allocation2 + $0x80] sm:$0xff] %vm337_vm0, %v305_v36  ;;  %v308_v38 = vld [vmem:[%s4349_s10 + $0x98] sm:$0xff]  ;;  %v307_v39 = vld [vmem:[%s4349_s10 + $0x90] sm:$0xff]  ;;  %359 = vst.msk [vmem:[#allocation2 + $0xa8] sm:$0xff] %vm337_vm0, %v310_v40 }
  0x2a   : > { %500 = vrot.lane.b32.xlu1 %v395_v8, %s4250_s11  ;;  %498 = vrot.lane.b32.xlu0 %v394_v9, %s4250_s11  ;;  %357 = vst.msk [vmem:[#allocation2 + $0x98] sm:$0xff] %vm337_vm0, %v308_v38  ;;  %356 = vst.msk [vmem:[#allocation2 + $0x90] sm:$0xff] %vm337_vm0, %v307_v39  ;;  %v309_v41 = vld [vmem:[%s4349_s10 + $0xa0] sm:$0xff]  ;;  %v312_v42 = vld [vmem:[%s4349_s10 + $0xb8] sm:$0xff] }
  0x2b   : > { %358 = vst.msk [vmem:[#allocation2 + $0xa0] sm:$0xff] %vm337_vm0, %v309_v41  ;;  %v311_v43 = vld [vmem:[%s4349_s10 + $0xb0] sm:$0xff]  ;;  %v406_v45 = vld [vmem:[%s4349_s10 + $0xa1] sm:$0xff]  ;;  %361 = vst.msk [vmem:[#allocation2 + $0xb8] sm:$0xff] %vm337_vm0, %v312_v42 }
  0x2c   : > { %v407_v44 = vld [vmem:[%s4349_s10 + $0xa9] sm:$0xff]  ;;  %360 = vst.msk [vmem:[#allocation2 + $0xb0] sm:$0xff] %vm337_vm0, %v311_v43  ;;  %v313_v47 = vld [vmem:[%s4349_s10 + $0xc0] sm:$0xff]  ;;  %v316_v48 = vld [vmem:[%s4349_s10 + $0xd8] sm:$0xff] }
  0x2d   : > { %v314_v46 = vld [vmem:[%s4349_s10 + $0xc8] sm:$0xff]  ;;  %362 = vst.msk [vmem:[#allocation2 + $0xc0] sm:$0xff] %vm337_vm0, %v313_v47  ;;  %v315_v49 = vld [vmem:[%s4349_s10 + $0xd0] sm:$0xff]  ;;  %365 = vst.msk [vmem:[#allocation2 + $0xd8] sm:$0xff] %vm337_vm0, %v316_v48 }
  0x2e   : > { %504 = vrot.lane.b32.xlu1 %v397_v10, %s4250_s11  ;;  %502 = vrot.lane.b32.xlu0 %v396_v11, %s4250_s11  ;;  %363 = vst.msk [vmem:[#allocation2 + $0xc8] sm:$0xff] %vm337_vm0, %v314_v46  ;;  %364 = vst.msk [vmem:[#allocation2 + $0xd0] sm:$0xff] %vm337_vm0, %v315_v49  ;;  %v409_v50 = vld [vmem:[%s4349_s10 + $0xb9] sm:$0xff]  ;;  %v408_v51 = vld [vmem:[%s4349_s10 + $0xb1] sm:$0xff] }
  0x2f   : > { %v317_v52 = vld [vmem:[%s4349_s10 + $0xe0] sm:$0xff]  ;;  %v318_v53 = vld [vmem:[%s4349_s10 + $0xe8] sm:$0xff]  ;;  %v319_v56 = vld [vmem:[%s4349_s10 + $0xf0] sm:$0xff] }
  0x30   : > { %366 = vst.msk [vmem:[#allocation2 + $0xe0] sm:$0xff] %vm337_vm0, %v317_v52  ;;  %367 = vst.msk [vmem:[#allocation2 + $0xe8] sm:$0xff] %vm337_vm0, %v318_v53  ;;  %v411_v54 = vld [vmem:[%s4349_s10 + $0xc9] sm:$0xff]  ;;  %v410_v55 = vld [vmem:[%s4349_s10 + $0xc1] sm:$0xff] }
  0x31   : > { %v320_v57 = vld [vmem:[%s4349_s10 + $0xf8] sm:$0xff]  ;;  %368 = vst.msk [vmem:[#allocation2 + $0xf0] sm:$0xff] %vm337_vm0, %v319_v56  ;;  %v321_v60 = vld [vmem:[%s4349_s10 + $0x100] sm:$0xff]  ;;  %v322_v61 = vld [vmem:[%s4349_s10 + $0x108] sm:$0xff] }
  0x32   : > { %508 = vrot.lane.b32.xlu1 %v399_v14, %s4250_s11  ;;  %506 = vrot.lane.b32.xlu0 %v398_v15, %s4250_s11  ;;  %369 = vst.msk [vmem:[#allocation2 + $0xf8] sm:$0xff] %vm337_vm0, %v320_v57  ;;  %v413_v58 = vld [vmem:[%s4349_s10 + $0xd9] sm:$0xff]  ;;  %v412_v59 = vld [vmem:[%s4349_s10 + $0xd1] sm:$0xff]  ;;  %370 = vst.msk [vmem:[#allocation2 + $0x100] sm:$0xff] %vm337_vm0, %v321_v60 }
  0x33   : > { %371 = vst.msk [vmem:[#allocation2 + $0x108] sm:$0xff] %vm337_vm0, %v322_v61  ;;  %v415_v62 = vld [vmem:[%s4349_s10 + $0xe9] sm:$0xff]  ;;  %v414_v63 = vld [vmem:[%s4349_s10 + $0xe1] sm:$0xff]  ;;  %v324_v1 = vld [vmem:[%s4349_s10 + $0x118] sm:$0xff] }
  0x34   : > { %v323_v0 = vld [vmem:[%s4349_s10 + $0x110] sm:$0xff]  ;;  %373 = vst.msk [vmem:[#allocation2 + $0x118] sm:$0xff] %vm337_vm0, %v324_v1  ;;  %v417_v2 = vld [vmem:[%s4349_s10 + $0xf9] sm:$0xff]  ;;  %v326_v5 = vld [vmem:[%s4349_s10 + $0x128] sm:$0xff] }
  0x35   : > { %372 = vst.msk [vmem:[#allocation2 + $0x110] sm:$0xff] %vm337_vm0, %v323_v0  ;;  %v416_v3 = vld [vmem:[%s4349_s10 + $0xf1] sm:$0xff]  ;;  %v325_v4 = vld [vmem:[%s4349_s10 + $0x120] sm:$0xff]  ;;  %375 = vst.msk [vmem:[#allocation2 + $0x128] sm:$0xff] %vm337_vm0, %v326_v5 }
  0x36   : > { %512 = vrot.lane.b32.xlu1 %v401_v21, %s4250_s11  ;;  %510 = vrot.lane.b32.xlu0 %v400_v22, %s4250_s11  ;;  %374 = vst.msk [vmem:[#allocation2 + $0x120] sm:$0xff] %vm337_vm0, %v325_v4  ;;  %v419_v6 = vld [vmem:[%s4349_s10 + $0x109] sm:$0xff]  ;;  %v418_v7 = vld [vmem:[%s4349_s10 + $0x101] sm:$0xff] }
  0x37   : > { %v327_v8 = vld [vmem:[%s4349_s10 + $0x130] sm:$0xff]  ;;  %v328_v9 = vld [vmem:[%s4349_s10 + $0x138] sm:$0xff]  ;;  %v329_v12 = vld [vmem:[%s4349_s10 + $0x140] sm:$0xff] }
  0x38   : > { %376 = vst.msk [vmem:[#allocation2 + $0x130] sm:$0xff] %vm337_vm0, %v327_v8  ;;  %377 = vst.msk [vmem:[#allocation2 + $0x138] sm:$0xff] %vm337_vm0, %v328_v9  ;;  %v421_v10 = vld [vmem:[%s4349_s10 + $0x119] sm:$0xff]  ;;  %v420_v11 = vld [vmem:[%s4349_s10 + $0x111] sm:$0xff] }
  0x39   : > { %v330_v13 = vld [vmem:[%s4349_s10 + $0x148] sm:$0xff]  ;;  %378 = vst.msk [vmem:[#allocation2 + $0x140] sm:$0xff] %vm337_vm0, %v329_v12  ;;  %v331_v16 = vld [vmem:[%s4349_s10 + $0x150] sm:$0xff]  ;;  %v332_v17 = vld [vmem:[%s4349_s10 + $0x158] sm:$0xff] }
  0x3a   : > { %516 = vrot.lane.b32.xlu1 %v403_v28, %s4250_s11  ;;  %514 = vrot.lane.b32.xlu0 %v402_v29, %s4250_s11  ;;  %379 = vst.msk [vmem:[#allocation2 + $0x148] sm:$0xff] %vm337_vm0, %v330_v13  ;;  %v423_v14 = vld [vmem:[%s4349_s10 + $0x129] sm:$0xff]  ;;  %v422_v15 = vld [vmem:[%s4349_s10 + $0x121] sm:$0xff]  ;;  %380 = vst.msk [vmem:[#allocation2 + $0x150] sm:$0xff] %vm337_vm0, %v331_v16 }
  0x3b   : > { %381 = vst.msk [vmem:[#allocation2 + $0x158] sm:$0xff] %vm337_vm0, %v332_v17  ;;  %v425_v18 = vld [vmem:[%s4349_s10 + $0x139] sm:$0xff]  ;;  %v424_v19 = vld [vmem:[%s4349_s10 + $0x131] sm:$0xff]  ;;  %v334_v21 = vld [vmem:[%s4349_s10 + $0x168] sm:$0xff] }
  0x3c   : > { %v333_v20 = vld [vmem:[%s4349_s10 + $0x160] sm:$0xff]  ;;  %383 = vst.msk [vmem:[#allocation2 + $0x168] sm:$0xff] %vm337_vm0, %v334_v21  ;;  %v427_v22 = vld [vmem:[%s4349_s10 + $0x149] sm:$0xff]  ;;  %v336_v25 = vld [vmem:[%s4349_s10 + $0x178] sm:$0xff] }
  0x3d   : > { %382 = vst.msk [vmem:[#allocation2 + $0x160] sm:$0xff] %vm337_vm0, %v333_v20  ;;  %v426_v23 = vld [vmem:[%s4349_s10 + $0x141] sm:$0xff]  ;;  %v335_v24 = vld [vmem:[%s4349_s10 + $0x170] sm:$0xff]  ;;  %385 = vst.msk [vmem:[#allocation2 + $0x178] sm:$0xff] %vm337_vm0, %v336_v25 }
  0x3e   : > { %520 = vrot.lane.b32.xlu1 %v405_v35, %s4250_s11  ;;  %518 = vrot.lane.b32.xlu0 %v404_v37, %s4250_s11  ;;  %384 = vst.msk [vmem:[#allocation2 + $0x170] sm:$0xff] %vm337_vm0, %v335_v24  ;;  %v429_v26 = vld [vmem:[%s4349_s10 + $0x159] sm:$0xff]  ;;  %v428_v27 = vld [vmem:[%s4349_s10 + $0x151] sm:$0xff]  ;;  %vm2925_vm0 = vcmask 1041408  }
  0x3f   : > { %v431_v28 = vld [vmem:[%s4349_s10 + $0x169] sm:$0xff]  ;;  %v430_v29 = vld [vmem:[%s4349_s10 + $0x161] sm:$0xff]  ;;  %v433_v30 = vld [vmem:[%s4349_s10 + $0x179] sm:$0x7f] }
  0x40   : > { %v432_v31 = vld [vmem:[%s4349_s10 + $0x171] sm:$0xff]  ;;  %v683_v32 = vld [vmem:[%s4349_s10 + $0x2] sm:$0xff]  ;;  %v676_v33 = vld [vmem:[%s4545_s17] sm:$0x1] }
  0x41   : > { %v4554_v34 = vld [vmem:[%s4349_s10 + $0x12] sm:$0xff]  ;;  %v684_v35 = vld [vmem:[%s4349_s10 + $0xa] sm:$0xff]  ;;  %v4561_v36 = vld [vmem:[%s4349_s10 + $0x22] sm:$0xff] }
  0x42   : > { %524 = vrot.lane.b32.xlu1 %v407_v44, %s4250_s11  ;;  %522 = vrot.lane.b32.xlu0 %v406_v45, %s4250_s11  ;;  %v4564_v37 = vld [vmem:[%s4349_s10 + $0x1a] sm:$0xff]  ;;  %v4571_v38 = vld [vmem:[%s4349_s10 + $0x32] sm:$0xff] }
  0x43   : > { %v4574_v39 = vld [vmem:[%s4349_s10 + $0x2a] sm:$0xff]  ;;  %v4581_v40 = vld [vmem:[%s4349_s10 + $0x42] sm:$0xff]  ;;  %v4584_v41 = vld [vmem:[%s4349_s10 + $0x3a] sm:$0xff] }
  0x44   : > { %v4591_v42 = vld [vmem:[%s4349_s10 + $0x52] sm:$0xff]  ;;  %v4594_v43 = vld [vmem:[%s4349_s10 + $0x4a] sm:$0xff]  ;;  %v4603_v46 = vld [vmem:[%s4349_s10 + $0x62] sm:$0xff] }
  0x45   : > { %v4606_v47 = vld [vmem:[%s4349_s10 + $0x5a] sm:$0xff] }
  0x46   : > { %528 = vrot.lane.b32.xlu1 %v409_v50, %s4250_s11  ;;  %526 = vrot.lane.b32.xlu0 %v408_v51, %s4250_s11  ;;  %v4615_v50 = vld [vmem:[%s4349_s10 + $0x72] sm:$0xff]  ;;  %v4618_v51 = vld [vmem:[%s4349_s10 + $0x6a] sm:$0xff] }
  0x4a   : > { %532 = vrot.lane.b32.xlu1 %v411_v54, %s4250_s11  ;;  %530 = vrot.lane.b32.xlu0 %v410_v55, %s4250_s11  ;;  %v4627_v54 = vld [vmem:[%s4349_s10 + $0x82] sm:$0xff]  ;;  %v4630_v55 = vld [vmem:[%s4349_s10 + $0x7a] sm:$0xff] }
  0x4e   : > { %536 = vrot.lane.b32.xlu1 %v413_v58, %s4250_s11  ;;  %534 = vrot.lane.b32.xlu0 %v412_v59, %s4250_s11  ;;  %v4639_v58 = vld [vmem:[%s4349_s10 + $0x92] sm:$0xff]  ;;  %v4642_v59 = vld [vmem:[%s4349_s10 + $0x8a] sm:$0xff] }
  0x52   : > { %540 = vrot.lane.b32.xlu1 %v415_v62, %s4250_s11  ;;  %538 = vrot.lane.b32.xlu0 %v414_v63, %s4250_s11  ;;  %v4651_v62 = vld [vmem:[%s4349_s10 + $0xa2] sm:$0xff]  ;;  %v4654_v63 = vld [vmem:[%s4349_s10 + $0x9a] sm:$0xff] }
  0x56   : > { %544 = vrot.lane.b32.xlu1 %v417_v2, %s4250_s11  ;;  %542 = vrot.lane.b32.xlu0 %v416_v3, %s4250_s11  ;;  %v4663_v2 = vld [vmem:[%s4349_s10 + $0xb2] sm:$0xff]  ;;  %v4666_v3 = vld [vmem:[%s4349_s10 + $0xaa] sm:$0xff] }
  0x5a   : > { %548 = vrot.lane.b32.xlu1 %v419_v6, %s4250_s11  ;;  %546 = vrot.lane.b32.xlu0 %v418_v7, %s4250_s11  ;;  %v4675_v6 = vld [vmem:[%s4349_s10 + $0xc2] sm:$0xff]  ;;  %v4678_v7 = vld [vmem:[%s4349_s10 + $0xba] sm:$0xff] }
  0x5e   : > { %552 = vrot.lane.b32.xlu1 %v421_v10, %s4250_s11  ;;  %550 = vrot.lane.b32.xlu0 %v420_v11, %s4250_s11  ;;  %v4687_v10 = vld [vmem:[%s4349_s10 + $0xd2] sm:$0xff]  ;;  %v4690_v11 = vld [vmem:[%s4349_s10 + $0xca] sm:$0xff] }
  0x62   : > { %556 = vrot.lane.b32.xlu1 %v423_v14, %s4250_s11  ;;  %554 = vrot.lane.b32.xlu0 %v422_v15, %s4250_s11  ;;  %v4699_v14 = vld [vmem:[%s4349_s10 + $0xe2] sm:$0xff]  ;;  %v4702_v15 = vld [vmem:[%s4349_s10 + $0xda] sm:$0xff] }
  0x66   : > { %560 = vrot.lane.b32.xlu1 %v425_v18, %s4250_s11  ;;  %558 = vrot.lane.b32.xlu0 %v424_v19, %s4250_s11  ;;  %v4711_v18 = vld [vmem:[%s4349_s10 + $0xf2] sm:$0xff]  ;;  %v4714_v19 = vld [vmem:[%s4349_s10 + $0xea] sm:$0xff] }
  0x6a   : > { %564 = vrot.lane.b32.xlu1 %v427_v22, %s4250_s11  ;;  %562 = vrot.lane.b32.xlu0 %v426_v23, %s4250_s11  ;;  %v4723_v22 = vld [vmem:[%s4349_s10 + $0x102] sm:$0xff]  ;;  %v4726_v23 = vld [vmem:[%s4349_s10 + $0xfa] sm:$0xff] }
  0x6e   : > { %568 = vrot.lane.b32.xlu1 %v429_v26, %s4250_s11  ;;  %566 = vrot.lane.b32.xlu0 %v428_v27, %s4250_s11  ;;  %v4735_v26 = vld [vmem:[%s4349_s10 + $0x112] sm:$0xff]  ;;  %v4738_v27 = vld [vmem:[%s4349_s10 + $0x10a] sm:$0xff] }
  0x72   : > { %572 = vrot.lane.b32.xlu1 %v431_v28, %s4250_s11  ;;  %570 = vrot.lane.b32.xlu0 %v430_v29, %s4250_s11 }
  0x76   : > { %576 = vrot.lane.b32.xlu1 %v433_v30, %s4250_s11  ;;  %574 = vrot.lane.b32.xlu0 %v432_v31, %s4250_s11  ;;  %v4747_v30 = vld [vmem:[%s4349_s10 + $0x122] sm:$0xff]  ;;  %v4750_v31 = vld [vmem:[%s4349_s10 + $0x11a] sm:$0xff] }
  0x7a   : > { %779 = vrot.lane.b32.xlu1 %v683_v32, %s4251_s23  ;;  %678 = vrot.lane.b32.xlu0 %v676_v33, %s4250_s11 }
  0x7e   : > { %783 = vrot.lane.b32.xlu1 %v4554_v34, %s4251_s23  ;;  %781 = vrot.lane.b32.xlu0 %v684_v35, %s4251_s23  ;;  %v4759_v35 = vld [vmem:[%s4349_s10 + $0x132] sm:$0xff] }
  0x82   : > { %787 = vrot.lane.b32.xlu1 %v4561_v36, %s4251_s23  ;;  %785 = vrot.lane.b32.xlu0 %v4564_v37, %s4251_s23 }
  0x86   : > { %791 = vrot.lane.b32.xlu1 %v4571_v38, %s4251_s23  ;;  %789 = vrot.lane.b32.xlu0 %v4574_v39, %s4251_s23 }
  0x8a   : > { %795 = vrot.lane.b32.xlu1 %v4581_v40, %s4251_s23  ;;  %793 = vrot.lane.b32.xlu0 %v4584_v41, %s4251_s23 }
  0x8c   : > { %v487_v44 = vpop.permute.xlu1 %486  ;;  %v483_v45 = vpop.permute.xlu0 %482 }
  0x8d   : > { %629 = vst.msk [vmem:[#allocation2 + $0x10] sm:$0xff] %vm626_vm1, %v487_v44  ;;  %627 = vst.msk [vmem:[#allocation2] sm:$0xff] %vm626_vm1, %v483_v45  ;;  %v4762_v44 = vld [vmem:[%s4349_s10 + $0x12a] sm:$0xff] }
  0x8e   : > { %799 = vrot.lane.b32.xlu1 %v4591_v42, %s4251_s23  ;;  %797 = vrot.lane.b32.xlu0 %v4594_v43, %s4251_s23 }
  0x90   : > { %v489_v48 = vpop.permute.xlu1 %488  ;;  %v485_v49 = vpop.permute.xlu0 %484 }
  0x91   : > { %630 = vst.msk [vmem:[#allocation2 + $0x18] sm:$0xff] %vm626_vm1, %v489_v48  ;;  %628 = vst.msk [vmem:[#allocation2 + $0x8] sm:$0xff] %vm626_vm1, %v485_v49  ;;  %v4771_v49 = vld [vmem:[%s4349_s10 + $0x142] sm:$0xff] }
  0x92   : > { %803 = vrot.lane.b32.xlu1 %v4603_v46, %s4251_s23  ;;  %801 = vrot.lane.b32.xlu0 %v4606_v47, %s4251_s23 }
  0x94   : > { %v493_v52 = vpop.permute.xlu1 %492  ;;  %v491_v53 = vpop.permute.xlu0 %490 }
  0x95   : > { %632 = vst.msk [vmem:[#allocation2 + $0x28] sm:$0xff] %vm626_vm1, %v493_v52  ;;  %631 = vst.msk [vmem:[#allocation2 + $0x20] sm:$0xff] %vm626_vm1, %v491_v53  ;;  %v4774_v52 = vld [vmem:[%s4349_s10 + $0x13a] sm:$0xff] }
  0x96   : > { %807 = vrot.lane.b32.xlu1 %v4615_v50, %s4251_s23  ;;  %805 = vrot.lane.b32.xlu0 %v4618_v51, %s4251_s23 }
  0x98   : > { %v497_v56 = vpop.permute.xlu1 %496  ;;  %v495_v57 = vpop.permute.xlu0 %494 }
  0x99   : > { %634 = vst.msk [vmem:[#allocation2 + $0x38] sm:$0xff] %vm626_vm1, %v497_v56  ;;  %633 = vst.msk [vmem:[#allocation2 + $0x30] sm:$0xff] %vm626_vm1, %v495_v57  ;;  %v4783_v57 = vld [vmem:[%s4349_s10 + $0x152] sm:$0xff] }
  0x9a   : > { %811 = vrot.lane.b32.xlu1 %v4627_v54, %s4251_s23  ;;  %809 = vrot.lane.b32.xlu0 %v4630_v55, %s4251_s23 }
  0x9c   : > { %v501_v60 = vpop.permute.xlu1 %500  ;;  %v499_v61 = vpop.permute.xlu0 %498 }
  0x9d   : > { %636 = vst.msk [vmem:[#allocation2 + $0x48] sm:$0xff] %vm626_vm1, %v501_v60  ;;  %635 = vst.msk [vmem:[#allocation2 + $0x40] sm:$0xff] %vm626_vm1, %v499_v61  ;;  %v4786_v60 = vld [vmem:[%s4349_s10 + $0x14a] sm:$0xff] }
  0x9e   : > { %815 = vrot.lane.b32.xlu1 %v4639_v58, %s4251_s23  ;;  %813 = vrot.lane.b32.xlu0 %v4642_v59, %s4251_s23 }
  0xa0   : > { %v505_v0 = vpop.permute.xlu1 %504  ;;  %v503_v1 = vpop.permute.xlu0 %502 }
  0xa1   : > { %638 = vst.msk [vmem:[#allocation2 + $0x58] sm:$0xff] %vm626_vm1, %v505_v0  ;;  %637 = vst.msk [vmem:[#allocation2 + $0x50] sm:$0xff] %vm626_vm1, %v503_v1  ;;  %v4795_v1 = vld [vmem:[%s4349_s10 + $0x162] sm:$0xff] }
  0xa2   : > { %819 = vrot.lane.b32.xlu1 %v4651_v62, %s4251_s23  ;;  %817 = vrot.lane.b32.xlu0 %v4654_v63, %s4251_s23 }
  0xa4   : > { %v509_v4 = vpop.permute.xlu1 %508  ;;  %v507_v5 = vpop.permute.xlu0 %506 }
  0xa5   : > { %640 = vst.msk [vmem:[#allocation2 + $0x68] sm:$0xff] %vm626_vm1, %v509_v4  ;;  %639 = vst.msk [vmem:[#allocation2 + $0x60] sm:$0xff] %vm626_vm1, %v507_v5  ;;  %v4798_v4 = vld [vmem:[%s4349_s10 + $0x15a] sm:$0xff] }
  0xa6   : > { %823 = vrot.lane.b32.xlu1 %v4663_v2, %s4251_s23  ;;  %821 = vrot.lane.b32.xlu0 %v4666_v3, %s4251_s23 }
  0xa8   : > { %v513_v8 = vpop.permute.xlu1 %512  ;;  %v511_v9 = vpop.permute.xlu0 %510 }
  0xa9   : > { %642 = vst.msk [vmem:[#allocation2 + $0x78] sm:$0xff] %vm626_vm1, %v513_v8  ;;  %641 = vst.msk [vmem:[#allocation2 + $0x70] sm:$0xff] %vm626_vm1, %v511_v9  ;;  %v4807_v9 = vld [vmem:[%s4349_s10 + $0x172] sm:$0xff] }
  0xaa   : > { %827 = vrot.lane.b32.xlu1 %v4675_v6, %s4251_s23  ;;  %825 = vrot.lane.b32.xlu0 %v4678_v7, %s4251_s23 }
  0xac   : > { %v517_v12 = vpop.permute.xlu1 %516  ;;  %v515_v13 = vpop.permute.xlu0 %514 }
  0xad   : > { %644 = vst.msk [vmem:[#allocation2 + $0x88] sm:$0xff] %vm626_vm1, %v517_v12  ;;  %643 = vst.msk [vmem:[#allocation2 + $0x80] sm:$0xff] %vm626_vm1, %v515_v13  ;;  %v4810_v12 = vld [vmem:[%s4349_s10 + $0x16a] sm:$0xff] }
  0xae   : > { %831 = vrot.lane.b32.xlu1 %v4687_v10, %s4251_s23  ;;  %829 = vrot.lane.b32.xlu0 %v4690_v11, %s4251_s23 }
  0xb0   : > { %v521_v16 = vpop.permute.xlu1 %520  ;;  %v519_v17 = vpop.permute.xlu0 %518 }
  0xb1   : > { %646 = vst.msk [vmem:[#allocation2 + $0x98] sm:$0xff] %vm626_vm1, %v521_v16  ;;  %645 = vst.msk [vmem:[#allocation2 + $0x90] sm:$0xff] %vm626_vm1, %v519_v17  ;;  %v973_v17 = vld [vmem:[%s4545_s17] sm:$0x3] }
  0xb2   : > { %835 = vrot.lane.b32.xlu1 %v4699_v14, %s4251_s23  ;;  %833 = vrot.lane.b32.xlu0 %v4702_v15, %s4251_s23 }
  0xb4   : > { %v525_v20 = vpop.permute.xlu1 %524  ;;  %v523_v21 = vpop.permute.xlu0 %522 }
  0xb5   : > { %648 = vst.msk [vmem:[#allocation2 + $0xa8] sm:$0xff] %vm626_vm1, %v525_v20  ;;  %647 = vst.msk [vmem:[#allocation2 + $0xa0] sm:$0xff] %vm626_vm1, %v523_v21  ;;  %v730_v20 = vld [vmem:[%s4349_s10 + $0x17a] sm:$0x3f] }
  0xb6   : > { %839 = vrot.lane.b32.xlu1 %v4711_v18, %s4251_s23  ;;  %837 = vrot.lane.b32.xlu0 %v4714_v19, %s4251_s23 }
  0xb8   : > { %v529_v24 = vpop.permute.xlu1 %528  ;;  %v527_v25 = vpop.permute.xlu0 %526 }
  0xb9   : > { %650 = vst.msk [vmem:[#allocation2 + $0xb8] sm:$0xff] %vm626_vm1, %v529_v24  ;;  %649 = vst.msk [vmem:[#allocation2 + $0xb0] sm:$0xff] %vm626_vm1, %v527_v25 }
  0xba   : > { %843 = vrot.lane.b32.xlu1 %v4723_v22, %s4251_s23  ;;  %841 = vrot.lane.b32.xlu0 %v4726_v23, %s4251_s23 }
  0xbc   : > { %v533_v28 = vpop.permute.xlu1 %532  ;;  %v531_v29 = vpop.permute.xlu0 %530 }
  0xbd   : > { %652 = vst.msk [vmem:[#allocation2 + $0xc8] sm:$0xff] %vm626_vm1, %v533_v28  ;;  %651 = vst.msk [vmem:[#allocation2 + $0xc0] sm:$0xff] %vm626_vm1, %v531_v29 }
  0xbe   : > { %847 = vrot.lane.b32.xlu1 %v4735_v26, %s4251_s23  ;;  %845 = vrot.lane.b32.xlu0 %v4738_v27, %s4251_s23 }
  0xc0   : > { %v537_v32 = vpop.permute.xlu1 %536  ;;  %v535_v33 = vpop.permute.xlu0 %534 }
  0xc1   : > { %654 = vst.msk [vmem:[#allocation2 + $0xd8] sm:$0xff] %vm626_vm1, %v537_v32  ;;  %653 = vst.msk [vmem:[#allocation2 + $0xd0] sm:$0xff] %vm626_vm1, %v535_v33 }
  0xc2   : > { %851 = vrot.lane.b32.xlu1 %v4747_v30, %s4251_s23  ;;  %849 = vrot.lane.b32.xlu0 %v4750_v31, %s4251_s23 }
  0xc4   : > { %v541_v45 = vpop.permute.xlu1 %540  ;;  %v539_v48 = vpop.permute.xlu0 %538 }
  0xc5   : > { %656 = vst.msk [vmem:[#allocation2 + $0xe8] sm:$0xff] %vm626_vm1, %v541_v45  ;;  %655 = vst.msk [vmem:[#allocation2 + $0xe0] sm:$0xff] %vm626_vm1, %v539_v48 }
  0xc6   : > { %855 = vrot.lane.b32.xlu1 %v4759_v35, %s4251_s23  ;;  %853 = vrot.lane.b32.xlu0 %v4762_v44, %s4251_s23 }
  0xc8   : > { %v545_v53 = vpop.permute.xlu1 %544  ;;  %v543_v56 = vpop.permute.xlu0 %542 }
  0xc9   : > { %658 = vst.msk [vmem:[#allocation2 + $0xf8] sm:$0xff] %vm626_vm1, %v545_v53  ;;  %657 = vst.msk [vmem:[#allocation2 + $0xf0] sm:$0xff] %vm626_vm1, %v543_v56  ;;  %v4961_v56 = vld [vmem:[%s4545_s17 + $0x8] sm:$0xff] }
  0xca   : > { %859 = vrot.lane.b32.xlu1 %v4771_v49, %s4251_s23  ;;  %857 = vrot.lane.b32.xlu0 %v4774_v52, %s4251_s23 }
  0xcc   : > { %v549_v61 = vpop.permute.xlu1 %548  ;;  %v547_v0 = vpop.permute.xlu0 %546 }
  0xcd   : > { %660 = vst.msk [vmem:[#allocation2 + $0x108] sm:$0xff] %vm626_vm1, %v549_v61  ;;  %659 = vst.msk [vmem:[#allocation2 + $0x100] sm:$0xff] %vm626_vm1, %v547_v0  ;;  %v1277_v0 = vld [vmem:[%s4349_s10 + $0x13] sm:$0xff] }
  0xce   : > { %863 = vrot.lane.b32.xlu1 %v4783_v57, %s4251_s23  ;;  %861 = vrot.lane.b32.xlu0 %v4786_v60, %s4251_s23 }
  0xd0   : > { %v553_v5 = vpop.permute.xlu1 %552  ;;  %v551_v8 = vpop.permute.xlu0 %550 }
  0xd1   : > { %662 = vst.msk [vmem:[#allocation2 + $0x118] sm:$0xff] %vm626_vm1, %v553_v5  ;;  %661 = vst.msk [vmem:[#allocation2 + $0x110] sm:$0xff] %vm626_vm1, %v551_v8  ;;  %v1279_v8 = vld [vmem:[%s4349_s10 + $0x23] sm:$0xff] }
  0xd2   : > { %867 = vrot.lane.b32.xlu1 %v4795_v1, %s4251_s23  ;;  %865 = vrot.lane.b32.xlu0 %v4798_v4, %s4251_s23 }
  0xd4   : > { %v557_v13 = vpop.permute.xlu1 %556  ;;  %v555_v16 = vpop.permute.xlu0 %554 }
  0xd5   : > { %664 = vst.msk [vmem:[#allocation2 + $0x128] sm:$0xff] %vm626_vm1, %v557_v13  ;;  %663 = vst.msk [vmem:[#allocation2 + $0x120] sm:$0xff] %vm626_vm1, %v555_v16  ;;  %v1281_v16 = vld [vmem:[%s4349_s10 + $0x33] sm:$0xff] }
  0xd6   : > { %871 = vrot.lane.b32.xlu1 %v4807_v9, %s4251_s23  ;;  %869 = vrot.lane.b32.xlu0 %v4810_v12, %s4251_s23 }
  0xd8   : > { %v561_v21 = vpop.permute.xlu1 %560  ;;  %v559_v24 = vpop.permute.xlu0 %558 }
  0xd9   : > { %666 = vst.msk [vmem:[#allocation2 + $0x138] sm:$0xff] %vm626_vm1, %v561_v21  ;;  %665 = vst.msk [vmem:[#allocation2 + $0x130] sm:$0xff] %vm626_vm1, %v559_v24  ;;  %v1283_v24 = vld [vmem:[%s4349_s10 + $0x43] sm:$0xff] }
  0xda   : > { %975 = vrot.lane.b32.xlu1 %v973_v17, %s4251_s23  ;;  %873 = vrot.lane.b32.xlu0 %v730_v20, %s4251_s23  ;;  %v1280_v17 = vld [vmem:[%s4349_s10 + $0x2b] sm:$0xff]  ;;  %s3924_s23 = sshll.u32 %s6299_s30, 3  ;;  %s6198_s30 = sand.u32 1, %s4240_s19  }
  0xdb   : > { %s3773_s14 = scalar_lea.sflag [#allocation6], %s6198_s30 }
  0xdc   : > { %v565_v25 = vpop.permute.xlu1 %564  ;;  %v563_v28 = vpop.permute.xlu0 %562 }
  0xdd   : > { %668 = vst.msk [vmem:[#allocation2 + $0x148] sm:$0xff] %vm626_vm1, %v565_v25  ;;  %667 = vst.msk [vmem:[#allocation2 + $0x140] sm:$0xff] %vm626_vm1, %v563_v28  ;;  %v1282_v25 = vld [vmem:[%s4349_s10 + $0x3b] sm:$0xff] }
  0xde   : > { %1074 = vrot.lane.b32.xlu1 %v4564_v37, %s4252_s25  ;;  %1072 = vrot.lane.b32.xlu0 %v4554_v34, %s4252_s25 }
  0xe0   : > { %v569_v29 = vpop.permute.xlu1 %568  ;;  %v567_v32 = vpop.permute.xlu0 %566 }
  0xe1   : > { %670 = vst.msk [vmem:[#allocation2 + $0x158] sm:$0xff] %vm626_vm1, %v569_v29  ;;  %669 = vst.msk [vmem:[#allocation2 + $0x150] sm:$0xff] %vm626_vm1, %v567_v32  ;;  %v1285_v32 = vld [vmem:[%s4349_s10 + $0x53] sm:$0xff] }
  0xe2   : > { %1078 = vrot.lane.b32.xlu1 %v4574_v39, %s4252_s25  ;;  %1076 = vrot.lane.b32.xlu0 %v4561_v36, %s4252_s25 }
  0xe4   : > { %v573_v33 = vpop.permute.xlu1 %572  ;;  %v571_v45 = vpop.permute.xlu0 %570 }
  0xe5   : > { %672 = vst.msk [vmem:[#allocation2 + $0x168] sm:$0xff] %vm626_vm1, %v573_v33  ;;  %671 = vst.msk [vmem:[#allocation2 + $0x160] sm:$0xff] %vm626_vm1, %v571_v45  ;;  %v1284_v33 = vld [vmem:[%s4349_s10 + $0x4b] sm:$0xff] }
  0xe6   : > { %1082 = vrot.lane.b32.xlu1 %v4584_v41, %s4252_s25  ;;  %1080 = vrot.lane.b32.xlu0 %v4571_v38, %s4252_s25 }
  0xe8   : > { %v577_v34 = vpop.permute.xlu1 %576  ;;  %v575_v37 = vpop.permute.xlu0 %574 }
  0xe9   : > { %675 = vst.msk [vmem:[#allocation2 + $0x178] sm:$0x7f] %vm674_vm2, %v577_v34  ;;  %vm2386_vm2 = vcmask 261344  }
  0xea   : > { %673 = vst.msk [vmem:[#allocation2 + $0x170] sm:$0xff] %vm626_vm1, %v575_v37  ;;  %1086 = vrot.lane.b32.xlu1 %v4594_v43, %s4252_s25  ;;  %1084 = vrot.lane.b32.xlu0 %v4581_v40, %s4252_s25  ;;  %v1287_v37 = vld [vmem:[%s4349_s10 + $0x63] sm:$0xff]  ;;  %vm2134_vm1 = vcmask 224448  }
  0xec   : > { %v780_v36 = vpop.permute.xlu1 %779  ;;  %v679_v39 = vpop.permute.xlu0 %678 }
  0xed   : > { %924 = vst.msk [vmem:[#allocation2] sm:$0xff] %vm923_vm3, %v780_v36  ;;  %v1286_v36 = vld [vmem:[%s4349_s10 + $0x5b] sm:$0xff] }
  0xee   : > { %682 = vst.msk [vmem:[#allocation2 + $0x17f] sm:$0x1] %vm681_vm4, %v679_v39  ;;  %1090 = vrot.lane.b32.xlu1 %v4606_v47, %s4252_s25  ;;  %1088 = vrot.lane.b32.xlu0 %v4591_v42, %s4252_s25  ;;  %vm2683_vm4 = vcmask 294144  }
  0xf0   : > { %v784_v38 = vpop.permute.xlu1 %783  ;;  %v782_v41 = vpop.permute.xlu0 %781 }
  0xf1   : > { %926 = vst.msk [vmem:[#allocation2 + $0x10] sm:$0xff] %vm923_vm3, %v784_v38  ;;  %925 = vst.msk [vmem:[#allocation2 + $0x8] sm:$0xff] %vm923_vm3, %v782_v41  ;;  %v1289_v41 = vld [vmem:[%s4349_s10 + $0x73] sm:$0xff] }
  0xf2   : > { %1094 = vrot.lane.b32.xlu1 %v4618_v51, %s4252_s25  ;;  %1092 = vrot.lane.b32.xlu0 %v4603_v46, %s4252_s25 }
  0xf4   : > { %v788_v40 = vpop.permute.xlu1 %787  ;;  %v786_v43 = vpop.permute.xlu0 %785 }
  0xf5   : > { %928 = vst.msk [vmem:[#allocation2 + $0x20] sm:$0xff] %vm923_vm3, %v788_v40  ;;  %927 = vst.msk [vmem:[#allocation2 + $0x18] sm:$0xff] %vm923_vm3, %v786_v43  ;;  %v1288_v40 = vld [vmem:[%s4349_s10 + $0x6b] sm:$0xff] }
  0xf6   : > { %1098 = vrot.lane.b32.xlu1 %v4630_v55, %s4252_s25  ;;  %1096 = vrot.lane.b32.xlu0 %v4615_v50, %s4252_s25 }
  0xf8   : > { %v792_v42 = vpop.permute.xlu1 %791  ;;  %v790_v47 = vpop.permute.xlu0 %789 }
  0xf9   : > { %930 = vst.msk [vmem:[#allocation2 + $0x30] sm:$0xff] %vm923_vm3, %v792_v42  ;;  %929 = vst.msk [vmem:[#allocation2 + $0x28] sm:$0xff] %vm923_vm3, %v790_v47  ;;  %v1291_v47 = vld [vmem:[%s4349_s10 + $0x83] sm:$0xff] }
  0xfa   : > { %1102 = vrot.lane.b32.xlu1 %v4642_v59, %s4252_s25  ;;  %1100 = vrot.lane.b32.xlu0 %v4627_v54, %s4252_s25 }
  0xfc   : > { %v796_v46 = vpop.permute.xlu1 %795  ;;  %v794_v51 = vpop.permute.xlu0 %793 }
  0xfd   : > { %932 = vst.msk [vmem:[#allocation2 + $0x40] sm:$0xff] %vm923_vm3, %v796_v46  ;;  %931 = vst.msk [vmem:[#allocation2 + $0x38] sm:$0xff] %vm923_vm3, %v794_v51  ;;  %v1290_v46 = vld [vmem:[%s4349_s10 + $0x7b] sm:$0xff] }
  0xfe   : > { %1106 = vrot.lane.b32.xlu1 %v4654_v63, %s4252_s25  ;;  %1104 = vrot.lane.b32.xlu0 %v4639_v58, %s4252_s25 }
 0x100   : > { %v800_v50 = vpop.permute.xlu1 %799  ;;  %v798_v55 = vpop.permute.xlu0 %797 }
 0x101   : > { %934 = vst.msk [vmem:[#allocation2 + $0x50] sm:$0xff] %vm923_vm3, %v800_v50  ;;  %933 = vst.msk [vmem:[#allocation2 + $0x48] sm:$0xff] %vm923_vm3, %v798_v55  ;;  %v1293_v55 = vld [vmem:[%s4349_s10 + $0x93] sm:$0xff] }
 0x102   : > { %1110 = vrot.lane.b32.xlu1 %v4666_v3, %s4252_s25  ;;  %1108 = vrot.lane.b32.xlu0 %v4651_v62, %s4252_s25 }
 0x104   : > { %v804_v54 = vpop.permute.xlu1 %803  ;;  %v802_v59 = vpop.permute.xlu0 %801 }
 0x105   : > { %936 = vst.msk [vmem:[#allocation2 + $0x60] sm:$0xff] %vm923_vm3, %v804_v54  ;;  %935 = vst.msk [vmem:[#allocation2 + $0x58] sm:$0xff] %vm923_vm3, %v802_v59  ;;  %v1292_v54 = vld [vmem:[%s4349_s10 + $0x8b] sm:$0xff] }
 0x106   : > { %1114 = vrot.lane.b32.xlu1 %v4678_v7, %s4252_s25  ;;  %1112 = vrot.lane.b32.xlu0 %v4663_v2, %s4252_s25 }
 0x108   : > { %v808_v58 = vpop.permute.xlu1 %807  ;;  %v806_v63 = vpop.permute.xlu0 %805 }
 0x109   : > { %938 = vst.msk [vmem:[#allocation2 + $0x70] sm:$0xff] %vm923_vm3, %v808_v58  ;;  %937 = vst.msk [vmem:[#allocation2 + $0x68] sm:$0xff] %vm923_vm3, %v806_v63  ;;  %v1295_v63 = vld [vmem:[%s4349_s10 + $0xa3] sm:$0xff] }
 0x10a   : > { %1118 = vrot.lane.b32.xlu1 %v4690_v11, %s4252_s25  ;;  %1116 = vrot.lane.b32.xlu0 %v4675_v6, %s4252_s25 }
 0x10c   : > { %v812_v62 = vpop.permute.xlu1 %811  ;;  %v810_v3 = vpop.permute.xlu0 %809 }
 0x10d   : > { %940 = vst.msk [vmem:[#allocation2 + $0x80] sm:$0xff] %vm923_vm3, %v812_v62  ;;  %939 = vst.msk [vmem:[#allocation2 + $0x78] sm:$0xff] %vm923_vm3, %v810_v3  ;;  %v1294_v62 = vld [vmem:[%s4349_s10 + $0x9b] sm:$0xff] }
 0x10e   : > { %1122 = vrot.lane.b32.xlu1 %v4702_v15, %s4252_s25  ;;  %1120 = vrot.lane.b32.xlu0 %v4687_v10, %s4252_s25 }
 0x110   : > { %v816_v2 = vpop.permute.xlu1 %815  ;;  %v814_v7 = vpop.permute.xlu0 %813 }
 0x111   : > { %942 = vst.msk [vmem:[#allocation2 + $0x90] sm:$0xff] %vm923_vm3, %v816_v2  ;;  %941 = vst.msk [vmem:[#allocation2 + $0x88] sm:$0xff] %vm923_vm3, %v814_v7  ;;  %v1297_v7 = vld [vmem:[%s4349_s10 + $0xb3] sm:$0xff] }
 0x112   : > { %1126 = vrot.lane.b32.xlu1 %v4714_v19, %s4252_s25  ;;  %1124 = vrot.lane.b32.xlu0 %v4699_v14, %s4252_s25 }
 0x114   : > { %v820_v6 = vpop.permute.xlu1 %819  ;;  %v818_v11 = vpop.permute.xlu0 %817 }
 0x115   : > { %944 = vst.msk [vmem:[#allocation2 + $0xa0] sm:$0xff] %vm923_vm3, %v820_v6  ;;  %943 = vst.msk [vmem:[#allocation2 + $0x98] sm:$0xff] %vm923_vm3, %v818_v11  ;;  %v1296_v6 = vld [vmem:[%s4349_s10 + $0xab] sm:$0xff] }
 0x116   : > { %1130 = vrot.lane.b32.xlu1 %v4726_v23, %s4252_s25  ;;  %1128 = vrot.lane.b32.xlu0 %v4711_v18, %s4252_s25 }
 0x118   : > { %v824_v10 = vpop.permute.xlu1 %823  ;;  %v822_v15 = vpop.permute.xlu0 %821 }
 0x119   : > { %946 = vst.msk [vmem:[#allocation2 + $0xb0] sm:$0xff] %vm923_vm3, %v824_v10  ;;  %945 = vst.msk [vmem:[#allocation2 + $0xa8] sm:$0xff] %vm923_vm3, %v822_v15  ;;  %v1299_v15 = vld [vmem:[%s4349_s10 + $0xc3] sm:$0xff] }
 0x11a   : > { %1134 = vrot.lane.b32.xlu1 %v4738_v27, %s4252_s25  ;;  %1132 = vrot.lane.b32.xlu0 %v4723_v22, %s4252_s25 }
 0x11c   : > { %v828_v14 = vpop.permute.xlu1 %827  ;;  %v826_v19 = vpop.permute.xlu0 %825 }
 0x11d   : > { %948 = vst.msk [vmem:[#allocation2 + $0xc0] sm:$0xff] %vm923_vm3, %v828_v14  ;;  %947 = vst.msk [vmem:[#allocation2 + $0xb8] sm:$0xff] %vm923_vm3, %v826_v19  ;;  %v1298_v14 = vld [vmem:[%s4349_s10 + $0xbb] sm:$0xff] }
 0x11e   : > { %1138 = vrot.lane.b32.xlu1 %v4750_v31, %s4252_s25  ;;  %1136 = vrot.lane.b32.xlu0 %v4735_v26, %s4252_s25 }
 0x120   : > { %v832_v18 = vpop.permute.xlu1 %831  ;;  %v830_v23 = vpop.permute.xlu0 %829 }
 0x121   : > { %950 = vst.msk [vmem:[#allocation2 + $0xd0] sm:$0xff] %vm923_vm3, %v832_v18  ;;  %949 = vst.msk [vmem:[#allocation2 + $0xc8] sm:$0xff] %vm923_vm3, %v830_v23  ;;  %v1301_v23 = vld [vmem:[%s4349_s10 + $0xd3] sm:$0xff] }
 0x122   : > { %1142 = vrot.lane.b32.xlu1 %v4762_v44, %s4252_s25  ;;  %1140 = vrot.lane.b32.xlu0 %v4747_v30, %s4252_s25 }
 0x124   : > { %v836_v22 = vpop.permute.xlu1 %835  ;;  %v834_v27 = vpop.permute.xlu0 %833 }
 0x125   : > { %952 = vst.msk [vmem:[#allocation2 + $0xe0] sm:$0xff] %vm923_vm3, %v836_v22  ;;  %951 = vst.msk [vmem:[#allocation2 + $0xd8] sm:$0xff] %vm923_vm3, %v834_v27  ;;  %v1300_v22 = vld [vmem:[%s4349_s10 + $0xcb] sm:$0xff] }
 0x126   : > { %1146 = vrot.lane.b32.xlu1 %v4774_v52, %s4252_s25  ;;  %1144 = vrot.lane.b32.xlu0 %v4759_v35, %s4252_s25 }
 0x128   : > { %v840_v26 = vpop.permute.xlu1 %839  ;;  %v838_v31 = vpop.permute.xlu0 %837 }
 0x129   : > { %954 = vst.msk [vmem:[#allocation2 + $0xf0] sm:$0xff] %vm923_vm3, %v840_v26  ;;  %953 = vst.msk [vmem:[#allocation2 + $0xe8] sm:$0xff] %vm923_vm3, %v838_v31  ;;  %v1303_v31 = vld [vmem:[%s4349_s10 + $0xe3] sm:$0xff] }
 0x12a   : > { %1150 = vrot.lane.b32.xlu1 %v4786_v60, %s4252_s25  ;;  %1148 = vrot.lane.b32.xlu0 %v4771_v49, %s4252_s25  ;;  %v1025_v49 = vld [vmem:[%s4349_s10 + $0x17a] sm:$0x3f] }
 0x12c   : > { %v844_v30 = vpop.permute.xlu1 %843  ;;  %v842_v44 = vpop.permute.xlu0 %841 }
 0x12d   : > { %956 = vst.msk [vmem:[#allocation2 + $0x100] sm:$0xff] %vm923_vm3, %v844_v30  ;;  %955 = vst.msk [vmem:[#allocation2 + $0xf8] sm:$0xff] %vm923_vm3, %v842_v44  ;;  %v1302_v30 = vld [vmem:[%s4349_s10 + $0xdb] sm:$0xff] }
 0x12e   : > { %1154 = vrot.lane.b32.xlu1 %v4798_v4, %s4252_s25  ;;  %1152 = vrot.lane.b32.xlu0 %v4783_v57, %s4252_s25  ;;  %v4964_v57 = vld [vmem:[%s4545_s17] sm:$0xff] }
 0x130   : > { %v848_v35 = vpop.permute.xlu1 %847  ;;  %v846_v48 = vpop.permute.xlu0 %845 }
 0x131   : > { %958 = vst.msk [vmem:[#allocation2 + $0x110] sm:$0xff] %vm923_vm3, %v848_v35  ;;  %957 = vst.msk [vmem:[#allocation2 + $0x108] sm:$0xff] %vm923_vm3, %v846_v48  ;;  %v1305_v48 = vld [vmem:[%s4349_s10 + $0xf3] sm:$0xff] }
 0x132   : > { %1158 = vrot.lane.b32.xlu1 %v4810_v12, %s4252_s25  ;;  %1156 = vrot.lane.b32.xlu0 %v4795_v1, %s4252_s25  ;;  %v1260_v1 = vld [vmem:[%s4545_s17 + $0x10] sm:$0x3] }
 0x134   : > { %v852_v52 = vpop.permute.xlu1 %851  ;;  %v850_v53 = vpop.permute.xlu0 %849 }
 0x135   : > { %960 = vst.msk [vmem:[#allocation2 + $0x120] sm:$0xff] %vm923_vm3, %v852_v52  ;;  %959 = vst.msk [vmem:[#allocation2 + $0x118] sm:$0xff] %vm923_vm3, %v850_v53 }
 0x136   : > { %1162 = vrot.lane.b32.xlu1 %v1025_v49, %s4252_s25  ;;  %1160 = vrot.lane.b32.xlu0 %v4807_v9, %s4252_s25  ;;  %v1278_v9 = vld [vmem:[%s4349_s10 + $0x1b] sm:$0xff]  ;;  %v1304_v49 = vld [vmem:[%s4349_s10 + $0xeb] sm:$0xff] }
 0x138   : > { %v856_v60 = vpop.permute.xlu1 %855  ;;  %v854_v61 = vpop.permute.xlu0 %853 }
 0x139   : > { %962 = vst.msk [vmem:[#allocation2 + $0x130] sm:$0xff] %vm923_vm3, %v856_v60  ;;  %961 = vst.msk [vmem:[#allocation2 + $0x128] sm:$0xff] %vm923_vm3, %v854_v61  ;;  %v1307_v60 = vld [vmem:[%s4349_s10 + $0x103] sm:$0xff]  ;;  %v1306_v61 = vld [vmem:[%s4349_s10 + $0xfb] sm:$0xff] }
 0x13a   : > { %1266 = vrot.lane.b32.xlu1 %v4961_v56, %s4252_s25  ;;  %1264 = vrot.lane.b32.xlu0 %v4964_v57, %s4252_s25 }
 0x13c   : > { %v860_v4 = vpop.permute.xlu1 %859  ;;  %v858_v5 = vpop.permute.xlu0 %857 }
 0x13d   : > { %964 = vst.msk [vmem:[#allocation2 + $0x140] sm:$0xff] %vm923_vm3, %v860_v4  ;;  %963 = vst.msk [vmem:[#allocation2 + $0x138] sm:$0xff] %vm923_vm3, %v858_v5  ;;  %v1309_v4 = vld [vmem:[%s4349_s10 + $0x113] sm:$0xff]  ;;  %v1308_v5 = vld [vmem:[%s4349_s10 + $0x10b] sm:$0xff] }
 0x13e   : > { %1369 = vrot.lane.b32.xlu1 %v1277_v0, %s4253_s26  ;;  %1268 = vrot.lane.b32.xlu0 %v1260_v1, %s4252_s25 }
 0x140   : > { %v864_v12 = vpop.permute.xlu1 %863  ;;  %v862_v13 = vpop.permute.xlu0 %861 }
 0x141   : > { %966 = vst.msk [vmem:[#allocation2 + $0x150] sm:$0xff] %vm923_vm3, %v864_v12  ;;  %965 = vst.msk [vmem:[#allocation2 + $0x148] sm:$0xff] %vm923_vm3, %v862_v13  ;;  %v1311_v12 = vld [vmem:[%s4349_s10 + $0x123] sm:$0xff]  ;;  %v1310_v13 = vld [vmem:[%s4349_s10 + $0x11b] sm:$0xff] }
 0x142   : > { %1373 = vrot.lane.b32.xlu1 %v1279_v8, %s4253_s26  ;;  %1371 = vrot.lane.b32.xlu0 %v1278_v9, %s4253_s26 }
 0x144   : > { %v868_v20 = vpop.permute.xlu1 %867  ;;  %v866_v21 = vpop.permute.xlu0 %865 }
 0x145   : > { %968 = vst.msk [vmem:[#allocation2 + $0x160] sm:$0xff] %vm923_vm3, %v868_v20  ;;  %967 = vst.msk [vmem:[#allocation2 + $0x158] sm:$0xff] %vm923_vm3, %v866_v21  ;;  %v1313_v20 = vld [vmem:[%s4349_s10 + $0x133] sm:$0xff]  ;;  %v1312_v21 = vld [vmem:[%s4349_s10 + $0x12b] sm:$0xff] }
 0x146   : > { %1377 = vrot.lane.b32.xlu1 %v1281_v16, %s4253_s26  ;;  %1375 = vrot.lane.b32.xlu0 %v1280_v17, %s4253_s26 }
 0x148   : > { %v872_v28 = vpop.permute.xlu1 %871  ;;  %v870_v29 = vpop.permute.xlu0 %869 }
 0x149   : > { %970 = vst.msk [vmem:[#allocation2 + $0x170] sm:$0xff] %vm923_vm3, %v872_v28  ;;  %969 = vst.msk [vmem:[#allocation2 + $0x168] sm:$0xff] %vm923_vm3, %v870_v29  ;;  %v1315_v28 = vld [vmem:[%s4349_s10 + $0x143] sm:$0xff]  ;;  %v1314_v29 = vld [vmem:[%s4349_s10 + $0x13b] sm:$0xff]  ;;  %vm2430_vm3 = vcmask 256224  }
 0x14a   : > { %1381 = vrot.lane.b32.xlu1 %v1283_v24, %s4253_s26  ;;  %1379 = vrot.lane.b32.xlu0 %v1282_v25, %s4253_s26 }
 0x14c   : > { %v976_v45 = vpop.permute.xlu1 %975  ;;  %v874_v34 = vpop.permute.xlu0 %873 }
 0x14d   : > { %979 = vst.msk [vmem:[#allocation2 + $0x17e] sm:$0x3] %vm978_vm5, %v976_v45  ;;  %v1317_v45 = vld [vmem:[%s4349_s10 + $0x153] sm:$0xff]  ;;  %vm2461_vm5 = vcmask 258272  }
 0x14e   : > { %972 = vst.msk [vmem:[#allocation2 + $0x178] sm:$0x3f] %vm971_vm6, %v874_v34  ;;  %1385 = vrot.lane.b32.xlu1 %v1285_v32, %s4253_s26  ;;  %1383 = vrot.lane.b32.xlu0 %v1284_v33, %s4253_s26  ;;  %v1316_v34 = vld [vmem:[%s4349_s10 + $0x14b] sm:$0xff]  ;;  %vm2852_vm6 = vcmask 293888  }
 0x150   : > { %v1075_v39 = vpop.permute.xlu1 %1074  ;;  %v1073_v38 = vpop.permute.xlu0 %1072 }
 0x151   : > { %1212 = vst.msk [vmem:[#allocation2 + $0x8] sm:$0xff] %vm1210_vm7, %v1075_v39  ;;  %1211 = vst.msk [vmem:[#allocation2] sm:$0xff] %vm1210_vm7, %v1073_v38  ;;  %v1319_v39 = vld [vmem:[%s4349_s10 + $0x163] sm:$0xff]  ;;  %v1318_v38 = vld [vmem:[%s4349_s10 + $0x15b] sm:$0xff] }
 0x152   : > { %1389 = vrot.lane.b32.xlu1 %v1287_v37, %s4253_s26  ;;  %1387 = vrot.lane.b32.xlu0 %v1286_v36, %s4253_s26 }
 0x154   : > { %v1079_v43 = vpop.permute.xlu1 %1078  ;;  %v1077_v42 = vpop.permute.xlu0 %1076 }
 0x155   : > { %1214 = vst.msk [vmem:[#allocation2 + $0x18] sm:$0xff] %vm1210_vm7, %v1079_v43  ;;  %1213 = vst.msk [vmem:[#allocation2 + $0x10] sm:$0xff] %vm1210_vm7, %v1077_v42  ;;  %v1321_v43 = vld [vmem:[%s4349_s10 + $0x173] sm:$0xff]  ;;  %v1320_v42 = vld [vmem:[%s4349_s10 + $0x16b] sm:$0xff] }
 0x156   : > { %1393 = vrot.lane.b32.xlu1 %v1289_v41, %s4253_s26  ;;  %1391 = vrot.lane.b32.xlu0 %v1288_v40, %s4253_s26 }
 0x158   : > { %v1083_v51 = vpop.permute.xlu1 %1082  ;;  %v1081_v50 = vpop.permute.xlu0 %1080 }
 0x159   : > { %1216 = vst.msk [vmem:[#allocation2 + $0x28] sm:$0xff] %vm1210_vm7, %v1083_v51  ;;  %1215 = vst.msk [vmem:[#allocation2 + $0x20] sm:$0xff] %vm1210_vm7, %v1081_v50  ;;  %v1322_v51 = vld [vmem:[%s4349_s10 + $0x17b] sm:$0x1f] }
 0x15a   : > { %1397 = vrot.lane.b32.xlu1 %v1291_v47, %s4253_s26  ;;  %1395 = vrot.lane.b32.xlu0 %v1290_v46, %s4253_s26 }
 0x15c   : > { %v1087_v59 = vpop.permute.xlu1 %1086  ;;  %v1085_v58 = vpop.permute.xlu0 %1084 }
 0x15d   : > { %1218 = vst.msk [vmem:[#allocation2 + $0x38] sm:$0xff] %vm1210_vm7, %v1087_v59  ;;  %1217 = vst.msk [vmem:[#allocation2 + $0x30] sm:$0xff] %vm1210_vm7, %v1085_v58 }
 0x15e   : > { %1401 = vrot.lane.b32.xlu1 %v1293_v55, %s4253_s26  ;;  %1399 = vrot.lane.b32.xlu0 %v1292_v54, %s4253_s26  ;;  %v1557_v54 = vld [vmem:[%s4545_s17 + $0x10] sm:$0x7] }
 0x160   : > { %v1091_v3 = vpop.permute.xlu1 %1090  ;;  %v1089_v2 = vpop.permute.xlu0 %1088 }
 0x161   : > { %1220 = vst.msk [vmem:[#allocation2 + $0x48] sm:$0xff] %vm1210_vm7, %v1091_v3  ;;  %1219 = vst.msk [vmem:[#allocation2 + $0x40] sm:$0xff] %vm1210_vm7, %v1089_v2 }
 0x162   : > { %1405 = vrot.lane.b32.xlu1 %v1295_v63, %s4253_s26  ;;  %1403 = vrot.lane.b32.xlu0 %v1294_v62, %s4253_s26  ;;  %v1575_v63 = vld [vmem:[%s4349_s10 + $0x1c] sm:$0xff]  ;;  %v1574_v62 = vld [vmem:[%s4349_s10 + $0x14] sm:$0xff] }
 0x164   : > { %v1095_v11 = vpop.permute.xlu1 %1094  ;;  %v1093_v10 = vpop.permute.xlu0 %1092 }
 0x165   : > { %1222 = vst.msk [vmem:[#allocation2 + $0x58] sm:$0xff] %vm1210_vm7, %v1095_v11  ;;  %1221 = vst.msk [vmem:[#allocation2 + $0x50] sm:$0xff] %vm1210_vm7, %v1093_v10 }
 0x166   : > { %1409 = vrot.lane.b32.xlu1 %v1297_v7, %s4253_s26  ;;  %1407 = vrot.lane.b32.xlu0 %v1296_v6, %s4253_s26  ;;  %v5127_v7 = vld [vmem:[%s4349_s10 + $0x2c] sm:$0xff]  ;;  %v5130_v6 = vld [vmem:[%s4349_s10 + $0x24] sm:$0xff] }
 0x168   : > { %v1099_v19 = vpop.permute.xlu1 %1098  ;;  %v1097_v18 = vpop.permute.xlu0 %1096 }
 0x169   : > { %1224 = vst.msk [vmem:[#allocation2 + $0x68] sm:$0xff] %vm1210_vm7, %v1099_v19  ;;  %1223 = vst.msk [vmem:[#allocation2 + $0x60] sm:$0xff] %vm1210_vm7, %v1097_v18 }
 0x16a   : > { %1413 = vrot.lane.b32.xlu1 %v1299_v15, %s4253_s26  ;;  %1411 = vrot.lane.b32.xlu0 %v1298_v14, %s4253_s26  ;;  %v5139_v15 = vld [vmem:[%s4349_s10 + $0x3c] sm:$0xff]  ;;  %v5142_v14 = vld [vmem:[%s4349_s10 + $0x34] sm:$0xff] }
 0x16c   : > { %v1103_v27 = vpop.permute.xlu1 %1102  ;;  %v1101_v26 = vpop.permute.xlu0 %1100 }
 0x16d   : > { %1226 = vst.msk [vmem:[#allocation2 + $0x78] sm:$0xff] %vm1210_vm7, %v1103_v27  ;;  %1225 = vst.msk [vmem:[#allocation2 + $0x70] sm:$0xff] %vm1210_vm7, %v1101_v26 }
 0x16e   : > { %1417 = vrot.lane.b32.xlu1 %v1301_v23, %s4253_s26  ;;  %1415 = vrot.lane.b32.xlu0 %v1300_v22, %s4253_s26  ;;  %v5150_v23 = vld [vmem:[%s4349_s10 + $0x4c] sm:$0xff]  ;;  %v5153_v22 = vld [vmem:[%s4349_s10 + $0x44] sm:$0xff] }
 0x170   : > { %v1107_v44 = vpop.permute.xlu1 %1106  ;;  %v1105_v35 = vpop.permute.xlu0 %1104 }
 0x171   : > { %1228 = vst.msk [vmem:[#allocation2 + $0x88] sm:$0xff] %vm1210_vm7, %v1107_v44  ;;  %1227 = vst.msk [vmem:[#allocation2 + $0x80] sm:$0xff] %vm1210_vm7, %v1105_v35 }
 0x172   : > { %1421 = vrot.lane.b32.xlu1 %v1303_v31, %s4253_s26  ;;  %1419 = vrot.lane.b32.xlu0 %v1302_v30, %s4253_s26  ;;  %v5162_v31 = vld [vmem:[%s4349_s10 + $0x5c] sm:$0xff]  ;;  %v5165_v30 = vld [vmem:[%s4349_s10 + $0x54] sm:$0xff] }
 0x174   : > { %v1111_v52 = vpop.permute.xlu1 %1110  ;;  %v1109_v53 = vpop.permute.xlu0 %1108 }
 0x175   : > { %1230 = vst.msk [vmem:[#allocation2 + $0x98] sm:$0xff] %vm1210_vm7, %v1111_v52  ;;  %1229 = vst.msk [vmem:[#allocation2 + $0x90] sm:$0xff] %vm1210_vm7, %v1109_v53 }
 0x176   : > { %1425 = vrot.lane.b32.xlu1 %v1305_v48, %s4253_s26  ;;  %1423 = vrot.lane.b32.xlu0 %v1304_v49, %s4253_s26  ;;  %v5173_v48 = vld [vmem:[%s4349_s10 + $0x6c] sm:$0xff]  ;;  %v5176_v49 = vld [vmem:[%s4349_s10 + $0x64] sm:$0xff] }
 0x178   : > { %v1115_v0 = vpop.permute.xlu1 %1114  ;;  %v1113_v1 = vpop.permute.xlu0 %1112 }
 0x179   : > { %1232 = vst.msk [vmem:[#allocation2 + $0xa8] sm:$0xff] %vm1210_vm7, %v1115_v0  ;;  %1231 = vst.msk [vmem:[#allocation2 + $0xa0] sm:$0xff] %vm1210_vm7, %v1113_v1 }
 0x17a   : > { %1429 = vrot.lane.b32.xlu1 %v1307_v60, %s4253_s26  ;;  %1427 = vrot.lane.b32.xlu0 %v1306_v61, %s4253_s26  ;;  %v5185_v60 = vld [vmem:[%s4349_s10 + $0x7c] sm:$0xff]  ;;  %v5188_v61 = vld [vmem:[%s4349_s10 + $0x74] sm:$0xff] }
 0x17c   : > { %v1119_v8 = vpop.permute.xlu1 %1118  ;;  %v1117_v9 = vpop.permute.xlu0 %1116 }
 0x17d   : > { %1234 = vst.msk [vmem:[#allocation2 + $0xb8] sm:$0xff] %vm1210_vm7, %v1119_v8  ;;  %1233 = vst.msk [vmem:[#allocation2 + $0xb0] sm:$0xff] %vm1210_vm7, %v1117_v9 }
 0x17e   : > { %1433 = vrot.lane.b32.xlu1 %v1309_v4, %s4253_s26  ;;  %1431 = vrot.lane.b32.xlu0 %v1308_v5, %s4253_s26  ;;  %v5197_v4 = vld [vmem:[%s4349_s10 + $0x8c] sm:$0xff]  ;;  %v5200_v5 = vld [vmem:[%s4349_s10 + $0x84] sm:$0xff] }
 0x180   : > { %v1123_v16 = vpop.permute.xlu1 %1122  ;;  %v1121_v17 = vpop.permute.xlu0 %1120 }
 0x181   : > { %1236 = vst.msk [vmem:[#allocation2 + $0xc8] sm:$0xff] %vm1210_vm7, %v1123_v16  ;;  %1235 = vst.msk [vmem:[#allocation2 + $0xc0] sm:$0xff] %vm1210_vm7, %v1121_v17 }
 0x182   : > { %1437 = vrot.lane.b32.xlu1 %v1311_v12, %s4253_s26  ;;  %1435 = vrot.lane.b32.xlu0 %v1310_v13, %s4253_s26  ;;  %v5209_v12 = vld [vmem:[%s4349_s10 + $0x9c] sm:$0xff]  ;;  %v5212_v13 = vld [vmem:[%s4349_s10 + $0x94] sm:$0xff] }
 0x184   : > { %v1127_v24 = vpop.permute.xlu1 %1126  ;;  %v1125_v25 = vpop.permute.xlu0 %1124 }
 0x185   : > { %1238 = vst.msk [vmem:[#allocation2 + $0xd8] sm:$0xff] %vm1210_vm7, %v1127_v24  ;;  %1237 = vst.msk [vmem:[#allocation2 + $0xd0] sm:$0xff] %vm1210_vm7, %v1125_v25 }
 0x186   : > { %1441 = vrot.lane.b32.xlu1 %v1313_v20, %s4253_s26  ;;  %1439 = vrot.lane.b32.xlu0 %v1312_v21, %s4253_s26  ;;  %v5221_v20 = vld [vmem:[%s4349_s10 + $0xac] sm:$0xff]  ;;  %v5224_v21 = vld [vmem:[%s4349_s10 + $0xa4] sm:$0xff] }
 0x188   : > { %v1131_v32 = vpop.permute.xlu1 %1130  ;;  %v1129_v33 = vpop.permute.xlu0 %1128 }
 0x189   : > { %1240 = vst.msk [vmem:[#allocation2 + $0xe8] sm:$0xff] %vm1210_vm7, %v1131_v32  ;;  %1239 = vst.msk [vmem:[#allocation2 + $0xe0] sm:$0xff] %vm1210_vm7, %v1129_v33 }
 0x18a   : > { %1445 = vrot.lane.b32.xlu1 %v1315_v28, %s4253_s26  ;;  %1443 = vrot.lane.b32.xlu0 %v1314_v29, %s4253_s26  ;;  %v5233_v28 = vld [vmem:[%s4349_s10 + $0xbc] sm:$0xff]  ;;  %v5236_v29 = vld [vmem:[%s4349_s10 + $0xb4] sm:$0xff] }
 0x18c   : > { %v1135_v37 = vpop.permute.xlu1 %1134  ;;  %v1133_v36 = vpop.permute.xlu0 %1132 }
 0x18d   : > { %1242 = vst.msk [vmem:[#allocation2 + $0xf8] sm:$0xff] %vm1210_vm7, %v1135_v37  ;;  %1241 = vst.msk [vmem:[#allocation2 + $0xf0] sm:$0xff] %vm1210_vm7, %v1133_v36 }
 0x18e   : > { %1449 = vrot.lane.b32.xlu1 %v1317_v45, %s4253_s26  ;;  %1447 = vrot.lane.b32.xlu0 %v1316_v34, %s4253_s26  ;;  %v5245_v45 = vld [vmem:[%s4349_s10 + $0xcc] sm:$0xff]  ;;  %v5248_v34 = vld [vmem:[%s4349_s10 + $0xc4] sm:$0xff] }
 0x190   : > { %v1139_v41 = vpop.permute.xlu1 %1138  ;;  %v1137_v40 = vpop.permute.xlu0 %1136 }
 0x191   : > { %1244 = vst.msk [vmem:[#allocation2 + $0x108] sm:$0xff] %vm1210_vm7, %v1139_v41  ;;  %1243 = vst.msk [vmem:[#allocation2 + $0x100] sm:$0xff] %vm1210_vm7, %v1137_v40 }
 0x192   : > { %1453 = vrot.lane.b32.xlu1 %v1319_v39, %s4253_s26  ;;  %1451 = vrot.lane.b32.xlu0 %v1318_v38, %s4253_s26  ;;  %v5257_v39 = vld [vmem:[%s4349_s10 + $0xdc] sm:$0xff]  ;;  %v5260_v38 = vld [vmem:[%s4349_s10 + $0xd4] sm:$0xff] }
 0x194   : > { %v1143_v47 = vpop.permute.xlu1 %1142  ;;  %v1141_v46 = vpop.permute.xlu0 %1140 }
 0x195   : > { %1246 = vst.msk [vmem:[#allocation2 + $0x118] sm:$0xff] %vm1210_vm7, %v1143_v47  ;;  %1245 = vst.msk [vmem:[#allocation2 + $0x110] sm:$0xff] %vm1210_vm7, %v1141_v46 }
 0x196   : > { %1457 = vrot.lane.b32.xlu1 %v1321_v43, %s4253_s26  ;;  %1455 = vrot.lane.b32.xlu0 %v1320_v42, %s4253_s26  ;;  %v5269_v43 = vld [vmem:[%s4349_s10 + $0xec] sm:$0xff]  ;;  %v5272_v42 = vld [vmem:[%s4349_s10 + $0xe4] sm:$0xff] }
 0x198   : > { %v1147_v50 = vpop.permute.xlu1 %1146  ;;  %v1145_v55 = vpop.permute.xlu0 %1144 }
 0x199   : > { %1248 = vst.msk [vmem:[#allocation2 + $0x128] sm:$0xff] %vm1210_vm7, %v1147_v50  ;;  %1247 = vst.msk [vmem:[#allocation2 + $0x120] sm:$0xff] %vm1210_vm7, %v1145_v55  ;;  %v5284_v50 = vld [vmem:[%s4349_s10 + $0xf4] sm:$0xff] }
 0x19a   : > { %1561 = vrot.lane.b32.xlu1 %v4964_v57, %s4253_s26  ;;  %1459 = vrot.lane.b32.xlu0 %v1322_v51, %s4253_s26  ;;  %v5281_v51 = vld [vmem:[%s4349_s10 + $0xfc] sm:$0xff] }
 0x19c   : > { %v1151_v59 = vpop.permute.xlu1 %1150  ;;  %v1149_v58 = vpop.permute.xlu0 %1148 }
 0x19d   : > { %1250 = vst.msk [vmem:[#allocation2 + $0x138] sm:$0xff] %vm1210_vm7, %v1151_v59  ;;  %1249 = vst.msk [vmem:[#allocation2 + $0x130] sm:$0xff] %vm1210_vm7, %v1149_v58  ;;  %v5293_v59 = vld [vmem:[%s4349_s10 + $0x10c] sm:$0xff]  ;;  %v5296_v58 = vld [vmem:[%s4349_s10 + $0x104] sm:$0xff] }
 0x19e   : > { %1565 = vrot.lane.b32.xlu1 %v1557_v54, %s4253_s26  ;;  %1563 = vrot.lane.b32.xlu0 %v4961_v56, %s4253_s26 }
 0x1a0   : > { %v1155_v3 = vpop.permute.xlu1 %1154  ;;  %v1153_v2 = vpop.permute.xlu0 %1152 }
 0x1a1   : > { %1252 = vst.msk [vmem:[#allocation2 + $0x148] sm:$0xff] %vm1210_vm7, %v1155_v3  ;;  %1251 = vst.msk [vmem:[#allocation2 + $0x140] sm:$0xff] %vm1210_vm7, %v1153_v2  ;;  %v5305_v3 = vld [vmem:[%s4349_s10 + $0x11c] sm:$0xff]  ;;  %v5308_v2 = vld [vmem:[%s4349_s10 + $0x114] sm:$0xff] }
 0x1a2   : > { %1668 = vrot.lane.b32.xlu1 %v1575_v63, %s4254_s6  ;;  %1666 = vrot.lane.b32.xlu0 %v1574_v62, %s4254_s6 }
 0x1a4   : > { %v1159_v11 = vpop.permute.xlu1 %1158  ;;  %v1157_v10 = vpop.permute.xlu0 %1156 }
 0x1a5   : > { %1254 = vst.msk [vmem:[#allocation2 + $0x158] sm:$0xff] %vm1210_vm7, %v1159_v11  ;;  %1253 = vst.msk [vmem:[#allocation2 + $0x150] sm:$0xff] %vm1210_vm7, %v1157_v10 }
 0x1a6   : > { %1672 = vrot.lane.b32.xlu1 %v5127_v7, %s4254_s6  ;;  %1670 = vrot.lane.b32.xlu0 %v5130_v6, %s4254_s6 }
 0x1a8   : > { %v1163_v19 = vpop.permute.xlu1 %1162  ;;  %v1161_v18 = vpop.permute.xlu0 %1160 }
 0x1a9   : > { %1257 = vst.msk [vmem:[#allocation2 + $0x168] sm:$0x3f] %vm1256_vm8, %v1163_v19  ;;  %v5317_v19 = vld [vmem:[%s4349_s10 + $0x12c] sm:$0xff]  ;;  %vm2758_vm8 = vcmask 292096  }
 0x1aa   : > { %1255 = vst.msk [vmem:[#allocation2 + $0x160] sm:$0xff] %vm1210_vm7, %v1161_v18  ;;  %1676 = vrot.lane.b32.xlu1 %v5139_v15, %s4254_s6  ;;  %1674 = vrot.lane.b32.xlu0 %v5142_v14, %s4254_s6  ;;  %v5320_v18 = vld [vmem:[%s4349_s10 + $0x124] sm:$0xff] }
 0x1ac   : > { %v1267_v27 = vpop.permute.xlu1 %1266  ;;  %v1265_v26 = vpop.permute.xlu0 %1264 }
 0x1ad   : > { %1274 = vst.msk [vmem:[#allocation2 + $0x176] sm:$0xff] %vm1210_vm7, %v1267_v27  ;;  %1273 = vst.msk [vmem:[#allocation2 + $0x16e] sm:$0xff] %vm1210_vm7, %v1265_v26  ;;  %vm2727_vm7 = vcmask 288000  }
 0x1ae   : > { %1680 = vrot.lane.b32.xlu1 %v5150_v23, %s4254_s6  ;;  %1678 = vrot.lane.b32.xlu0 %v5153_v22, %s4254_s6 }
 0x1b0   : > { %v1370_v44 = vpop.permute.xlu1 %1369  ;;  %v1269_v35 = vpop.permute.xlu0 %1268 }
 0x1b1   : > { %1508 = vst.msk [vmem:[#allocation2] sm:$0xff] %vm1507_vm9, %v1370_v44  ;;  %v5329_v44 = vld [vmem:[%s4349_s10 + $0x13c] sm:$0xff] }
 0x1b2   : > { %1276 = vst.msk [vmem:[#allocation2 + $0x17e] sm:$0x3] %vm1275_vm10, %v1269_v35  ;;  %1684 = vrot.lane.b32.xlu1 %v5162_v31, %s4254_s6  ;;  %1682 = vrot.lane.b32.xlu0 %v5165_v30, %s4254_s6  ;;  %v5332_v35 = vld [vmem:[%s4349_s10 + $0x134] sm:$0xff] }
 0x1b4   : > { %v1374_v52 = vpop.permute.xlu1 %1373  ;;  %v1372_v53 = vpop.permute.xlu0 %1371 }
 0x1b5   : > { %1510 = vst.msk [vmem:[#allocation2 + $0x10] sm:$0xff] %vm1507_vm9, %v1374_v52  ;;  %1509 = vst.msk [vmem:[#allocation2 + $0x8] sm:$0xff] %vm1507_vm9, %v1372_v53 }
 0x1b6   : > { %1688 = vrot.lane.b32.xlu1 %v5173_v48, %s4254_s6  ;;  %1686 = vrot.lane.b32.xlu0 %v5176_v49, %s4254_s6 }
 0x1b8   : > { %v1378_v0 = vpop.permute.xlu1 %1377  ;;  %v1376_v1 = vpop.permute.xlu0 %1375 }
 0x1b9   : > { %1512 = vst.msk [vmem:[#allocation2 + $0x20] sm:$0xff] %vm1507_vm9, %v1378_v0  ;;  %1511 = vst.msk [vmem:[#allocation2 + $0x18] sm:$0xff] %vm1507_vm9, %v1376_v1  ;;  %v5341_v0 = vld [vmem:[%s4349_s10 + $0x14c] sm:$0xff]  ;;  %v5344_v1 = vld [vmem:[%s4349_s10 + $0x144] sm:$0xff] }
 0x1ba   : > { %1692 = vrot.lane.b32.xlu1 %v5185_v60, %s4254_s6  ;;  %1690 = vrot.lane.b32.xlu0 %v5188_v61, %s4254_s6 }
 0x1bc   : > { %v1382_v8 = vpop.permute.xlu1 %1381  ;;  %v1380_v9 = vpop.permute.xlu0 %1379 }
 0x1bd   : > { %1514 = vst.msk [vmem:[#allocation2 + $0x30] sm:$0xff] %vm1507_vm9, %v1382_v8  ;;  %1513 = vst.msk [vmem:[#allocation2 + $0x28] sm:$0xff] %vm1507_vm9, %v1380_v9 }
 0x1be   : > { %1696 = vrot.lane.b32.xlu1 %v5197_v4, %s4254_s6  ;;  %1694 = vrot.lane.b32.xlu0 %v5200_v5, %s4254_s6 }
 0x1c0   : > { %v1386_v16 = vpop.permute.xlu1 %1385  ;;  %v1384_v17 = vpop.permute.xlu0 %1383 }
 0x1c1   : > { %1516 = vst.msk [vmem:[#allocation2 + $0x40] sm:$0xff] %vm1507_vm9, %v1386_v16  ;;  %1515 = vst.msk [vmem:[#allocation2 + $0x38] sm:$0xff] %vm1507_vm9, %v1384_v17  ;;  %v5353_v16 = vld [vmem:[%s4349_s10 + $0x15c] sm:$0xff]  ;;  %v5356_v17 = vld [vmem:[%s4349_s10 + $0x154] sm:$0xff] }
 0x1c2   : > { %1700 = vrot.lane.b32.xlu1 %v5209_v12, %s4254_s6  ;;  %1698 = vrot.lane.b32.xlu0 %v5212_v13, %s4254_s6 }
 0x1c4   : > { %v1390_v24 = vpop.permute.xlu1 %1389  ;;  %v1388_v25 = vpop.permute.xlu0 %1387 }
 0x1c5   : > { %1518 = vst.msk [vmem:[#allocation2 + $0x50] sm:$0xff] %vm1507_vm9, %v1390_v24  ;;  %1517 = vst.msk [vmem:[#allocation2 + $0x48] sm:$0xff] %vm1507_vm9, %v1388_v25 }
 0x1c6   : > { %1704 = vrot.lane.b32.xlu1 %v5221_v20, %s4254_s6  ;;  %1702 = vrot.lane.b32.xlu0 %v5224_v21, %s4254_s6 }
 0x1c8   : > { %v1394_v32 = vpop.permute.xlu1 %1393  ;;  %v1392_v33 = vpop.permute.xlu0 %1391 }
 0x1c9   : > { %1520 = vst.msk [vmem:[#allocation2 + $0x60] sm:$0xff] %vm1507_vm9, %v1394_v32  ;;  %1519 = vst.msk [vmem:[#allocation2 + $0x58] sm:$0xff] %vm1507_vm9, %v1392_v33  ;;  %v5365_v32 = vld [vmem:[%s4349_s10 + $0x16c] sm:$0xff]  ;;  %v5368_v33 = vld [vmem:[%s4349_s10 + $0x164] sm:$0xff] }
 0x1ca   : > { %1708 = vrot.lane.b32.xlu1 %v5233_v28, %s4254_s6  ;;  %1706 = vrot.lane.b32.xlu0 %v5236_v29, %s4254_s6 }
 0x1cc   : > { %v1398_v37 = vpop.permute.xlu1 %1397  ;;  %v1396_v36 = vpop.permute.xlu0 %1395 }
 0x1cd   : > { %1522 = vst.msk [vmem:[#allocation2 + $0x70] sm:$0xff] %vm1507_vm9, %v1398_v37  ;;  %1521 = vst.msk [vmem:[#allocation2 + $0x68] sm:$0xff] %vm1507_vm9, %v1396_v36 }
 0x1ce   : > { %1712 = vrot.lane.b32.xlu1 %v5245_v45, %s4254_s6  ;;  %1710 = vrot.lane.b32.xlu0 %v5248_v34, %s4254_s6 }
 0x1d0   : > { %v1402_v41 = vpop.permute.xlu1 %1401  ;;  %v1400_v40 = vpop.permute.xlu0 %1399 }
 0x1d1   : > { %1524 = vst.msk [vmem:[#allocation2 + $0x80] sm:$0xff] %vm1507_vm9, %v1402_v41  ;;  %1523 = vst.msk [vmem:[#allocation2 + $0x78] sm:$0xff] %vm1507_vm9, %v1400_v40  ;;  %v1619_v41 = vld [vmem:[%s4349_s10 + $0x17c] sm:$0xf]  ;;  %v5378_v40 = vld [vmem:[%s4349_s10 + $0x174] sm:$0xff] }
 0x1d2   : > { %1716 = vrot.lane.b32.xlu1 %v5257_v39, %s4254_s6  ;;  %1714 = vrot.lane.b32.xlu0 %v5260_v38, %s4254_s6 }
 0x1d4   : > { %v1406_v47 = vpop.permute.xlu1 %1405  ;;  %v1404_v46 = vpop.permute.xlu0 %1403 }
 0x1d5   : > { %1526 = vst.msk [vmem:[#allocation2 + $0x90] sm:$0xff] %vm1507_vm9, %v1406_v47  ;;  %1525 = vst.msk [vmem:[#allocation2 + $0x88] sm:$0xff] %vm1507_vm9, %v1404_v46 }
 0x1d6   : > { %1720 = vrot.lane.b32.xlu1 %v5269_v43, %s4254_s6  ;;  %1718 = vrot.lane.b32.xlu0 %v5272_v42, %s4254_s6 }
 0x1d8   : > { %v1410_v55 = vpop.permute.xlu1 %1409  ;;  %v1408_v54 = vpop.permute.xlu0 %1407 }
 0x1d9   : > { %1528 = vst.msk [vmem:[#allocation2 + $0xa0] sm:$0xff] %vm1507_vm9, %v1410_v55  ;;  %1527 = vst.msk [vmem:[#allocation2 + $0x98] sm:$0xff] %vm1507_vm9, %v1408_v54 }
 0x1da   : > { %1724 = vrot.lane.b32.xlu1 %v5281_v51, %s4254_s6  ;;  %1722 = vrot.lane.b32.xlu0 %v5284_v50, %s4254_s6 }
 0x1dc   : > { %v1414_v63 = vpop.permute.xlu1 %1413  ;;  %v1412_v62 = vpop.permute.xlu0 %1411 }
 0x1dd   : > { %1530 = vst.msk [vmem:[#allocation2 + $0xb0] sm:$0xff] %vm1507_vm9, %v1414_v63  ;;  %1529 = vst.msk [vmem:[#allocation2 + $0xa8] sm:$0xff] %vm1507_vm9, %v1412_v62  ;;  %v1854_v63 = vld [vmem:[%s4545_s17 + $0x10] sm:$0xf] }
 0x1de   : > { %1728 = vrot.lane.b32.xlu1 %v5293_v59, %s4254_s6  ;;  %1726 = vrot.lane.b32.xlu0 %v5296_v58, %s4254_s6 }
 0x1e0   : > { %v1418_v11 = vpop.permute.xlu1 %1417  ;;  %v1416_v10 = vpop.permute.xlu0 %1415 }
 0x1e1   : > { %1532 = vst.msk [vmem:[#allocation2 + $0xc0] sm:$0xff] %vm1507_vm9, %v1418_v11  ;;  %1531 = vst.msk [vmem:[#allocation2 + $0xb8] sm:$0xff] %vm1507_vm9, %v1416_v10 }
 0x1e2   : > { %1732 = vrot.lane.b32.xlu1 %v5305_v3, %s4254_s6  ;;  %1730 = vrot.lane.b32.xlu0 %v5308_v2, %s4254_s6 }
 0x1e4   : > { %v1422_v27 = vpop.permute.xlu1 %1421  ;;  %v1420_v26 = vpop.permute.xlu0 %1419 }
 0x1e5   : > { %1534 = vst.msk [vmem:[#allocation2 + $0xd0] sm:$0xff] %vm1507_vm9, %v1422_v27  ;;  %1533 = vst.msk [vmem:[#allocation2 + $0xc8] sm:$0xff] %vm1507_vm9, %v1420_v26 }
 0x1e6   : > { %1736 = vrot.lane.b32.xlu1 %v5317_v19, %s4254_s6  ;;  %1734 = vrot.lane.b32.xlu0 %v5320_v18, %s4254_s6 }
 0x1e8   : > { %v1426_v52 = vpop.permute.xlu1 %1425  ;;  %v1424_v53 = vpop.permute.xlu0 %1423 }
 0x1e9   : > { %1536 = vst.msk [vmem:[#allocation2 + $0xe0] sm:$0xff] %vm1507_vm9, %v1426_v52  ;;  %1535 = vst.msk [vmem:[#allocation2 + $0xd8] sm:$0xff] %vm1507_vm9, %v1424_v53  ;;  %v5522_v53 = vld [vmem:[%s4545_s17] sm:$0xff] }
 0x1ea   : > { %1740 = vrot.lane.b32.xlu1 %v5329_v44, %s4254_s6  ;;  %1738 = vrot.lane.b32.xlu0 %v5332_v35, %s4254_s6 }
 0x1ec   : > { %v1430_v8 = vpop.permute.xlu1 %1429  ;;  %v1428_v9 = vpop.permute.xlu0 %1427 }
 0x1ed   : > { %1538 = vst.msk [vmem:[#allocation2 + $0xf0] sm:$0xff] %vm1507_vm9, %v1430_v8  ;;  %1537 = vst.msk [vmem:[#allocation2 + $0xe8] sm:$0xff] %vm1507_vm9, %v1428_v9  ;;  %v5531_v9 = vld [vmem:[%s4545_s17 + $0x10] sm:$0xff] }
 0x1ee   : > { %1744 = vrot.lane.b32.xlu1 %v5341_v0, %s4254_s6  ;;  %1742 = vrot.lane.b32.xlu0 %v5344_v1, %s4254_s6 }
 0x1f0   : > { %v1434_v24 = vpop.permute.xlu1 %1433  ;;  %v1432_v25 = vpop.permute.xlu0 %1431 }
 0x1f1   : > { %1540 = vst.msk [vmem:[#allocation2 + $0x100] sm:$0xff] %vm1507_vm9, %v1434_v24  ;;  %1539 = vst.msk [vmem:[#allocation2 + $0xf8] sm:$0xff] %vm1507_vm9, %v1432_v25  ;;  %v2140_v25 = vld [vmem:[%s4545_s17 + $0x20] sm:$0xf] }
 0x1f2   : > { %1748 = vrot.lane.b32.xlu1 %v5353_v16, %s4254_s6  ;;  %1746 = vrot.lane.b32.xlu0 %v5356_v17, %s4254_s6 }
 0x1f4   : > { %v1438_v37 = vpop.permute.xlu1 %1437  ;;  %v1436_v36 = vpop.permute.xlu0 %1435 }
 0x1f5   : > { %1542 = vst.msk [vmem:[#allocation2 + $0x110] sm:$0xff] %vm1507_vm9, %v1438_v37  ;;  %1541 = vst.msk [vmem:[#allocation2 + $0x108] sm:$0xff] %vm1507_vm9, %v1436_v36  ;;  %v2167_v36 = vld [vmem:[%s4349_s10 + $0x2d] sm:$0xff] }
 0x1f6   : > { %1752 = vrot.lane.b32.xlu1 %v5365_v32, %s4254_s6  ;;  %1750 = vrot.lane.b32.xlu0 %v5368_v33, %s4254_s6 }
 0x1f8   : > { %v1442_v47 = vpop.permute.xlu1 %1441  ;;  %v1440_v46 = vpop.permute.xlu0 %1439 }
 0x1f9   : > { %1544 = vst.msk [vmem:[#allocation2 + $0x120] sm:$0xff] %vm1507_vm9, %v1442_v47  ;;  %1543 = vst.msk [vmem:[#allocation2 + $0x118] sm:$0xff] %vm1507_vm9, %v1440_v46  ;;  %v2169_v46 = vld [vmem:[%s4349_s10 + $0x3d] sm:$0xff] }
 0x1fa   : > { %1756 = vrot.lane.b32.xlu1 %v1619_v41, %s4254_s6  ;;  %1754 = vrot.lane.b32.xlu0 %v5378_v40, %s4254_s6  ;;  %v2166_v41 = vld [vmem:[%s4349_s10 + $0x25] sm:$0xff] }
 0x1fc   : > { %v1446_v55 = vpop.permute.xlu1 %1445  ;;  %v1444_v54 = vpop.permute.xlu0 %1443 }
 0x1fd   : > { %1546 = vst.msk [vmem:[#allocation2 + $0x130] sm:$0xff] %vm1507_vm9, %v1446_v55  ;;  %1545 = vst.msk [vmem:[#allocation2 + $0x128] sm:$0xff] %vm1507_vm9, %v1444_v54  ;;  %v2168_v55 = vld [vmem:[%s4349_s10 + $0x35] sm:$0xff] }
 0x1fe   : > { %1860 = vrot.lane.b32.xlu1 %v4961_v56, %s4254_s6  ;;  %1858 = vrot.lane.b32.xlu0 %v4964_v57, %s4254_s6 }
 0x200   : > { %v1450_v62 = vpop.permute.xlu1 %1449  ;;  %v1448_v11 = vpop.permute.xlu0 %1447 }
 0x201   : > { %1548 = vst.msk [vmem:[#allocation2 + $0x140] sm:$0xff] %vm1507_vm9, %v1450_v62  ;;  %1547 = vst.msk [vmem:[#allocation2 + $0x138] sm:$0xff] %vm1507_vm9, %v1448_v11  ;;  %v2171_v62 = vld [vmem:[%s4349_s10 + $0x4d] sm:$0xff]  ;;  %v2170_v11 = vld [vmem:[%s4349_s10 + $0x45] sm:$0xff] }
 0x202   : > { %1958 = vrot.lane.b32.xlu1 %v5130_v6, %s4255_s7  ;;  %1862 = vrot.lane.b32.xlu0 %v1854_v63, %s4254_s6  ;;  %s5854_s6 = scalar_lea.vmem %s6287_s3, %s3924_s23 }
 0x204   : > { %v1454_v10 = vpop.permute.xlu1 %1453  ;;  %v1452_v27 = vpop.permute.xlu0 %1451 }
 0x205   : > { %1550 = vst.msk [vmem:[#allocation2 + $0x150] sm:$0xff] %vm1507_vm9, %v1454_v10  ;;  %1549 = vst.msk [vmem:[#allocation2 + $0x148] sm:$0xff] %vm1507_vm9, %v1452_v27 }
 0x206   : > { %1962 = vrot.lane.b32.xlu1 %v5142_v14, %s4255_s7  ;;  %1960 = vrot.lane.b32.xlu0 %v5127_v7, %s4255_s7 }
 0x208   : > { %v1458_v56 = vpop.permute.xlu1 %1457  ;;  %v1456_v57 = vpop.permute.xlu0 %1455 }
 0x209   : > { %1552 = vst.msk [vmem:[#allocation2 + $0x160] sm:$0xff] %vm1507_vm9, %v1458_v56  ;;  %1551 = vst.msk [vmem:[#allocation2 + $0x158] sm:$0xff] %vm1507_vm9, %v1456_v57  ;;  %v2173_v56 = vld [vmem:[%s4349_s10 + $0x5d] sm:$0xff]  ;;  %v2172_v57 = vld [vmem:[%s4349_s10 + $0x55] sm:$0xff] }
 0x20a   : > { %1966 = vrot.lane.b32.xlu1 %v5153_v22, %s4255_s7  ;;  %1964 = vrot.lane.b32.xlu0 %v5139_v15, %s4255_s7 }
 0x20c   : > { %v1562_v6 = vpop.permute.xlu1 %1561  ;;  %v1460_v26 = vpop.permute.xlu0 %1459 }
 0x20d   : > { %1570 = vst.msk [vmem:[#allocation2 + $0x16d] sm:$0xff] %vm1507_vm9, %v1562_v6 }
 0x20e   : > { %1554 = vst.msk [vmem:[#allocation2 + $0x168] sm:$0x1f] %vm1553_vm11, %v1460_v26  ;;  %1970 = vrot.lane.b32.xlu1 %v5165_v30, %s4255_s7  ;;  %1968 = vrot.lane.b32.xlu0 %v5150_v23, %s4255_s7 }
 0x210   : > { %v1566_v7 = vpop.permute.xlu1 %1565  ;;  %v1564_v14 = vpop.permute.xlu0 %1563 }
 0x211   : > { %1573 = vst.msk [vmem:[#allocation2 + $0x17d] sm:$0x7] %vm1572_vm12, %v1566_v7  ;;  %v2175_v7 = vld [vmem:[%s4349_s10 + $0x6d] sm:$0xff] }
 0x212   : > { %1571 = vst.msk [vmem:[#allocation2 + $0x175] sm:$0xff] %vm1507_vm9, %v1564_v14  ;;  %1974 = vrot.lane.b32.xlu1 %v5176_v49, %s4255_s7  ;;  %1972 = vrot.lane.b32.xlu0 %v5162_v31, %s4255_s7  ;;  %v2174_v14 = vld [vmem:[%s4349_s10 + $0x65] sm:$0xff]  ;;  %vm3644_vm9 = vcmask 1040384  }
 0x214   : > { %v1669_v15 = vpop.permute.xlu1 %1668  ;;  %v1667_v22 = vpop.permute.xlu0 %1666 }
 0x215   : > { %1806 = vst.msk [vmem:[#allocation2 + $0x8] sm:$0xff] %vm1804_vm13, %v1669_v15  ;;  %1805 = vst.msk [vmem:[#allocation2] sm:$0xff] %vm1804_vm13, %v1667_v22 }
 0x216   : > { %1978 = vrot.lane.b32.xlu1 %v5188_v61, %s4255_s7  ;;  %1976 = vrot.lane.b32.xlu0 %v5173_v48, %s4255_s7 }
 0x218   : > { %v1673_v23 = vpop.permute.xlu1 %1672  ;;  %v1671_v30 = vpop.permute.xlu0 %1670 }
 0x219   : > { %1808 = vst.msk [vmem:[#allocation2 + $0x18] sm:$0xff] %vm1804_vm13, %v1673_v23  ;;  %1807 = vst.msk [vmem:[#allocation2 + $0x10] sm:$0xff] %vm1804_vm13, %v1671_v30  ;;  %v2177_v23 = vld [vmem:[%s4349_s10 + $0x7d] sm:$0xff]  ;;  %v2176_v30 = vld [vmem:[%s4349_s10 + $0x75] sm:$0xff] }
 0x21a   : > { %1982 = vrot.lane.b32.xlu1 %v5200_v5, %s4255_s7  ;;  %1980 = vrot.lane.b32.xlu0 %v5185_v60, %s4255_s7 }
 0x21c   : > { %v1677_v31 = vpop.permute.xlu1 %1676  ;;  %v1675_v49 = vpop.permute.xlu0 %1674 }
 0x21d   : > { %1810 = vst.msk [vmem:[#allocation2 + $0x28] sm:$0xff] %vm1804_vm13, %v1677_v31  ;;  %1809 = vst.msk [vmem:[#allocation2 + $0x20] sm:$0xff] %vm1804_vm13, %v1675_v49 }
 0x21e   : > { %1986 = vrot.lane.b32.xlu1 %v5212_v13, %s4255_s7  ;;  %1984 = vrot.lane.b32.xlu0 %v5197_v4, %s4255_s7 }
 0x220   : > { %v1681_v48 = vpop.permute.xlu1 %1680  ;;  %v1679_v61 = vpop.permute.xlu0 %1678 }
 0x221   : > { %1812 = vst.msk [vmem:[#allocation2 + $0x38] sm:$0xff] %vm1804_vm13, %v1681_v48  ;;  %1811 = vst.msk [vmem:[#allocation2 + $0x30] sm:$0xff] %vm1804_vm13, %v1679_v61  ;;  %v2179_v48 = vld [vmem:[%s4349_s10 + $0x8d] sm:$0xff]  ;;  %v2178_v61 = vld [vmem:[%s4349_s10 + $0x85] sm:$0xff] }
 0x222   : > { %1990 = vrot.lane.b32.xlu1 %v5224_v21, %s4255_s7  ;;  %1988 = vrot.lane.b32.xlu0 %v5209_v12, %s4255_s7 }
 0x224   : > { %v1685_v60 = vpop.permute.xlu1 %1684  ;;  %v1683_v5 = vpop.permute.xlu0 %1682 }
 0x225   : > { %1814 = vst.msk [vmem:[#allocation2 + $0x48] sm:$0xff] %vm1804_vm13, %v1685_v60  ;;  %1813 = vst.msk [vmem:[#allocation2 + $0x40] sm:$0xff] %vm1804_vm13, %v1683_v5 }
 0x226   : > { %1994 = vrot.lane.b32.xlu1 %v5236_v29, %s4255_s7  ;;  %1992 = vrot.lane.b32.xlu0 %v5221_v20, %s4255_s7 }
 0x228   : > { %v1689_v4 = vpop.permute.xlu1 %1688  ;;  %v1687_v13 = vpop.permute.xlu0 %1686 }
 0x229   : > { %1816 = vst.msk [vmem:[#allocation2 + $0x58] sm:$0xff] %vm1804_vm13, %v1689_v4  ;;  %1815 = vst.msk [vmem:[#allocation2 + $0x50] sm:$0xff] %vm1804_vm13, %v1687_v13  ;;  %v2181_v4 = vld [vmem:[%s4349_s10 + $0x9d] sm:$0xff]  ;;  %v2180_v13 = vld [vmem:[%s4349_s10 + $0x95] sm:$0xff] }
 0x22a   : > { %1998 = vrot.lane.b32.xlu1 %v5248_v34, %s4255_s7  ;;  %1996 = vrot.lane.b32.xlu0 %v5233_v28, %s4255_s7 }
 0x22c   : > { %v1693_v12 = vpop.permute.xlu1 %1692  ;;  %v1691_v21 = vpop.permute.xlu0 %1690 }
 0x22d   : > { %1818 = vst.msk [vmem:[#allocation2 + $0x68] sm:$0xff] %vm1804_vm13, %v1693_v12  ;;  %1817 = vst.msk [vmem:[#allocation2 + $0x60] sm:$0xff] %vm1804_vm13, %v1691_v21 }
 0x22e   : > { %2002 = vrot.lane.b32.xlu1 %v5260_v38, %s4255_s7  ;;  %2000 = vrot.lane.b32.xlu0 %v5245_v45, %s4255_s7 }
 0x230   : > { %v1697_v20 = vpop.permute.xlu1 %1696  ;;  %v1695_v29 = vpop.permute.xlu0 %1694 }
 0x231   : > { %1820 = vst.msk [vmem:[#allocation2 + $0x78] sm:$0xff] %vm1804_vm13, %v1697_v20  ;;  %1819 = vst.msk [vmem:[#allocation2 + $0x70] sm:$0xff] %vm1804_vm13, %v1695_v29  ;;  %v2183_v20 = vld [vmem:[%s4349_s10 + $0xad] sm:$0xff]  ;;  %v2182_v29 = vld [vmem:[%s4349_s10 + $0xa5] sm:$0xff] }
 0x232   : > { %2006 = vrot.lane.b32.xlu1 %v5272_v42, %s4255_s7  ;;  %2004 = vrot.lane.b32.xlu0 %v5257_v39, %s4255_s7 }
 0x234   : > { %v1701_v28 = vpop.permute.xlu1 %1700  ;;  %v1699_v34 = vpop.permute.xlu0 %1698 }
 0x235   : > { %1822 = vst.msk [vmem:[#allocation2 + $0x88] sm:$0xff] %vm1804_vm13, %v1701_v28  ;;  %1821 = vst.msk [vmem:[#allocation2 + $0x80] sm:$0xff] %vm1804_vm13, %v1699_v34 }
 0x236   : > { %2010 = vrot.lane.b32.xlu1 %v5284_v50, %s4255_s7  ;;  %2008 = vrot.lane.b32.xlu0 %v5269_v43, %s4255_s7 }
 0x238   : > { %v1705_v45 = vpop.permute.xlu1 %1704  ;;  %v1703_v38 = vpop.permute.xlu0 %1702 }
 0x239   : > { %1824 = vst.msk [vmem:[#allocation2 + $0x98] sm:$0xff] %vm1804_vm13, %v1705_v45  ;;  %1823 = vst.msk [vmem:[#allocation2 + $0x90] sm:$0xff] %vm1804_vm13, %v1703_v38  ;;  %v2185_v45 = vld [vmem:[%s4349_s10 + $0xbd] sm:$0xff]  ;;  %v2184_v38 = vld [vmem:[%s4349_s10 + $0xb5] sm:$0xff] }
 0x23a   : > { %2014 = vrot.lane.b32.xlu1 %v5296_v58, %s4255_s7  ;;  %2012 = vrot.lane.b32.xlu0 %v5281_v51, %s4255_s7 }
 0x23c   : > { %v1709_v39 = vpop.permute.xlu1 %1708  ;;  %v1707_v42 = vpop.permute.xlu0 %1706 }
 0x23d   : > { %1826 = vst.msk [vmem:[#allocation2 + $0xa8] sm:$0xff] %vm1804_vm13, %v1709_v39  ;;  %1825 = vst.msk [vmem:[#allocation2 + $0xa0] sm:$0xff] %vm1804_vm13, %v1707_v42 }
 0x23e   : > { %2018 = vrot.lane.b32.xlu1 %v5308_v2, %s4255_s7  ;;  %2016 = vrot.lane.b32.xlu0 %v5293_v59, %s4255_s7 }
 0x240   : > { %v1713_v43 = vpop.permute.xlu1 %1712  ;;  %v1711_v50 = vpop.permute.xlu0 %1710 }
 0x241   : > { %1828 = vst.msk [vmem:[#allocation2 + $0xb8] sm:$0xff] %vm1804_vm13, %v1713_v43  ;;  %1827 = vst.msk [vmem:[#allocation2 + $0xb0] sm:$0xff] %vm1804_vm13, %v1711_v50  ;;  %v2187_v43 = vld [vmem:[%s4349_s10 + $0xcd] sm:$0xff]  ;;  %v2186_v50 = vld [vmem:[%s4349_s10 + $0xc5] sm:$0xff] }
 0x242   : > { %2022 = vrot.lane.b32.xlu1 %v5320_v18, %s4255_s7  ;;  %2020 = vrot.lane.b32.xlu0 %v5305_v3, %s4255_s7 }
 0x244   : > { %v1717_v51 = vpop.permute.xlu1 %1716  ;;  %v1715_v58 = vpop.permute.xlu0 %1714 }
 0x245   : > { %1830 = vst.msk [vmem:[#allocation2 + $0xc8] sm:$0xff] %vm1804_vm13, %v1717_v51  ;;  %1829 = vst.msk [vmem:[#allocation2 + $0xc0] sm:$0xff] %vm1804_vm13, %v1715_v58 }
 0x246   : > { %2026 = vrot.lane.b32.xlu1 %v5332_v35, %s4255_s7  ;;  %2024 = vrot.lane.b32.xlu0 %v5317_v19, %s4255_s7 }
 0x248   : > { %v1721_v59 = vpop.permute.xlu1 %1720  ;;  %v1719_v2 = vpop.permute.xlu0 %1718 }
 0x249   : > { %1832 = vst.msk [vmem:[#allocation2 + $0xd8] sm:$0xff] %vm1804_vm13, %v1721_v59  ;;  %1831 = vst.msk [vmem:[#allocation2 + $0xd0] sm:$0xff] %vm1804_vm13, %v1719_v2  ;;  %v2189_v59 = vld [vmem:[%s4349_s10 + $0xdd] sm:$0xff]  ;;  %v2188_v2 = vld [vmem:[%s4349_s10 + $0xd5] sm:$0xff] }
 0x24a   : > { %2030 = vrot.lane.b32.xlu1 %v5344_v1, %s4255_s7  ;;  %2028 = vrot.lane.b32.xlu0 %v5329_v44, %s4255_s7 }
 0x24c   : > { %v1725_v3 = vpop.permute.xlu1 %1724  ;;  %v1723_v18 = vpop.permute.xlu0 %1722 }
 0x24d   : > { %1834 = vst.msk [vmem:[#allocation2 + $0xe8] sm:$0xff] %vm1804_vm13, %v1725_v3  ;;  %1833 = vst.msk [vmem:[#allocation2 + $0xe0] sm:$0xff] %vm1804_vm13, %v1723_v18 }
 0x24e   : > { %2034 = vrot.lane.b32.xlu1 %v5356_v17, %s4255_s7  ;;  %2032 = vrot.lane.b32.xlu0 %v5341_v0, %s4255_s7  ;;  %v1913_v0 = vld [vmem:[%s4349_s10 + $0x17c] sm:$0xf] }
 0x250   : > { %v1729_v19 = vpop.permute.xlu1 %1728  ;;  %v1727_v35 = vpop.permute.xlu0 %1726 }
 0x251   : > { %1836 = vst.msk [vmem:[#allocation2 + $0xf8] sm:$0xff] %vm1804_vm13, %v1729_v19  ;;  %1835 = vst.msk [vmem:[#allocation2 + $0xf0] sm:$0xff] %vm1804_vm13, %v1727_v35  ;;  %v2191_v19 = vld [vmem:[%s4349_s10 + $0xed] sm:$0xff]  ;;  %v2190_v35 = vld [vmem:[%s4349_s10 + $0xe5] sm:$0xff] }
 0x252   : > { %2038 = vrot.lane.b32.xlu1 %v5368_v33, %s4255_s7  ;;  %2036 = vrot.lane.b32.xlu0 %v5353_v16, %s4255_s7  ;;  %v5534_v16 = vld [vmem:[%s4545_s17 + $0x8] sm:$0xff] }
 0x254   : > { %v1733_v44 = vpop.permute.xlu1 %1732  ;;  %v1731_v52 = vpop.permute.xlu0 %1730 }
 0x255   : > { %1838 = vst.msk [vmem:[#allocation2 + $0x108] sm:$0xff] %vm1804_vm13, %v1733_v44  ;;  %1837 = vst.msk [vmem:[#allocation2 + $0x100] sm:$0xff] %vm1804_vm13, %v1731_v52 }
 0x256   : > { %2042 = vrot.lane.b32.xlu1 %v5378_v40, %s4255_s7  ;;  %2040 = vrot.lane.b32.xlu0 %v5365_v32, %s4255_s7  ;;  %v5544_v32 = vld [vmem:[%s4545_s17 + $0x18] sm:$0xff] }
 0x258   : > { %v1737_v1 = vpop.permute.xlu1 %1736  ;;  %v1735_v8 = vpop.permute.xlu0 %1734 }
 0x259   : > { %1840 = vst.msk [vmem:[#allocation2 + $0x118] sm:$0xff] %vm1804_vm13, %v1737_v1  ;;  %1839 = vst.msk [vmem:[#allocation2 + $0x110] sm:$0xff] %vm1804_vm13, %v1735_v8  ;;  %v2192_v1 = vld [vmem:[%s4349_s10 + $0xf5] sm:$0xff] }
 0x25a   : > { %2146 = vrot.lane.b32.xlu1 %v5522_v53, %s4255_s7  ;;  %2044 = vrot.lane.b32.xlu0 %v1913_v0, %s4255_s7  ;;  %v2193_v0 = vld [vmem:[%s4349_s10 + $0xfd] sm:$0xff] }
 0x25c   : > { %v1741_v17 = vpop.permute.xlu1 %1740  ;;  %v1739_v24 = vpop.permute.xlu0 %1738 }
 0x25d   : > { %1842 = vst.msk [vmem:[#allocation2 + $0x128] sm:$0xff] %vm1804_vm13, %v1741_v17  ;;  %1841 = vst.msk [vmem:[#allocation2 + $0x120] sm:$0xff] %vm1804_vm13, %v1739_v24  ;;  %v2195_v24 = vld [vmem:[%s4349_s10 + $0x10d] sm:$0xff] }
 0x25e   : > { %2150 = vrot.lane.b32.xlu1 %v5531_v9, %s4255_s7  ;;  %2148 = vrot.lane.b32.xlu0 %v5534_v16, %s4255_s7 }
 0x260   : > { %v1745_v33 = vpop.permute.xlu1 %1744  ;;  %v1743_v37 = vpop.permute.xlu0 %1742 }
 0x261   : > { %1844 = vst.msk [vmem:[#allocation2 + $0x138] sm:$0xff] %vm1804_vm13, %v1745_v33  ;;  %1843 = vst.msk [vmem:[#allocation2 + $0x130] sm:$0xff] %vm1804_vm13, %v1743_v37 }
 0x262   : > { %2154 = vrot.lane.b32.xlu1 %v2140_v25, %s4255_s7  ;;  %2152 = vrot.lane.b32.xlu0 %v5544_v32, %s4255_s7  ;;  %v2194_v25 = vld [vmem:[%s4349_s10 + $0x105] sm:$0xff]  ;;  %s3958_s7 = sshll.u32 %s4314_s22, 5 }
 0x263   : > { %s6207_s13 = scalar_lea.hbm %s6289_s5, %s3958_s7 }
 0x264   : > { %v1749_v40 = vpop.permute.xlu1 %1748  ;;  %v1747_v47 = vpop.permute.xlu0 %1746 }
 0x265   : > { %1846 = vst.msk [vmem:[#allocation2 + $0x148] sm:$0xff] %vm1804_vm13, %v1749_v40  ;;  %1845 = vst.msk [vmem:[#allocation2 + $0x140] sm:$0xff] %vm1804_vm13, %v1747_v47 }
 0x266   : > { %2256 = vrot.lane.b32.xlu1 %v2167_v36, %s4256_s8  ;;  %2254 = vrot.lane.b32.xlu0 %v2166_v41, %s4256_s8  ;;  %v2197_v36 = vld [vmem:[%s4349_s10 + $0x11d] sm:$0xff]  ;;  %v2196_v41 = vld [vmem:[%s4349_s10 + $0x115] sm:$0xff] }
 0x268   : > { %v1753_v54 = vpop.permute.xlu1 %1752  ;;  %v1751_v63 = vpop.permute.xlu0 %1750 }
 0x269   : > { %1848 = vst.msk [vmem:[#allocation2 + $0x158] sm:$0xff] %vm1804_vm13, %v1753_v54  ;;  %1847 = vst.msk [vmem:[#allocation2 + $0x150] sm:$0xff] %vm1804_vm13, %v1751_v63 }
 0x26a   : > { %2260 = vrot.lane.b32.xlu1 %v2169_v46, %s4256_s8  ;;  %2258 = vrot.lane.b32.xlu0 %v2168_v55, %s4256_s8  ;;  %v2199_v46 = vld [vmem:[%s4349_s10 + $0x12d] sm:$0xff]  ;;  %v2198_v55 = vld [vmem:[%s4349_s10 + $0x125] sm:$0xff] }
 0x26c   : > { %v1757_v10 = vpop.permute.xlu1 %1756  ;;  %v1755_v27 = vpop.permute.xlu0 %1754 }
 0x26d   : > { %1851 = vst.msk [vmem:[#allocation2 + $0x168] sm:$0xf] %vm1850_vm14, %v1757_v10 }
 0x26e   : > { %1849 = vst.msk [vmem:[#allocation2 + $0x160] sm:$0xff] %vm1804_vm13, %v1755_v27  ;;  %2264 = vrot.lane.b32.xlu1 %v2171_v62, %s4256_s8  ;;  %2262 = vrot.lane.b32.xlu0 %v2170_v11, %s4256_s8  ;;  %v2201_v62 = vld [vmem:[%s4349_s10 + $0x13d] sm:$0xff]  ;;  %v2200_v11 = vld [vmem:[%s4349_s10 + $0x135] sm:$0xff] }
 0x270   : > { %v1861_v6 = vpop.permute.xlu1 %1860  ;;  %v1859_v26 = vpop.permute.xlu0 %1858 }
 0x271   : > { %1868 = vst.msk [vmem:[#allocation2 + $0x174] sm:$0xff] %vm1804_vm13, %v1861_v6  ;;  %1867 = vst.msk [vmem:[#allocation2 + $0x16c] sm:$0xff] %vm1804_vm13, %v1859_v26 }
 0x272   : > { %2268 = vrot.lane.b32.xlu1 %v2173_v56, %s4256_s8  ;;  %2266 = vrot.lane.b32.xlu0 %v2172_v57, %s4256_s8  ;;  %v2203_v56 = vld [vmem:[%s4349_s10 + $0x14d] sm:$0xff]  ;;  %v2202_v57 = vld [vmem:[%s4349_s10 + $0x145] sm:$0xff] }
 0x274   : > { %v1959_v15 = vpop.permute.xlu1 %1958  ;;  %v1863_v22 = vpop.permute.xlu0 %1862 }
 0x275   : > { %2091 = vst.msk [vmem:[#allocation2] sm:$0xff] %vm2090_vm15, %v1959_v15 }
 0x276   : > { %1869 = vst.msk [vmem:[#allocation2 + $0x17c] sm:$0xf] %vm1850_vm14, %v1863_v22  ;;  %2272 = vrot.lane.b32.xlu1 %v2175_v7, %s4256_s8  ;;  %2270 = vrot.lane.b32.xlu0 %v2174_v14, %s4256_s8  ;;  %v2205_v7 = vld [vmem:[%s4349_s10 + $0x15d] sm:$0xff]  ;;  %v2204_v14 = vld [vmem:[%s4349_s10 + $0x155] sm:$0xff] }
 0x278   : > { %v1963_v31 = vpop.permute.xlu1 %1962  ;;  %v1961_v49 = vpop.permute.xlu0 %1960 }
 0x279   : > { %2093 = vst.msk [vmem:[#allocation2 + $0x10] sm:$0xff] %vm2090_vm15, %v1963_v31  ;;  %2092 = vst.msk [vmem:[#allocation2 + $0x8] sm:$0xff] %vm2090_vm15, %v1961_v49 }
 0x27a   : > { %2276 = vrot.lane.b32.xlu1 %v2177_v23, %s4256_s8  ;;  %2274 = vrot.lane.b32.xlu0 %v2176_v30, %s4256_s8  ;;  %v2207_v23 = vld [vmem:[%s4349_s10 + $0x16d] sm:$0xff]  ;;  %v2206_v30 = vld [vmem:[%s4349_s10 + $0x165] sm:$0xff] }
 0x27c   : > { %v1967_v60 = vpop.permute.xlu1 %1966  ;;  %v1965_v5 = vpop.permute.xlu0 %1964 }
 0x27d   : > { %2095 = vst.msk [vmem:[#allocation2 + $0x20] sm:$0xff] %vm2090_vm15, %v1967_v60  ;;  %2094 = vst.msk [vmem:[#allocation2 + $0x18] sm:$0xff] %vm2090_vm15, %v1965_v5 }
 0x27e   : > { %2280 = vrot.lane.b32.xlu1 %v2179_v48, %s4256_s8  ;;  %2278 = vrot.lane.b32.xlu0 %v2178_v61, %s4256_s8  ;;  %v2209_v48 = vld [vmem:[%s4349_s10 + $0x17d] sm:$0x7]  ;;  %v2208_v61 = vld [vmem:[%s4349_s10 + $0x175] sm:$0xff] }
 0x280   : > { %v1971_v12 = vpop.permute.xlu1 %1970  ;;  %v1969_v21 = vpop.permute.xlu0 %1968 }
 0x281   : > { %2097 = vst.msk [vmem:[#allocation2 + $0x30] sm:$0xff] %vm2090_vm15, %v1971_v12  ;;  %2096 = vst.msk [vmem:[#allocation2 + $0x28] sm:$0xff] %vm2090_vm15, %v1969_v21  ;;  %v4155_v12 = vld [vmem:[%s6286_s2 + $0x10] ss:$0 sps:$4 sm:$0x33]  }
 0x282   : > { %2284 = vrot.lane.b32.xlu1 %v2181_v4, %s4256_s8  ;;  %2282 = vrot.lane.b32.xlu0 %v2180_v13, %s4256_s8  ;;  %v2927_v21 = vsel %vm2925_vm0, %v4155_v12, 0 }
 0x283   : > { %4053 = vmatprep.subr.msk.bf16.mxu0 %vm2925_vm0, %v4155_v12  ;;  %4054 = vmatprep.subr.msk.bf16.mxu1 %vm2925_vm0, %v4155_v12  ;;  %v2488_v12 = vld [vmem:[%s4349_s10 + $0xee] sm:$0xff] }
 0x284   : > { %v1975_v28 = vpop.permute.xlu1 %1974  ;;  %v1973_v34 = vpop.permute.xlu0 %1972  ;;  %3994 = vmatpush3.bf16.msra.mxu0 %v2927_v21  ;;  %4050 = vmatpush3.bf16.msra.mxu1 %v2927_v21 }
 0x285   : > { %2099 = vst.msk [vmem:[#allocation2 + $0x40] sm:$0xff] %vm2090_vm15, %v1975_v28  ;;  %2098 = vst.msk [vmem:[#allocation2 + $0x38] sm:$0xff] %vm2090_vm15, %v1973_v34  ;;  %v4156_v28 = vld [vmem:[%s6286_s2 + $0x8] sm:$0xff]  }
 0x286   : > { %2288 = vrot.lane.b32.xlu1 %v2183_v20, %s4256_s8  ;;  %2286 = vrot.lane.b32.xlu0 %v2182_v29, %s4256_s8  ;;  %v2463_v34 = vld [vmem:[%s4349_s10 + $0x26] sm:$0xff] }
 0x287   : > { %3995 = vmatprep.subr.bf16.mxu0 %v4156_v28  ;;  %4048 = vmatprep.subr.bf16.mxu1 %v4156_v28 }
 0x288   : > { %v1979_v39 = vpop.permute.xlu1 %1978  ;;  %v1977_v42 = vpop.permute.xlu0 %1976  ;;  %3996 = vmatpush3.bf16.msra.mxu0 %v4156_v28  ;;  %4051 = vmatpush3.bf16.msra.mxu1 %v4156_v28  ;;  %v2490_v28 = vld [vmem:[%s4349_s10 + $0xfe] sm:$0xff] }
 0x289   : > { %2101 = vst.msk [vmem:[#allocation2 + $0x50] sm:$0xff] %vm2090_vm15, %v1979_v39  ;;  %2100 = vst.msk [vmem:[#allocation2 + $0x48] sm:$0xff] %vm2090_vm15, %v1977_v42  ;;  %v4157_v42 = vld [vmem:[%s6286_s2] sm:$0xff]  }
 0x28a   : > { %2292 = vrot.lane.b32.xlu1 %v2185_v45, %s4256_s8  ;;  %2290 = vrot.lane.b32.xlu0 %v2184_v38, %s4256_s8  ;;  %v2436_v45 = vld [vmem:[%s4545_s17 + $0x20] sm:$0x1f] }
 0x28b   : > { %3997 = vmatprep.subr.bf16.mxu0 %v4157_v42  ;;  %4049 = vmatprep.subr.bf16.mxu1 %v4157_v42 }
 0x28c   : > { %v1983_v51 = vpop.permute.xlu1 %1982  ;;  %v1981_v58 = vpop.permute.xlu0 %1980  ;;  %3998 = vmatpush3.bf16.msra.mxu0 %v4157_v42  ;;  %4052 = vmatpush3.bf16.msra.mxu1 %v4157_v42 }
 0x28d   : > { %2103 = vst.msk [vmem:[#allocation2 + $0x60] sm:$0xff] %vm2090_vm15, %v1983_v51  ;;  %2102 = vst.msk [vmem:[#allocation2 + $0x58] sm:$0xff] %vm2090_vm15, %v1981_v58 }
 0x28e   : > { %2296 = vrot.lane.b32.xlu1 %v2187_v43, %s4256_s8  ;;  %2294 = vrot.lane.b32.xlu0 %v2186_v50, %s4256_s8  ;;  %v2465_v43 = vld [vmem:[%s4349_s10 + $0x36] sm:$0xff]  ;;  %v2464_v50 = vld [vmem:[%s4349_s10 + $0x2e] sm:$0xff] }
 0x290   : > { %v1987_v3 = vpop.permute.xlu1 %1986  ;;  %v1985_v18 = vpop.permute.xlu0 %1984 }
 0x291   : > { %2105 = vst.msk [vmem:[#allocation2 + $0x70] sm:$0xff] %vm2090_vm15, %v1987_v3  ;;  %2104 = vst.msk [vmem:[#allocation2 + $0x68] sm:$0xff] %vm2090_vm15, %v1985_v18 }
 0x292   : > { %2300 = vrot.lane.b32.xlu1 %v2189_v59, %s4256_s8  ;;  %2298 = vrot.lane.b32.xlu0 %v2188_v2, %s4256_s8  ;;  %v2467_v59 = vld [vmem:[%s4349_s10 + $0x46] sm:$0xff]  ;;  %v2466_v2 = vld [vmem:[%s4349_s10 + $0x3e] sm:$0xff] }
 0x294   : > { %v1991_v44 = vpop.permute.xlu1 %1990  ;;  %v1989_v52 = vpop.permute.xlu0 %1988 }
 0x295   : > { %2107 = vst.msk [vmem:[#allocation2 + $0x80] sm:$0xff] %vm2090_vm15, %v1991_v44  ;;  %2106 = vst.msk [vmem:[#allocation2 + $0x78] sm:$0xff] %vm2090_vm15, %v1989_v52 }
 0x296   : > { %2304 = vrot.lane.b32.xlu1 %v2191_v19, %s4256_s8  ;;  %2302 = vrot.lane.b32.xlu0 %v2190_v35, %s4256_s8  ;;  %v2469_v19 = vld [vmem:[%s4349_s10 + $0x56] sm:$0xff]  ;;  %v2468_v35 = vld [vmem:[%s4349_s10 + $0x4e] sm:$0xff] }
 0x298   : > { %v1995_v8 = vpop.permute.xlu1 %1994  ;;  %v1993_v17 = vpop.permute.xlu0 %1992 }
 0x299   : > { %2109 = vst.msk [vmem:[#allocation2 + $0x90] sm:$0xff] %vm2090_vm15, %v1995_v8  ;;  %2108 = vst.msk [vmem:[#allocation2 + $0x88] sm:$0xff] %vm2090_vm15, %v1993_v17 }
 0x29a   : > { %2308 = vrot.lane.b32.xlu1 %v2193_v0, %s4256_s8  ;;  %2306 = vrot.lane.b32.xlu0 %v2192_v1, %s4256_s8  ;;  %v2471_v0 = vld [vmem:[%s4349_s10 + $0x66] sm:$0xff]  ;;  %v2470_v1 = vld [vmem:[%s4349_s10 + $0x5e] sm:$0xff] }
 0x29c   : > { %v1999_v33 = vpop.permute.xlu1 %1998  ;;  %v1997_v37 = vpop.permute.xlu0 %1996 }
 0x29d   : > { %2111 = vst.msk [vmem:[#allocation2 + $0xa0] sm:$0xff] %vm2090_vm15, %v1999_v33  ;;  %2110 = vst.msk [vmem:[#allocation2 + $0x98] sm:$0xff] %vm2090_vm15, %v1997_v37 }
 0x29e   : > { %2312 = vrot.lane.b32.xlu1 %v2195_v24, %s4256_s8  ;;  %2310 = vrot.lane.b32.xlu0 %v2194_v25, %s4256_s8  ;;  %v2473_v24 = vld [vmem:[%s4349_s10 + $0x76] sm:$0xff]  ;;  %v2472_v25 = vld [vmem:[%s4349_s10 + $0x6e] sm:$0xff] }
 0x2a0   : > { %v2003_v40 = vpop.permute.xlu1 %2002  ;;  %v2001_v47 = vpop.permute.xlu0 %2000 }
 0x2a1   : > { %2113 = vst.msk [vmem:[#allocation2 + $0xb0] sm:$0xff] %vm2090_vm15, %v2003_v40  ;;  %2112 = vst.msk [vmem:[#allocation2 + $0xa8] sm:$0xff] %vm2090_vm15, %v2001_v47 }
 0x2a2   : > { %2316 = vrot.lane.b32.xlu1 %v2197_v36, %s4256_s8  ;;  %2314 = vrot.lane.b32.xlu0 %v2196_v41, %s4256_s8  ;;  %v2475_v36 = vld [vmem:[%s4349_s10 + $0x86] sm:$0xff]  ;;  %v2474_v41 = vld [vmem:[%s4349_s10 + $0x7e] sm:$0xff] }
 0x2a4   : > { %v2007_v54 = vpop.permute.xlu1 %2006  ;;  %v2005_v63 = vpop.permute.xlu0 %2004 }
 0x2a5   : > { %2115 = vst.msk [vmem:[#allocation2 + $0xc0] sm:$0xff] %vm2090_vm15, %v2007_v54  ;;  %2114 = vst.msk [vmem:[#allocation2 + $0xb8] sm:$0xff] %vm2090_vm15, %v2005_v63 }
 0x2a6   : > { %2320 = vrot.lane.b32.xlu1 %v2199_v46, %s4256_s8  ;;  %2318 = vrot.lane.b32.xlu0 %v2198_v55, %s4256_s8  ;;  %v2477_v46 = vld [vmem:[%s4349_s10 + $0x96] sm:$0xff]  ;;  %v2476_v55 = vld [vmem:[%s4349_s10 + $0x8e] sm:$0xff] }
 0x2a8   : > { %v2011_v10 = vpop.permute.xlu1 %2010  ;;  %v2009_v27 = vpop.permute.xlu0 %2008 }
 0x2a9   : > { %2117 = vst.msk [vmem:[#allocation2 + $0xd0] sm:$0xff] %vm2090_vm15, %v2011_v10  ;;  %2116 = vst.msk [vmem:[#allocation2 + $0xc8] sm:$0xff] %vm2090_vm15, %v2009_v27 }
 0x2aa   : > { %2324 = vrot.lane.b32.xlu1 %v2201_v62, %s4256_s8  ;;  %2322 = vrot.lane.b32.xlu0 %v2200_v11, %s4256_s8  ;;  %v2479_v62 = vld [vmem:[%s4349_s10 + $0xa6] sm:$0xff]  ;;  %v2478_v11 = vld [vmem:[%s4349_s10 + $0x9e] sm:$0xff] }
 0x2ac   : > { %v2015_v6 = vpop.permute.xlu1 %2014  ;;  %v2013_v26 = vpop.permute.xlu0 %2012 }
 0x2ad   : > { %2119 = vst.msk [vmem:[#allocation2 + $0xe0] sm:$0xff] %vm2090_vm15, %v2015_v6  ;;  %2118 = vst.msk [vmem:[#allocation2 + $0xd8] sm:$0xff] %vm2090_vm15, %v2013_v26 }
 0x2ae   : > { %2328 = vrot.lane.b32.xlu1 %v2203_v56, %s4256_s8  ;;  %2326 = vrot.lane.b32.xlu0 %v2202_v57, %s4256_s8  ;;  %v2481_v56 = vld [vmem:[%s4349_s10 + $0xb6] sm:$0xff]  ;;  %v2480_v57 = vld [vmem:[%s4349_s10 + $0xae] sm:$0xff] }
 0x2b0   : > { %v2019_v15 = vpop.permute.xlu1 %2018  ;;  %v2017_v22 = vpop.permute.xlu0 %2016 }
 0x2b1   : > { %2121 = vst.msk [vmem:[#allocation2 + $0xf0] sm:$0xff] %vm2090_vm15, %v2019_v15  ;;  %2120 = vst.msk [vmem:[#allocation2 + $0xe8] sm:$0xff] %vm2090_vm15, %v2017_v22  ;;  %v4258_v15 = vmov 0  }
 0x2b2   : > { %2332 = vrot.lane.b32.xlu1 %v2205_v7, %s4256_s8  ;;  %2330 = vrot.lane.b32.xlu0 %v2204_v14, %s4256_s8  ;;  %v2483_v7 = vld [vmem:[%s4349_s10 + $0xc6] sm:$0xff]  ;;  %v2482_v14 = vld [vmem:[%s4349_s10 + $0xbe] sm:$0xff] }
 0x2b3   : > { %4112 = vset.pattern.permute.xlu1 %v4258_v15  ;;  %4111 = vset.pattern.permute.xlu0 %v4258_v15  ;;  %v3159_v15 = vld [vmem:[%s5854_s6 + $0x28] sm:$0xff] }
 0x2b4   : > { %v2023_v31 = vpop.permute.xlu1 %2022  ;;  %v2021_v49 = vpop.permute.xlu0 %2020 }
 0x2b5   : > { %2123 = vst.msk [vmem:[#allocation2 + $0x100] sm:$0xff] %vm2090_vm15, %v2023_v31  ;;  %2122 = vst.msk [vmem:[#allocation2 + $0xf8] sm:$0xff] %vm2090_vm15, %v2021_v49  ;;  %v2484_v31 = vld [vmem:[%s4349_s10 + $0xce] sm:$0xff] }
 0x2b6   : > { %2336 = vrot.lane.b32.xlu1 %v2207_v23, %s4256_s8  ;;  %2334 = vrot.lane.b32.xlu0 %v2206_v30, %s4256_s8  ;;  %v2485_v30 = vld [vmem:[%s4349_s10 + $0xd6] sm:$0xff] }
 0x2b8   : > { %v2027_v60 = vpop.permute.xlu1 %2026  ;;  %v2025_v5 = vpop.permute.xlu0 %2024 }
 0x2b9   : > { %2125 = vst.msk [vmem:[#allocation2 + $0x110] sm:$0xff] %vm2090_vm15, %v2027_v60  ;;  %2124 = vst.msk [vmem:[#allocation2 + $0x108] sm:$0xff] %vm2090_vm15, %v2025_v5  ;;  %v2486_v60 = vld [vmem:[%s4349_s10 + $0xde] sm:$0xff] }
 0x2ba   : > { %2340 = vrot.lane.b32.xlu1 %v2209_v48, %s4256_s8  ;;  %2338 = vrot.lane.b32.xlu0 %v2208_v61, %s4256_s8  ;;  %v2487_v61 = vld [vmem:[%s4349_s10 + $0xe6] sm:$0xff] }
 0x2bc   : > { %v2031_v4 = vpop.permute.xlu1 %2030  ;;  %v2029_v13 = vpop.permute.xlu0 %2028 }
 0x2bd   : > { %2127 = vst.msk [vmem:[#allocation2 + $0x120] sm:$0xff] %vm2090_vm15, %v2031_v4  ;;  %2126 = vst.msk [vmem:[#allocation2 + $0x118] sm:$0xff] %vm2090_vm15, %v2029_v13  ;;  %v2489_v13 = vld [vmem:[%s4349_s10 + $0xf6] sm:$0xff] }
 0x2be   : > { %2444 = vrot.lane.b32.xlu1 %v5534_v16, %s4256_s8  ;;  %2442 = vrot.lane.b32.xlu0 %v5522_v53, %s4256_s8 }
 0x2c0   : > { %v2035_v20 = vpop.permute.xlu1 %2034  ;;  %v2033_v29 = vpop.permute.xlu0 %2032 }
 0x2c1   : > { %2129 = vst.msk [vmem:[#allocation2 + $0x130] sm:$0xff] %vm2090_vm15, %v2035_v20  ;;  %2128 = vst.msk [vmem:[#allocation2 + $0x128] sm:$0xff] %vm2090_vm15, %v2033_v29  ;;  %v2491_v29 = vld [vmem:[%s4349_s10 + $0x106] sm:$0xff] }
 0x2c2   : > { %2448 = vrot.lane.b32.xlu1 %v5544_v32, %s4256_s8  ;;  %2446 = vrot.lane.b32.xlu0 %v5531_v9, %s4256_s8 }
 0x2c4   : > { %v2039_v38 = vpop.permute.xlu1 %2038  ;;  %v2037_v39 = vpop.permute.xlu0 %2036 }
 0x2c5   : > { %2131 = vst.msk [vmem:[#allocation2 + $0x140] sm:$0xff] %vm2090_vm15, %v2039_v38  ;;  %2130 = vst.msk [vmem:[#allocation2 + $0x138] sm:$0xff] %vm2090_vm15, %v2037_v39  ;;  %v2493_v38 = vld [vmem:[%s4349_s10 + $0x116] sm:$0xff]  ;;  %v2492_v39 = vld [vmem:[%s4349_s10 + $0x10e] sm:$0xff] }
 0x2c6   : > { %2551 = vrot.lane.b32.xlu1 %v2463_v34, %s4257_s16  ;;  %2450 = vrot.lane.b32.xlu0 %v2436_v45, %s4256_s8 }
 0x2c8   : > { %v2043_v51 = vpop.permute.xlu1 %2042  ;;  %v2041_v58 = vpop.permute.xlu0 %2040 }
 0x2c9   : > { %2133 = vst.msk [vmem:[#allocation2 + $0x150] sm:$0xff] %vm2090_vm15, %v2043_v51  ;;  %2132 = vst.msk [vmem:[#allocation2 + $0x148] sm:$0xff] %vm2090_vm15, %v2041_v58  ;;  %v2494_v51 = vld [vmem:[%s4349_s10 + $0x11e] sm:$0xff] }
 0x2ca   : > { %2555 = vrot.lane.b32.xlu1 %v2465_v43, %s4257_s16  ;;  %2553 = vrot.lane.b32.xlu0 %v2464_v50, %s4257_s16  ;;  %v2495_v50 = vld [vmem:[%s4349_s10 + $0x126] sm:$0xff] }
 0x2cc   : > { %v2147_v3 = vpop.permute.xlu1 %2146  ;;  %v2045_v18 = vpop.permute.xlu0 %2044 }
 0x2cd   : > { %2161 = vst.msk [vmem:[#allocation2 + $0x15c] sm:$0xff] %vm2090_vm15, %v2147_v3  ;;  %v2496_v3 = vld [vmem:[%s4349_s10 + $0x12e] sm:$0xff] }
 0x2ce   : > { %2135 = vst.msk [vmem:[#allocation2 + $0x158] sm:$0xf] %vm2134_vm1, %v2045_v18  ;;  %2559 = vrot.lane.b32.xlu1 %v2467_v59, %s4257_s16  ;;  %2557 = vrot.lane.b32.xlu0 %v2466_v2, %s4257_s16  ;;  %v2497_v2 = vld [vmem:[%s4349_s10 + $0x136] sm:$0xff] }
 0x2d0   : > { %v2151_v44 = vpop.permute.xlu1 %2150  ;;  %v2149_v52 = vpop.permute.xlu0 %2148 }
 0x2d1   : > { %2163 = vst.msk [vmem:[#allocation2 + $0x16c] sm:$0xff] %vm2090_vm15, %v2151_v44  ;;  %2162 = vst.msk [vmem:[#allocation2 + $0x164] sm:$0xff] %vm2090_vm15, %v2149_v52  ;;  %v2498_v44 = vld [vmem:[%s4349_s10 + $0x13e] sm:$0xff] }
 0x2d2   : > { %2563 = vrot.lane.b32.xlu1 %v2469_v19, %s4257_s16  ;;  %2561 = vrot.lane.b32.xlu0 %v2468_v35, %s4257_s16  ;;  %v2499_v35 = vld [vmem:[%s4349_s10 + $0x146] sm:$0xff] }
 0x2d4   : > { %v2155_v8 = vpop.permute.xlu1 %2154  ;;  %v2153_v17 = vpop.permute.xlu0 %2152 }
 0x2d5   : > { %2165 = vst.msk [vmem:[#allocation2 + $0x17c] sm:$0xf] %vm2134_vm1, %v2155_v8  ;;  %v2500_v8 = vld [vmem:[%s4349_s10 + $0x14e] sm:$0xff] }
 0x2d6   : > { %2164 = vst.msk [vmem:[#allocation2 + $0x174] sm:$0xff] %vm2090_vm15, %v2153_v17  ;;  %2567 = vrot.lane.b32.xlu1 %v2471_v0, %s4257_s16  ;;  %2565 = vrot.lane.b32.xlu0 %v2470_v1, %s4257_s16  ;;  %v2501_v1 = vld [vmem:[%s4349_s10 + $0x156] sm:$0xff] }
 0x2d8   : > { %v2257_v33 = vpop.permute.xlu1 %2256  ;;  %v2255_v37 = vpop.permute.xlu0 %2254 }
 0x2d9   : > { %2388 = vst.msk [vmem:[#allocation2 + $0x8] sm:$0xff] %vm2386_vm2, %v2257_v33  ;;  %2387 = vst.msk [vmem:[#allocation2] sm:$0xff] %vm2386_vm2, %v2255_v37  ;;  %v2502_v33 = vld [vmem:[%s4349_s10 + $0x15e] sm:$0xff] }
 0x2da   : > { %2571 = vrot.lane.b32.xlu1 %v2473_v24, %s4257_s16  ;;  %2569 = vrot.lane.b32.xlu0 %v2472_v25, %s4257_s16  ;;  %v2503_v25 = vld [vmem:[%s4349_s10 + $0x166] sm:$0xff] }
 0x2dc   : > { %v2261_v40 = vpop.permute.xlu1 %2260  ;;  %v2259_v47 = vpop.permute.xlu0 %2258 }
 0x2dd   : > { %2390 = vst.msk [vmem:[#allocation2 + $0x18] sm:$0xff] %vm2386_vm2, %v2261_v40  ;;  %2389 = vst.msk [vmem:[#allocation2 + $0x10] sm:$0xff] %vm2386_vm2, %v2259_v47  ;;  %v2504_v40 = vld [vmem:[%s4349_s10 + $0x16e] sm:$0xff] }
 0x2de   : > { %2575 = vrot.lane.b32.xlu1 %v2475_v36, %s4257_s16  ;;  %2573 = vrot.lane.b32.xlu0 %v2474_v41, %s4257_s16  ;;  %v2505_v41 = vld [vmem:[%s4349_s10 + $0x176] sm:$0xff] }
 0x2e0   : > { %v2265_v54 = vpop.permute.xlu1 %2264  ;;  %v2263_v63 = vpop.permute.xlu0 %2262 }
 0x2e1   : > { %2392 = vst.msk [vmem:[#allocation2 + $0x28] sm:$0xff] %vm2386_vm2, %v2265_v54  ;;  %2391 = vst.msk [vmem:[#allocation2 + $0x20] sm:$0xff] %vm2386_vm2, %v2263_v63 }
 0x2e2   : > { %2579 = vrot.lane.b32.xlu1 %v2477_v46, %s4257_s16  ;;  %2577 = vrot.lane.b32.xlu0 %v2476_v55, %s4257_s16  ;;  %v2506_v55 = vld [vmem:[%s4349_s10 + $0x17e] sm:$0x3] }
 0x2e4   : > { %v2269_v10 = vpop.permute.xlu1 %2268  ;;  %v2267_v27 = vpop.permute.xlu0 %2266 }
 0x2e5   : > { %2394 = vst.msk [vmem:[#allocation2 + $0x38] sm:$0xff] %vm2386_vm2, %v2269_v10  ;;  %2393 = vst.msk [vmem:[#allocation2 + $0x30] sm:$0xff] %vm2386_vm2, %v2267_v27  ;;  %v2733_v10 = vld [vmem:[%s4545_s17 + $0x20] sm:$0x3f]  ;;  %s3921_s17 = sshll.u32 %s6198_s30, 1 }
 0x2e6   : > { %2583 = vrot.lane.b32.xlu1 %v2479_v62, %s4257_s16  ;;  %2581 = vrot.lane.b32.xlu0 %v2478_v11, %s4257_s16  ;;  %s266_s8 = scalar_lea.vmem [#allocation5], %s3921_s17 }
 0x2e7   : > { %s3802_s9 = sshll.u32 %s266_s8, 4  ;;  %s6209_s9 = int_to_ptr.vmem [resolvable:$true] %s3802_s9 }
 0x2e8   : > { %v2273_v6 = vpop.permute.xlu1 %2272  ;;  %v2271_v26 = vpop.permute.xlu0 %2270  ;;  %s4158_s15 = scalar_lea.vmem %s6209_s9, 32 }
 0x2e9   : > { %2396 = vst.msk [vmem:[#allocation2 + $0x48] sm:$0xff] %vm2386_vm2, %v2273_v6  ;;  %2395 = vst.msk [vmem:[#allocation2 + $0x40] sm:$0xff] %vm2386_vm2, %v2271_v26  ;;  %v3156_v6 = vld [vmem:[%s5854_s6 + $0x10] sm:$0xff]  ;;  %v3157_v26 = vld [vmem:[%s5854_s6 + $0x18] sm:$0xff]  ;;  %p4159_p13 = scmp.ne.s32.totalorder %s6209_s9, %s4158_s15 }
 0x2ea   : > { %2587 = vrot.lane.b32.xlu1 %v2481_v56, %s4257_s16  ;;  %2585 = vrot.lane.b32.xlu0 %v2480_v57, %s4257_s16 }
 0x2eb   : > { %p4160_p0 = pnand %p4159_p13, %p4331_p5 }
 0x2ec   : > { %v2277_v22 = vpop.permute.xlu1 %2276  ;;  %v2275_v23 = vpop.permute.xlu0 %2274 }
 0x2ed   : > { %2398 = vst.msk [vmem:[#allocation2 + $0x58] sm:$0xff] %vm2386_vm2, %v2277_v22  ;;  %2397 = vst.msk [vmem:[#allocation2 + $0x50] sm:$0xff] %vm2386_vm2, %v2275_v23  ;;  %p4161_p1 = pneg %p4160_p0 }
 0x2ee   : > { %2591 = vrot.lane.b32.xlu1 %v2483_v7, %s4257_s16  ;;  %2589 = vrot.lane.b32.xlu0 %v2482_v14, %s4257_s16 }
 0x2f0   : > { %v2281_v49 = vpop.permute.xlu1 %2280  ;;  %v2279_v48 = vpop.permute.xlu0 %2278 }
 0x2f1   : > { %2400 = vst.msk [vmem:[#allocation2 + $0x68] sm:$0xff] %vm2386_vm2, %v2281_v49  ;;  %2399 = vst.msk [vmem:[#allocation2 + $0x60] sm:$0xff] %vm2386_vm2, %v2279_v48 }
 0x2f2   : > { %2595 = vrot.lane.b32.xlu1 %v2485_v30, %s4257_s16  ;;  %2593 = vrot.lane.b32.xlu0 %v2484_v31, %s4257_s16  ;;  %v3160_v30 = vld [vmem:[%s5854_s6 + $0x30] sm:$0xff]  ;;  %v3161_v31 = vld [vmem:[%s5854_s6 + $0x38] sm:$0xff] }
 0x2f4   : > { %v2285_v5 = vpop.permute.xlu1 %2284  ;;  %v2283_v4 = vpop.permute.xlu0 %2282 }
 0x2f5   : > { %2402 = vst.msk [vmem:[#allocation2 + $0x78] sm:$0xff] %vm2386_vm2, %v2285_v5  ;;  %2401 = vst.msk [vmem:[#allocation2 + $0x70] sm:$0xff] %vm2386_vm2, %v2283_v4 }
 0x2f6   : > { %2599 = vrot.lane.b32.xlu1 %v2487_v61, %s4257_s16  ;;  %2597 = vrot.lane.b32.xlu0 %v2486_v60, %s4257_s16  ;;  %v3162_v61 = vld [vmem:[%s5854_s6 + $0x40] sm:$0xff]  ;;  %v3163_v60 = vld [vmem:[%s5854_s6 + $0x48] sm:$0xff] }
 0x2f8   : > { %v2289_v21 = vpop.permute.xlu1 %2288  ;;  %v2287_v20 = vpop.permute.xlu0 %2286 }
 0x2f9   : > { %2404 = vst.msk [vmem:[#allocation2 + $0x88] sm:$0xff] %vm2386_vm2, %v2289_v21  ;;  %2403 = vst.msk [vmem:[#allocation2 + $0x80] sm:$0xff] %vm2386_vm2, %v2287_v20 }
 0x2fa   : > { %2603 = vrot.lane.b32.xlu1 %v2489_v13, %s4257_s16  ;;  %2601 = vrot.lane.b32.xlu0 %v2488_v12, %s4257_s16  ;;  %v3164_v13 = vld [vmem:[%s5854_s6 + $0x50] sm:$0xff]  ;;  %v3165_v12 = vld [vmem:[%s5854_s6 + $0x58] sm:$0xff] }
 0x2fc   : > { %v2293_v34 = vpop.permute.xlu1 %2292  ;;  %v2291_v45 = vpop.permute.xlu0 %2290 }
 0x2fd   : > { %2406 = vst.msk [vmem:[#allocation2 + $0x98] sm:$0xff] %vm2386_vm2, %v2293_v34  ;;  %2405 = vst.msk [vmem:[#allocation2 + $0x90] sm:$0xff] %vm2386_vm2, %v2291_v45 }
 0x2fe   : > { %2607 = vrot.lane.b32.xlu1 %v2491_v29, %s4257_s16  ;;  %2605 = vrot.lane.b32.xlu0 %v2490_v28, %s4257_s16  ;;  %v3166_v29 = vld [vmem:[%s5854_s6 + $0x60] sm:$0xff]  ;;  %v3167_v28 = vld [vmem:[%s5854_s6 + $0x68] sm:$0xff] }
 0x300   : > { %v2297_v42 = vpop.permute.xlu1 %2296  ;;  %v2295_v43 = vpop.permute.xlu0 %2294 }
 0x301   : > { %2408 = vst.msk [vmem:[#allocation2 + $0xa8] sm:$0xff] %vm2386_vm2, %v2297_v42  ;;  %2407 = vst.msk [vmem:[#allocation2 + $0xa0] sm:$0xff] %vm2386_vm2, %v2295_v43  ;;  %v3169_v42 = vld [vmem:[%s5854_s6 + $0x78] sm:$0xff] }
 0x302   : > { %2611 = vrot.lane.b32.xlu1 %v2493_v38, %s4257_s16  ;;  %2609 = vrot.lane.b32.xlu0 %v2492_v39, %s4257_s16  ;;  %v3168_v39 = vld [vmem:[%s5854_s6 + $0x70] sm:$0xff] }
 0x304   : > { %v2301_v58 = vpop.permute.xlu1 %2300  ;;  %v2299_v59 = vpop.permute.xlu0 %2298 }
 0x305   : > { %2410 = vst.msk [vmem:[#allocation2 + $0xb8] sm:$0xff] %vm2386_vm2, %v2301_v58  ;;  %2409 = vst.msk [vmem:[#allocation2 + $0xb0] sm:$0xff] %vm2386_vm2, %v2299_v59 }
 0x306   : > { %2615 = vrot.lane.b32.xlu1 %v2495_v50, %s4257_s16  ;;  %2613 = vrot.lane.b32.xlu0 %v2494_v51, %s4257_s16 }
 0x308   : > { %v2305_v18 = vpop.permute.xlu1 %2304  ;;  %v2303_v19 = vpop.permute.xlu0 %2302 }
 0x309   : > { %2412 = vst.msk [vmem:[#allocation2 + $0xc8] sm:$0xff] %vm2386_vm2, %v2305_v18  ;;  %2411 = vst.msk [vmem:[#allocation2 + $0xc0] sm:$0xff] %vm2386_vm2, %v2303_v19 }
 0x30a   : > { %2619 = vrot.lane.b32.xlu1 %v2497_v2, %s4257_s16  ;;  %2617 = vrot.lane.b32.xlu0 %v2496_v3, %s4257_s16  ;;  %v3170_v2 = vld [vmem:[%s5854_s6 + $0x80] sm:$0xff]  ;;  %v3171_v3 = vld [vmem:[%s5854_s6 + $0x88] sm:$0xff] }
 0x30c   : > { %v2309_v52 = vpop.permute.xlu1 %2308  ;;  %v2307_v0 = vpop.permute.xlu0 %2306 }
 0x30d   : > { %2414 = vst.msk [vmem:[#allocation2 + $0xd8] sm:$0xff] %vm2386_vm2, %v2309_v52  ;;  %2413 = vst.msk [vmem:[#allocation2 + $0xd0] sm:$0xff] %vm2386_vm2, %v2307_v0  ;;  %v3172_v0 = vld [vmem:[%s5854_s6 + $0x90] sm:$0xff] }
 0x30e   : > { %2623 = vrot.lane.b32.xlu1 %v2499_v35, %s4257_s16  ;;  %2621 = vrot.lane.b32.xlu0 %v2498_v44, %s4257_s16 }
 0x310   : > { %v2313_v17 = vpop.permute.xlu1 %2312  ;;  %v2311_v24 = vpop.permute.xlu0 %2310 }
 0x311   : > { %2416 = vst.msk [vmem:[#allocation2 + $0xe8] sm:$0xff] %vm2386_vm2, %v2313_v17  ;;  %2415 = vst.msk [vmem:[#allocation2 + $0xe0] sm:$0xff] %vm2386_vm2, %v2311_v24 }
 0x312   : > { %2627 = vrot.lane.b32.xlu1 %v2501_v1, %s4257_s16  ;;  %2625 = vrot.lane.b32.xlu0 %v2500_v8, %s4257_s16  ;;  %v3173_v1 = vld [vmem:[%s5854_s6 + $0x98] sm:$0xff] }
 0x314   : > { %v2317_v37 = vpop.permute.xlu1 %2316  ;;  %v2315_v36 = vpop.permute.xlu0 %2314 }
 0x315   : > { %2418 = vst.msk [vmem:[#allocation2 + $0xf8] sm:$0xff] %vm2386_vm2, %v2317_v37  ;;  %2417 = vst.msk [vmem:[#allocation2 + $0xf0] sm:$0xff] %vm2386_vm2, %v2315_v36  ;;  %v3174_v37 = vld [vmem:[%s5854_s6 + $0xa0] sm:$0xff]  ;;  %v3175_v36 = vld [vmem:[%s5854_s6 + $0xa8] sm:$0xff] }
 0x316   : > { %2631 = vrot.lane.b32.xlu1 %v2503_v25, %s4257_s16  ;;  %2629 = vrot.lane.b32.xlu0 %v2502_v33, %s4257_s16 }
 0x318   : > { %v2321_v47 = vpop.permute.xlu1 %2320  ;;  %v2319_v46 = vpop.permute.xlu0 %2318 }
 0x319   : > { %2420 = vst.msk [vmem:[#allocation2 + $0x108] sm:$0xff] %vm2386_vm2, %v2321_v47  ;;  %2419 = vst.msk [vmem:[#allocation2 + $0x100] sm:$0xff] %vm2386_vm2, %v2319_v46 }
 0x31a   : > { %2635 = vrot.lane.b32.xlu1 %v2505_v41, %s4257_s16  ;;  %2633 = vrot.lane.b32.xlu0 %v2504_v40, %s4257_s16 }
 0x31c   : > { %v2325_v54 = vpop.permute.xlu1 %2324  ;;  %v2323_v63 = vpop.permute.xlu0 %2322 }
 0x31d   : > { %2422 = vst.msk [vmem:[#allocation2 + $0x118] sm:$0xff] %vm2386_vm2, %v2325_v54  ;;  %2421 = vst.msk [vmem:[#allocation2 + $0x110] sm:$0xff] %vm2386_vm2, %v2323_v63  ;;  %v3176_v54 = vld [vmem:[%s5854_s6 + $0xb0] sm:$0xff]  ;;  %v3177_v63 = vld [vmem:[%s5854_s6 + $0xb8] sm:$0xff] }
 0x31e   : > { %2739 = vrot.lane.b32.xlu1 %v5522_v53, %s4257_s16  ;;  %2637 = vrot.lane.b32.xlu0 %v2506_v55, %s4257_s16  ;;  %v3155_v53 = vld [vmem:[%s5854_s6 + $0x8] sm:$0xff] }
 0x320   : > { %v2329_v62 = vpop.permute.xlu1 %2328  ;;  %v2327_v11 = vpop.permute.xlu0 %2326 }
 0x321   : > { %2424 = vst.msk [vmem:[#allocation2 + $0x128] sm:$0xff] %vm2386_vm2, %v2329_v62  ;;  %2423 = vst.msk [vmem:[#allocation2 + $0x120] sm:$0xff] %vm2386_vm2, %v2327_v11 }
 0x322   : > { %2743 = vrot.lane.b32.xlu1 %v5531_v9, %s4257_s16  ;;  %2741 = vrot.lane.b32.xlu0 %v5534_v16, %s4257_s16  ;;  %v3154_v9 = vld [vmem:[%s5854_s6] sm:$0xff] }
 0x324   : > { %v2333_v27 = vpop.permute.xlu1 %2332  ;;  %v2331_v56 = vpop.permute.xlu0 %2330 }
 0x325   : > { %2426 = vst.msk [vmem:[#allocation2 + $0x138] sm:$0xff] %vm2386_vm2, %v2333_v27  ;;  %2425 = vst.msk [vmem:[#allocation2 + $0x130] sm:$0xff] %vm2386_vm2, %v2331_v56 }
 0x326   : > { %2747 = vrot.lane.b32.xlu1 %v2733_v10, %s4257_s16  ;;  %2745 = vrot.lane.b32.xlu0 %v5544_v32, %s4257_s16  ;;  %v3158_v32 = vld [vmem:[%s5854_s6 + $0x20] sm:$0xff]  ;;  %s4259_s16 = smov [#allocation5]  }
 0x327   : > { %s4162_s23 = sshll.u32 %s4259_s16, 4  ;;  %s4163_s23 = int_to_ptr.vmem [resolvable:$false] %s4162_s23 }
 0x328   : > { %v2337_v16 = vpop.permute.xlu1 %2336  ;;  %v2335_v57 = vpop.permute.xlu0 %2334  ;;  %s4164_s10 = scalar_lea.vmem %s4163_s23, 64  ;;  %p4165_p2 = scmp.lt.s32.totalorder %s6209_s9, %s4163_s23 }
 0x329   : > { %2428 = vst.msk [vmem:[#allocation2 + $0x148] sm:$0xff] %vm2386_vm2, %v2337_v16  ;;  %2427 = vst.msk [vmem:[#allocation2 + $0x140] sm:$0xff] %vm2386_vm2, %v2335_v57  ;;  %p4166_p3 = scmp.lt.s32.totalorder %s4164_s10, %s4158_s15 }
 0x32a   : > { %3209 = vperm.xlu1 %4112, %v3155_v53   ;;  %3204 = vperm.xlu0 %4111, %v3154_v9   ;;  %v3178_v53 = vld [vmem:[%s5854_s6 + $0xc0] sm:$0xff]  ;;  %v3179_v9 = vld [vmem:[%s5854_s6 + $0xc8] sm:$0xff] }
 0x32b   : > { %p4167_p4 = por %p4166_p3, %p4165_p2 }
 0x32c   : > { %v2341_v7 = vpop.permute.xlu1 %2340  ;;  %v2339_v14 = vpop.permute.xlu0 %2338 }
 0x32d   : > { %2431 = vst.msk [vmem:[#allocation2 + $0x158] sm:$0x7] %vm2430_vm3, %v2341_v7  ;;  %p4168_p7 = pnand %p4167_p4, %p4161_p1 }
 0x32e   : > { %2429 = vst.msk [vmem:[#allocation2 + $0x150] sm:$0xff] %vm2386_vm2, %v2339_v14  ;;  %3214 = vperm.xlu1 %4112, %v3156_v6   ;;  %3219 = vperm.xlu0 %4111, %v3157_v26   ;;  %v3180_v14 = vld [vmem:[%s5854_s6 + $0xd0] sm:$0xff] }
 0x330   : > { %v2445_v22 = vpop.permute.xlu1 %2444  ;;  %v2443_v23 = vpop.permute.xlu0 %2442 }
 0x331   : > { %2458 = vst.msk [vmem:[#allocation2 + $0x163] sm:$0xff] %vm2386_vm2, %v2445_v22  ;;  %2457 = vst.msk [vmem:[#allocation2 + $0x15b] sm:$0xff] %vm2386_vm2, %v2443_v23 }
 0x332   : > { %3224 = vperm.xlu1 %4112, %v3158_v32   ;;  %3229 = vperm.xlu0 %4111, %v3159_v15   ;;  %v3181_v32 = vld [vmem:[%s5854_s6 + $0xd8] sm:$0xff] }
 0x334   : > { %v2449_v49 = vpop.permute.xlu1 %2448  ;;  %v2447_v48 = vpop.permute.xlu0 %2446 }
 0x335   : > { %2460 = vst.msk [vmem:[#allocation2 + $0x173] sm:$0xff] %vm2386_vm2, %v2449_v49  ;;  %2459 = vst.msk [vmem:[#allocation2 + $0x16b] sm:$0xff] %vm2386_vm2, %v2447_v48  ;;  %v3182_v49 = vld [vmem:[%s5854_s6 + $0xe0] sm:$0xff]  ;;  %v3183_v48 = vld [vmem:[%s5854_s6 + $0xe8] sm:$0xff] }
 0x336   : > { %3234 = vperm.xlu1 %4112, %v3160_v30   ;;  %3239 = vperm.xlu0 %4111, %v3161_v31  }
 0x338   : > { %v2552_v5 = vpop.permute.xlu1 %2551  ;;  %v2451_v4 = vpop.permute.xlu0 %2450 }
 0x339   : > { %2684 = vst.msk [vmem:[#allocation2] sm:$0xff] %vm2683_vm4, %v2552_v5 }
 0x33a   : > { %2462 = vst.msk [vmem:[#allocation2 + $0x17b] sm:$0x1f] %vm2461_vm5, %v2451_v4  ;;  %3244 = vperm.xlu1 %4112, %v3162_v61   ;;  %3249 = vperm.xlu0 %4111, %v3163_v60  }
 0x33c   : > { %v2556_v21 = vpop.permute.xlu1 %2555  ;;  %v2554_v20 = vpop.permute.xlu0 %2553 }
 0x33d   : > { %2686 = vst.msk [vmem:[#allocation2 + $0x10] sm:$0xff] %vm2683_vm4, %v2556_v21  ;;  %2685 = vst.msk [vmem:[#allocation2 + $0x8] sm:$0xff] %vm2683_vm4, %v2554_v20  ;;  %v3185_v21 = vld [vmem:[%s5854_s6 + $0xf8] sm:$0xff] }
 0x33e   : > { %3254 = vperm.xlu1 %4112, %v3164_v13   ;;  %3259 = vperm.xlu0 %4111, %v3165_v12   ;;  %v3184_v12 = vld [vmem:[%s5854_s6 + $0xf0] sm:$0xff] }
 0x340   : > { %v2560_v34 = vpop.permute.xlu1 %2559  ;;  %v2558_v45 = vpop.permute.xlu0 %2557  ;;  %v2760_v38 = vld [vmem:[#allocation2] sm:$0xff] }
 0x341   : > { %2688 = vst.msk [vmem:[#allocation2 + $0x20] sm:$0xff] %vm2683_vm4, %v2560_v34  ;;  %2687 = vst.msk [vmem:[#allocation2 + $0x18] sm:$0xff] %vm2683_vm4, %v2558_v45 }
 0x342   : > { %3264 = vperm.xlu1 %4112, %v3166_v29   ;;  %3269 = vperm.xlu0 %4111, %v3167_v28  }
 0x344   : > { %v2564_v43 = vpop.permute.xlu1 %2563  ;;  %v2562_v50 = vpop.permute.xlu0 %2561  ;;  %v2761_v51 = vld [vmem:[#allocation2 + $0x8] sm:$0xff]  ;;  %v2762_v59 = vld [vmem:[#allocation2 + $0x10] sm:$0xff] }
 0x345   : > { %2690 = vst.msk [vmem:[#allocation2 + $0x30] sm:$0xff] %vm2683_vm4, %v2564_v43  ;;  %2689 = vst.msk [vmem:[#allocation2 + $0x28] sm:$0xff] %vm2683_vm4, %v2562_v50  ;;  %v2808_v58 = vpack.c.bf16 %v2761_v51, %v2760_v38  ;;  %v3186_v38 = vld [vmem:[%s5854_s6 + $0x100] sm:$0xff] }
 0x346   : > { %3274 = vperm.xlu1 %4112, %v3168_v39   ;;  %3279 = vperm.xlu0 %4111, %v3169_v42   ;;  %v3187_v39 = vld [vmem:[%s5854_s6 + $0x108] sm:$0xff] }
 0x347   : > { %3999 = vmatprep.mubr.msk.bf16.mxu0 %vm2852_vm6, %v2808_v58 }
 0x348   : > { %v2568_v18 = vpop.permute.xlu1 %2567  ;;  %v2566_v19 = vpop.permute.xlu0 %2565  ;;  %v2763_v35 = vld [vmem:[#allocation2 + $0x18] sm:$0xff]  ;;  %v2764_v52 = vld [vmem:[#allocation2 + $0x20] sm:$0xff] }
 0x349   : > { %2692 = vst.msk [vmem:[#allocation2 + $0x40] sm:$0xff] %vm2683_vm4, %v2568_v18  ;;  %2691 = vst.msk [vmem:[#allocation2 + $0x38] sm:$0xff] %vm2683_vm4, %v2566_v19  ;;  %v2809_v44 = vpack.c.bf16 %v2763_v35, %v2762_v59  ;;  %v3188_v59 = vld [vmem:[%s5854_s6 + $0x110] sm:$0xff] }
 0x34a   : > { %3284 = vperm.xlu1 %4112, %v3170_v2   ;;  %3289 = vperm.xlu0 %4111, %v3171_v3   ;;  %v3189_v2 = vld [vmem:[%s5854_s6 + $0x118] sm:$0xff] }
 0x34b   : > { %4000 = vmatmul.mubr.msk.bf16.vlgmr.msra.gmra.mxu0 %vm2852_vm6, %v2809_v44 }
 0x34c   : > { %v2572_v8 = vpop.permute.xlu1 %2571  ;;  %v2570_v17 = vpop.permute.xlu0 %2569  ;;  %v2765_v24 = vld [vmem:[#allocation2 + $0x28] sm:$0xff]  ;;  %v2766_v33 = vld [vmem:[#allocation2 + $0x30] sm:$0xff] }
 0x34d   : > { %2694 = vst.msk [vmem:[#allocation2 + $0x50] sm:$0xff] %vm2683_vm4, %v2572_v8  ;;  %2693 = vst.msk [vmem:[#allocation2 + $0x48] sm:$0xff] %vm2683_vm4, %v2570_v17  ;;  %v2810_v25 = vpack.c.bf16 %v2765_v24, %v2764_v52  ;;  %v3190_v52 = vld [vmem:[%s5854_s6 + $0x120] sm:$0xff] }
 0x34e   : > { %3294 = vperm.xlu1 %4112, %v3172_v0   ;;  %3299 = vperm.xlu0 %4111, %v3173_v1   ;;  %v3191_v0 = vld [vmem:[%s5854_s6 + $0x128] sm:$0xff] }
 0x34f   : > { %4003 = vmatprep.mubr.msk.bf16.mxu0 %vm2852_vm6, %v2810_v25 }
 0x350   : > { %v2576_v41 = vpop.permute.xlu1 %2575  ;;  %v2574_v40 = vpop.permute.xlu0 %2573  ;;  %v2767_v47 = vld [vmem:[#allocation2 + $0x38] sm:$0xff]  ;;  %v2768_v55 = vld [vmem:[#allocation2 + $0x40] sm:$0xff] }
 0x351   : > { %2696 = vst.msk [vmem:[#allocation2 + $0x60] sm:$0xff] %vm2683_vm4, %v2576_v41  ;;  %2695 = vst.msk [vmem:[#allocation2 + $0x58] sm:$0xff] %vm2683_vm4, %v2574_v40  ;;  %v2811_v46 = vpack.c.bf16 %v2767_v47, %v2766_v33  ;;  %v3192_v33 = vld [vmem:[%s5854_s6 + $0x130] sm:$0xff] }
 0x352   : > { %3304 = vperm.xlu1 %4112, %v3174_v37   ;;  %3309 = vperm.xlu0 %4111, %v3175_v36   ;;  %v3193_v37 = vld [vmem:[%s5854_s6 + $0x138] sm:$0xff] }
 0x353   : > { %4004 = vmatmul.mubr.msk.bf16.gmra.mxu0 %vm2852_vm6, %v2811_v46 }
 0x354   : > { %v2580_v62 = vpop.permute.xlu1 %2579  ;;  %v2578_v11 = vpop.permute.xlu0 %2577  ;;  %v2769_v10 = vld [vmem:[#allocation2 + $0x48] sm:$0xff]  ;;  %v2770_v56 = vld [vmem:[#allocation2 + $0x50] sm:$0xff] }
 0x355   : > { %2698 = vst.msk [vmem:[#allocation2 + $0x70] sm:$0xff] %vm2683_vm4, %v2580_v62  ;;  %2697 = vst.msk [vmem:[#allocation2 + $0x68] sm:$0xff] %vm2683_vm4, %v2578_v11  ;;  %v2812_v27 = vpack.c.bf16 %v2769_v10, %v2768_v55  ;;  %v3194_v55 = vld [vmem:[%s5854_s6 + $0x140] sm:$0xff] }
 0x356   : > { %3314 = vperm.xlu1 %4112, %v3176_v54   ;;  %3319 = vperm.xlu0 %4111, %v3177_v63   ;;  %v3195_v54 = vld [vmem:[%s5854_s6 + $0x148] sm:$0xff] }
 0x357   : > { %4007 = vmatprep.mubr.msk.bf16.mxu0 %vm2852_vm6, %v2812_v27 }
 0x358   : > { %v2584_v16 = vpop.permute.xlu1 %2583  ;;  %v2582_v57 = vpop.permute.xlu0 %2581  ;;  %v2771_v6 = vld [vmem:[#allocation2 + $0x58] sm:$0xff]  ;;  %v2772_v7 = vld [vmem:[#allocation2 + $0x60] sm:$0xff] }
 0x359   : > { %2700 = vst.msk [vmem:[#allocation2 + $0x80] sm:$0xff] %vm2683_vm4, %v2584_v16  ;;  %2699 = vst.msk [vmem:[#allocation2 + $0x78] sm:$0xff] %vm2683_vm4, %v2582_v57  ;;  %v2813_v26 = vpack.c.bf16 %v2771_v6, %v2770_v56  ;;  %v3196_v56 = vld [vmem:[%s5854_s6 + $0x150] sm:$0xff] }
 0x35a   : > { %3324 = vperm.xlu1 %4112, %v3178_v53   ;;  %3329 = vperm.xlu0 %4111, %v3179_v9   ;;  %v3197_v53 = vld [vmem:[%s5854_s6 + $0x158] sm:$0xff] }
 0x35b   : > { %4008 = vmatmul.mubr.msk.bf16.gmra.mxu0 %vm2852_vm6, %v2813_v26 }
 0x35c   : > { %v2588_v15 = vpop.permute.xlu1 %2587  ;;  %v2586_v22 = vpop.permute.xlu0 %2585  ;;  %v2773_v23 = vld [vmem:[#allocation2 + $0x68] sm:$0xff]  ;;  %v2774_v31 = vld [vmem:[#allocation2 + $0x70] sm:$0xff] }
 0x35d   : > { %2702 = vst.msk [vmem:[#allocation2 + $0x90] sm:$0xff] %vm2683_vm4, %v2588_v15  ;;  %2701 = vst.msk [vmem:[#allocation2 + $0x88] sm:$0xff] %vm2683_vm4, %v2586_v22  ;;  %v2814_v30 = vpack.c.bf16 %v2773_v23, %v2772_v7  ;;  %v3198_v7 = vld [vmem:[%s5854_s6 + $0x160] sm:$0xff] }
 0x35e   : > { %3334 = vperm.xlu1 %4112, %v3180_v14   ;;  %3339 = vperm.xlu0 %4111, %v3181_v32   ;;  %v3199_v14 = vld [vmem:[%s5854_s6 + $0x168] sm:$0xff] }
 0x35f   : > { %4011 = vmatprep.mubr.msk.bf16.mxu0 %vm2852_vm6, %v2814_v30 }
 0x360   : > { %v2592_v61 = vpop.permute.xlu1 %2591  ;;  %v2590_v60 = vpop.permute.xlu0 %2589  ;;  %v2775_v5 = vld [vmem:[#allocation2 + $0x78] sm:$0xff]  ;;  %v2776_v13 = vld [vmem:[#allocation2 + $0x80] sm:$0xff] }
 0x361   : > { %2704 = vst.msk [vmem:[#allocation2 + $0xa0] sm:$0xff] %vm2683_vm4, %v2592_v61  ;;  %2703 = vst.msk [vmem:[#allocation2 + $0x98] sm:$0xff] %vm2683_vm4, %v2590_v60  ;;  %v2815_v4 = vpack.c.bf16 %v2775_v5, %v2774_v31  ;;  %v3200_v31 = vld [vmem:[%s5854_s6 + $0x170] sm:$0xff] }
 0x362   : > { %3344 = vperm.xlu1 %4112, %v3182_v49   ;;  %3349 = vperm.xlu0 %4111, %v3183_v48   ;;  %v3201_v49 = vld [vmem:[%s5854_s6 + $0x178] sm:$0xff] }
 0x363   : > { %4012 = vmatmul.mubr.msk.bf16.gmra.mxu0 %vm2852_vm6, %v2815_v4 }
 0x364   : > { %v2596_v20 = vpop.permute.xlu1 %2595  ;;  %v2594_v29 = vpop.permute.xlu0 %2593  ;;  %v2777_v28 = vld [vmem:[#allocation2 + $0x88] sm:$0xff]  ;;  %v2778_v45 = vld [vmem:[#allocation2 + $0x90] sm:$0xff] }
 0x365   : > { %2706 = vst.msk [vmem:[#allocation2 + $0xb0] sm:$0xff] %vm2683_vm4, %v2596_v20  ;;  %2705 = vst.msk [vmem:[#allocation2 + $0xa8] sm:$0xff] %vm2683_vm4, %v2594_v29  ;;  %v2816_v34 = vpack.c.bf16 %v2777_v28, %v2776_v13 }
 0x366   : > { %3354 = vperm.xlu1 %4112, %v3184_v12   ;;  %3359 = vperm.xlu0 %4111, %v3185_v21  }
 0x367   : > { %4015 = vmatprep.mubr.msk.bf16.mxu0 %vm2852_vm6, %v2816_v34 }
 0x368   : > { %v2600_v42 = vpop.permute.xlu1 %2599  ;;  %v2598_v43 = vpop.permute.xlu0 %2597  ;;  %v2779_v50 = vld [vmem:[#allocation2 + $0x98] sm:$0xff]  ;;  %v2780_v58 = vld [vmem:[#allocation2 + $0xa0] sm:$0xff] }
 0x369   : > { %2708 = vst.msk [vmem:[#allocation2 + $0xc0] sm:$0xff] %vm2683_vm4, %v2600_v42  ;;  %2707 = vst.msk [vmem:[#allocation2 + $0xb8] sm:$0xff] %vm2683_vm4, %v2598_v43  ;;  %v2817_v51 = vpack.c.bf16 %v2779_v50, %v2778_v45 }
 0x36a   : > { %3364 = vperm.xlu1 %4112, %v3186_v38   ;;  %3369 = vperm.xlu0 %4111, %v3187_v39  }
 0x36b   : > { %4016 = vmatmul.mubr.msk.bf16.gmra.mxu0 %vm2852_vm6, %v2817_v51 }
 0x36c   : > { %v2604_v3 = vpop.permute.xlu1 %2603  ;;  %v2602_v18 = vpop.permute.xlu0 %2601  ;;  %v2781_v19 = vld [vmem:[#allocation2 + $0xa8] sm:$0xff]  ;;  %v2782_v44 = vld [vmem:[#allocation2 + $0xb0] sm:$0xff] }
 0x36d   : > { %2710 = vst.msk [vmem:[#allocation2 + $0xd0] sm:$0xff] %vm2683_vm4, %v2604_v3  ;;  %2709 = vst.msk [vmem:[#allocation2 + $0xc8] sm:$0xff] %vm2683_vm4, %v2602_v18  ;;  %v2818_v35 = vpack.c.bf16 %v2781_v19, %v2780_v58 }
 0x36e   : > { %3374 = vperm.xlu1 %4112, %v3188_v59   ;;  %3379 = vperm.xlu0 %4111, %v3189_v2  }
 0x36f   : > { %4019 = vmatprep.mubr.msk.bf16.mxu0 %vm2852_vm6, %v2818_v35 }
 0x370   : > { %v2608_v1 = vpop.permute.xlu1 %2607  ;;  %v2606_v8 = vpop.permute.xlu0 %2605  ;;  %v2783_v17 = vld [vmem:[#allocation2 + $0xb8] sm:$0xff]  ;;  %v2784_v25 = vld [vmem:[#allocation2 + $0xc0] sm:$0xff] }
 0x371   : > { %2712 = vst.msk [vmem:[#allocation2 + $0xe0] sm:$0xff] %vm2683_vm4, %v2608_v1  ;;  %2711 = vst.msk [vmem:[#allocation2 + $0xd8] sm:$0xff] %vm2683_vm4, %v2606_v8  ;;  %v2819_v24 = vpack.c.bf16 %v2783_v17, %v2782_v44 }
 0x372   : > { %3384 = vperm.xlu1 %4112, %v3190_v52   ;;  %3389 = vperm.xlu0 %4111, %v3191_v0  }
 0x373   : > { %4020 = vmatmul.mubr.msk.bf16.gmra.mxu0 %vm2852_vm6, %v2819_v24 }
 0x374   : > { %v2612_v36 = vpop.permute.xlu1 %2611  ;;  %v2610_v41 = vpop.permute.xlu0 %2609  ;;  %v2785_v40 = vld [vmem:[#allocation2 + $0xc8] sm:$0xff]  ;;  %v2786_v46 = vld [vmem:[#allocation2 + $0xd0] sm:$0xff] }
 0x375   : > { %2714 = vst.msk [vmem:[#allocation2 + $0xf0] sm:$0xff] %vm2683_vm4, %v2612_v36  ;;  %2713 = vst.msk [vmem:[#allocation2 + $0xe8] sm:$0xff] %vm2683_vm4, %v2610_v41  ;;  %v2820_v47 = vpack.c.bf16 %v2785_v40, %v2784_v25 }
 0x376   : > { %3394 = vperm.xlu1 %4112, %v3192_v33   ;;  %3399 = vperm.xlu0 %4111, %v3193_v37  }
 0x377   : > { %4023 = vmatprep.mubr.msk.bf16.mxu1 %vm2852_vm6, %v2820_v47 }
 0x378   : > { %v2616_v63 = vpop.permute.xlu1 %2615  ;;  %v2614_v62 = vpop.permute.xlu0 %2613  ;;  %v2787_v11 = vld [vmem:[#allocation2 + $0xd8] sm:$0xff]  ;;  %v2788_v27 = vld [vmem:[#allocation2 + $0xe0] sm:$0xff] }
 0x379   : > { %2716 = vst.msk [vmem:[#allocation2 + $0x100] sm:$0xff] %vm2683_vm4, %v2616_v63  ;;  %2715 = vst.msk [vmem:[#allocation2 + $0xf8] sm:$0xff] %vm2683_vm4, %v2614_v62  ;;  %v2821_v10 = vpack.c.bf16 %v2787_v11, %v2786_v46 }
 0x37a   : > { %3404 = vperm.xlu1 %4112, %v3194_v55   ;;  %3409 = vperm.xlu0 %4111, %v3195_v54  }
 0x37b   : > { %4024 = vmatmul.mubr.msk.bf16.vlgmr.msra.gmra.mxu1 %vm2852_vm6, %v2821_v10 }
 0x37c   : > { %v2620_v9 = vpop.permute.xlu1 %2619  ;;  %v2618_v16 = vpop.permute.xlu0 %2617  ;;  %v2789_v57 = vld [vmem:[#allocation2 + $0xe8] sm:$0xff]  ;;  %v2790_v26 = vld [vmem:[#allocation2 + $0xf0] sm:$0xff] }
 0x37d   : > { %2718 = vst.msk [vmem:[#allocation2 + $0x110] sm:$0xff] %vm2683_vm4, %v2620_v9  ;;  %2717 = vst.msk [vmem:[#allocation2 + $0x108] sm:$0xff] %vm2683_vm4, %v2618_v16  ;;  %v2822_v6 = vpack.c.bf16 %v2789_v57, %v2788_v27 }
 0x37e   : > { %3414 = vperm.xlu1 %4112, %v3196_v56   ;;  %3419 = vperm.xlu0 %4111, %v3197_v53  }
 0x37f   : > { %4027 = vmatprep.mubr.msk.bf16.mxu1 %vm2852_vm6, %v2822_v6 }
 0x380   : > { %v2624_v32 = vpop.permute.xlu1 %2623  ;;  %v2622_v15 = vpop.permute.xlu0 %2621  ;;  %v2791_v22 = vld [vmem:[#allocation2 + $0xf8] sm:$0xff]  ;;  %v2792_v30 = vld [vmem:[#allocation2 + $0x100] sm:$0xff] }
 0x381   : > { %2720 = vst.msk [vmem:[#allocation2 + $0x120] sm:$0xff] %vm2683_vm4, %v2624_v32  ;;  %2719 = vst.msk [vmem:[#allocation2 + $0x118] sm:$0xff] %vm2683_vm4, %v2622_v15  ;;  %v2823_v23 = vpack.c.bf16 %v2791_v22, %v2790_v26 }
 0x382   : > { %3424 = vperm.xlu1 %4112, %v3198_v7   ;;  %3429 = vperm.xlu0 %4111, %v3199_v14  }
 0x383   : > { %4028 = vmatmul.mubr.msk.bf16.gmra.mxu1 %vm2852_vm6, %v2823_v23 }
 0x384   : > { %v2628_v48 = vpop.permute.xlu1 %2627  ;;  %v2626_v61 = vpop.permute.xlu0 %2625  ;;  %v2793_v60 = vld [vmem:[#allocation2 + $0x108] sm:$0xff]  ;;  %v2794_v4 = vld [vmem:[#allocation2 + $0x110] sm:$0xff] }
 0x385   : > { %2722 = vst.msk [vmem:[#allocation2 + $0x130] sm:$0xff] %vm2683_vm4, %v2628_v48  ;;  %2721 = vst.msk [vmem:[#allocation2 + $0x128] sm:$0xff] %vm2683_vm4, %v2626_v61  ;;  %v2824_v5 = vpack.c.bf16 %v2793_v60, %v2792_v30 }
 0x386   : > { %3434 = vperm.xlu1 %4112, %v3200_v31   ;;  %3439 = vperm.xlu0 %4111, %v3201_v49  }
 0x387   : > { %4031 = vmatprep.mubr.msk.bf16.mxu1 %vm2852_vm6, %v2824_v5 }
 0x388   : > { %v2632_v13 = vpop.permute.xlu1 %2631  ;;  %v2630_v12 = vpop.permute.xlu0 %2629  ;;  %v2795_v21 = vld [vmem:[#allocation2 + $0x118] sm:$0xff]  ;;  %v2796_v29 = vld [vmem:[#allocation2 + $0x120] sm:$0xff] }
 0x389   : > { %2724 = vst.msk [vmem:[#allocation2 + $0x140] sm:$0xff] %vm2683_vm4, %v2632_v13  ;;  %2723 = vst.msk [vmem:[#allocation2 + $0x138] sm:$0xff] %vm2683_vm4, %v2630_v12  ;;  %v2825_v20 = vpack.c.bf16 %v2795_v21, %v2794_v4 }
 0x38b   : > { %4032 = vmatmul.mubr.msk.bf16.gmra.mxu1 %vm2852_vm6, %v2825_v20 }
 0x38c   : > { %v2636_v28 = vpop.permute.xlu1 %2635  ;;  %v2634_v34 = vpop.permute.xlu0 %2633  ;;  %v2797_v45 = vld [vmem:[#allocation2 + $0x128] sm:$0xff]  ;;  %v2798_v39 = vld [vmem:[#allocation2 + $0x130] sm:$0xff] }
 0x38d   : > { %2726 = vst.msk [vmem:[#allocation2 + $0x150] sm:$0xff] %vm2683_vm4, %v2636_v28  ;;  %2725 = vst.msk [vmem:[#allocation2 + $0x148] sm:$0xff] %vm2683_vm4, %v2634_v34  ;;  %v2826_v38 = vpack.c.bf16 %v2797_v45, %v2796_v29 }
 0x38f   : > { %4035 = vmatprep.mubr.msk.bf16.mxu1 %vm2852_vm6, %v2826_v38 }
 0x390   : > { %v2740_v42 = vpop.permute.xlu1 %2739  ;;  %v2638_v43 = vpop.permute.xlu0 %2637  ;;  %v2799_v50 = vld [vmem:[#allocation2 + $0x138] sm:$0xff]  ;;  %v2800_v58 = vld [vmem:[#allocation2 + $0x140] sm:$0xff] }
 0x391   : > { %2754 = vst.msk [vmem:[#allocation2 + $0x15a] sm:$0xff] %vm2683_vm4, %v2740_v42  ;;  %v2827_v51 = vpack.c.bf16 %v2799_v50, %v2798_v39 }
 0x392   : > { %2728 = vst.msk [vmem:[#allocation2 + $0x158] sm:$0x3] %vm2727_vm7, %v2638_v43 }
 0x393   : > { %4036 = vmatmul.mubr.msk.bf16.gmra.mxu1 %vm2852_vm6, %v2827_v51 }
 0x394   : > { %v2744_v59 = vpop.permute.xlu1 %2743  ;;  %v2742_v2 = vpop.permute.xlu0 %2741  ;;  %v2801_v3 = vld [vmem:[#allocation2 + $0x148] sm:$0xff]  ;;  %v2802_v19 = vld [vmem:[#allocation2 + $0x150] sm:$0xff] }
 0x395   : > { %2756 = vst.msk [vmem:[#allocation2 + $0x16a] sm:$0xff] %vm2683_vm4, %v2744_v59  ;;  %2755 = vst.msk [vmem:[#allocation2 + $0x162] sm:$0xff] %vm2683_vm4, %v2742_v2  ;;  %v2828_v18 = vpack.c.bf16 %v2801_v3, %v2800_v58 }
 0x397   : > { %4039 = vmatprep.mubr.msk.bf16.mxu1 %vm2852_vm6, %v2828_v18 }
 0x398   : > { %v2748_v35 = vpop.permute.xlu1 %2747  ;;  %v2746_v44 = vpop.permute.xlu0 %2745 }
 0x399   : > { %v2803_v52 = vld [vmem:[#allocation2 + $0x158] sm:$0xff]  ;;  %2759 = vst.msk [vmem:[#allocation2 + $0x17a] sm:$0x3f] %vm2758_vm8, %v2748_v35 }
 0x39a   : > { %2757 = vst.msk [vmem:[#allocation2 + $0x172] sm:$0xff] %vm2683_vm4, %v2746_v44  ;;  %v2829_v0 = vpack.c.bf16 %v2803_v52, %v2802_v19 }
 0x39c   : > { %4040 = vmatmul.mubr.msk.bf16.gmra.mxu1 %vm2852_vm6, %v2829_v0  ;;  %v2804_v1 = vld [vmem:[#allocation2 + $0x160] sm:$0xff]  ;;  %v2805_v8 = vld [vmem:[#allocation2 + $0x168] sm:$0xff] }
 0x39d   : > { %v2830_v17 = vpack.c.bf16 %v2805_v8, %v2804_v1 }
 0x39f   : > { %4043 = vmatprep.mubr.msk.bf16.mxu1 %vm2852_vm6, %v2830_v17 }
 0x3a1   : > { %v2806_v24 = vld [vmem:[#allocation2 + $0x170] sm:$0xff]  ;;  %v2807_v25 = vld [vmem:[#allocation2 + $0x178] sm:$0xff] }
 0x3a2   : > { %v2831_v33 = vpack.c.bf16 %v2807_v25, %v2806_v24 }
 0x3a4   : > { %4044 = vmatmul.mubr.msk.bf16.gmra.mxu1 %vm2852_vm6, %v2831_v33 }
 0x3a5   : > { %v3210_v37 = vpop.permute.xlu1 %3209  ;;  %v3205_v36 = vpop.permute.xlu0 %3204 }
 0x3a9   : > { %v3215_v41 = vpop.permute.xlu1 %3214  ;;  %v3220_v40 = vpop.permute.xlu0 %3219 }
 0x3ad   : > { %v3225_v47 = vpop.permute.xlu1 %3224  ;;  %v3230_v46 = vpop.permute.xlu0 %3229 }
 0x3b1   : > { %v3235_v55 = vpop.permute.xlu1 %3234  ;;  %v3240_v54 = vpop.permute.xlu0 %3239 }
 0x3b5   : > { %v3245_v63 = vpop.permute.xlu1 %3244  ;;  %v3250_v62 = vpop.permute.xlu0 %3249 }
 0x3b9   : > { %v3255_v11 = vpop.permute.xlu1 %3254  ;;  %v3260_v10 = vpop.permute.xlu0 %3259 }
 0x3bd   : > { %v5987_v27 = vpop.permute.xlu1 %3264  ;;  %v5989_v56 = vpop.permute.xlu0 %3269 }
 0x3c1   : > { %v5991_v53 = vpop.permute.xlu1 %3274  ;;  %v5995_v16 = vpop.permute.xlu0 %3279 }
 0x3c5   : > { %v5999_v6 = vpop.permute.xlu1 %3284  ;;  %v6006_v32 = vpop.permute.xlu0 %3289 }
 0x3c9   : > { %v6012_v30 = vpop.permute.xlu1 %3294  ;;  %v6021_v21 = vpop.permute.xlu0 %3299 }
 0x3cd   : > { %v6029_v39 = vpop.permute.xlu1 %3304  ;;  %v6037_v19 = vpop.permute.xlu0 %3309 }
 0x3d1   : > { %v6045_v17 = vpop.permute.xlu1 %3314 }
 0x40b   : > { %v5993_v9 = vpop.f32.mrf.mxu0 }
 0x40c   : > { %v3444_v15 = vmul.f32 %v5993_v9, %v3215_v41 }
 0x40d   : > { %v5997_v57 = vpop.f32.mrf.mxu0 }
 0x40e   : > { %v3442_v7 = vmul.f32 %v3205_v36, %v5997_v57  ;;  %v3545_v5 = vmul.f32 %v5993_v9, %v3444_v15 }
 0x40f   : > { %v6001_v26 = vpop.f32.mrf.mxu0 }
 0x410   : > { %v3543_v31 = vmul.f32 %v3442_v7, %v5997_v57  ;;  %v3445_v49 = vmul.f32 %v6001_v26, %v3220_v40 }
 0x411   : > { %v6004_v14 = vpop.f32.mrf.mxu0 }
 0x412   : > { %v3443_v22 = vmul.f32 %v3210_v37, %v6004_v14  ;;  %v3546_v29 = vmul.f32 %v6001_v26, %v3445_v49 }
 0x413   : > { %v6010_v23 = vpop.f32.mrf.mxu0 }
 0x414   : > { %v3490_v48 = vadd.f32 %v3443_v22, %v3442_v7  ;;  %v3544_v61 = vmul.f32 %v3443_v22, %v6004_v14  ;;  %v3448_v45 = vmul.f32 %v6010_v23, %v3235_v55  ;;  %v6053_v55 = vpop.permute.xlu0 %3319 }
 0x415   : > { %v6017_v60 = vpop.f32.mrf.mxu0 }
 0x416   : > { %v3491_v4 = vadd.f32 %v3490_v48, %v3444_v15  ;;  %v3591_v13 = vadd.f32 %v3544_v61, %v3543_v31  ;;  %v3446_v12 = vmul.f32 %v3225_v47, %v6017_v60  ;;  %v3549_v44 = vmul.f32 %v6010_v23, %v3448_v45 }
 0x417   : > { %v6023_v20 = vpop.f32.mrf.mxu0 }
 0x418   : > { %v3592_v28 = vadd.f32 %v3591_v13, %v3545_v5  ;;  %v3492_v34 = vadd.f32 %v3491_v4, %v3445_v49  ;;  %v3547_v43 = vmul.f32 %v3446_v12, %v6017_v60  ;;  %v3449_v2 = vmul.f32 %v6023_v20, %v3240_v54 }
 0x419   : > { %v6027_v38 = vpop.f32.mrf.mxu0 }
 0x41a   : > { %v3493_v42 = vadd.f32 %v3492_v34, %v3446_v12  ;;  %v3593_v50 = vadd.f32 %v3592_v28, %v3546_v29  ;;  %v3447_v51 = vmul.f32 %v3230_v46, %v6027_v38  ;;  %v3550_v24 = vmul.f32 %v6023_v20, %v3449_v2  ;;  %v6069_v12 = vpop.permute.xlu0 %3329 }
 0x41b   : > { %v6033_v58 = vpop.f32.mrf.mxu0 }
 0x41c   : > { %v3594_v59 = vadd.f32 %v3593_v50, %v3547_v43  ;;  %v3494_v3 = vadd.f32 %v3493_v42, %v3447_v51  ;;  %v3548_v18 = vmul.f32 %v3447_v51, %v6027_v38  ;;  %v3452_v37 = vmul.f32 %v6033_v58, %v3255_v11  ;;  %v6061_v11 = vpop.permute.xlu1 %3324 }
 0x41d   : > { %v6039_v35 = vpop.f32.mrf.mxu0 }
 0x41e   : > { %v3495_v52 = vadd.f32 %v3494_v3, %v3448_v45  ;;  %v3595_v0 = vadd.f32 %v3594_v59, %v3548_v18  ;;  %v3450_v1 = vmul.f32 %v3245_v63, %v6039_v35  ;;  %v3553_v49 = vmul.f32 %v6033_v58, %v3452_v37 }
 0x41f   : > { %v6043_v8 = vpop.f32.mrf.mxu0 }
 0x420   : > { %v3596_v25 = vadd.f32 %v3595_v0, %v3549_v44  ;;  %v3496_v33 = vadd.f32 %v3495_v52, %v3449_v2  ;;  %v3551_v40 = vmul.f32 %v3450_v1, %v6039_v35  ;;  %v3453_v7 = vmul.f32 %v6043_v8, %v3260_v10  ;;  %v6078_v50 = vpop.permute.xlu1 %3334 }
 0x421   : > { %v6049_v36 = vpop.f32.mrf.mxu0 }
 0x422   : > { %v3497_v41 = vadd.f32 %v3496_v33, %v3450_v1  ;;  %v3597_v47 = vadd.f32 %v3596_v25, %v3550_v24  ;;  %v3451_v46 = vmul.f32 %v3250_v62, %v6049_v36  ;;  %v3554_v4 = vmul.f32 %v6043_v8, %v3453_v7 }
 0x423   : > { %v6055_v54 = vpop.f32.mrf.mxu0 }
 0x424   : > { %v3598_v63 = vadd.f32 %v3597_v47, %v3551_v40  ;;  %v3498_v15 = vadd.f32 %v3497_v41, %v3451_v46  ;;  %v3552_v22 = vmul.f32 %v3451_v46, %v6049_v36  ;;  %v3456_v29 = vmul.f32 %v6055_v54, %v5991_v53  ;;  %v6090_v47 = vpop.permute.xlu1 %3344 }
 0x425   : > { %v6059_v31 = vpop.f32.mrf.mxu0 }
 0x426   : > { %v3499_v48 = vadd.f32 %v3498_v15, %v3452_v37  ;;  %v3599_v61 = vadd.f32 %v3598_v63, %v3552_v22  ;;  %v3454_v62 = vmul.f32 %v5987_v27, %v6059_v31  ;;  %v3557_v53 = vmul.f32 %v6055_v54, %v3456_v29 }
 0x427   : > { %v6066_v5 = vpop.f32.mrf.mxu0 }
 0x428   : > { %v3600_v13 = vadd.f32 %v3599_v61, %v3553_v49  ;;  %v3500_v10 = vadd.f32 %v3499_v48, %v3453_v7  ;;  %v3555_v45 = vmul.f32 %v3454_v62, %v6059_v31  ;;  %v3457_v59 = vmul.f32 %v6066_v5, %v5995_v16 }
 0x429   : > { %v6073_v28 = vpop.f32.mrf.mxu0 }
 0x42a   : > { %v3501_v34 = vadd.f32 %v3500_v10, %v3454_v62  ;;  %v3601_v42 = vadd.f32 %v3600_v13, %v3554_v4  ;;  %v3455_v27 = vmul.f32 %v5989_v56, %v6073_v28  ;;  %v6086_v56 = vpop.permute.xlu0 %3339  ;;  %v3558_v25 = vmul.f32 %v6066_v5, %v3457_v59 }
 0x42b   : > { %v4017_v43 = vpop.f32.mrf.mxu0 }
 0x42c   : > { %v3602_v51 = vadd.f32 %v3601_v42, %v3555_v45  ;;  %v3502_v2 = vadd.f32 %v3501_v34, %v3455_v27  ;;  %v3556_v3 = vmul.f32 %v3455_v27, %v6073_v28  ;;  %v3460_v16 = vmul.f32 %v4017_v43, %v6012_v30 }
 0x42d   : > { %v3027_v18 = vpop.f32.mrf.mxu0  ;;  %v4117_v30 = vpack.i.bf16 %v4017_v43, %v5993_v9 }
 0x42e   : > { %v3503_v44 = vadd.f32 %v3502_v2, %v3456_v29  ;;  %v3603_v52 = vadd.f32 %v3602_v51, %v3556_v3  ;;  %v4113_v0 = vpack.i.bf16 %v3027_v18, %v5997_v57  ;;  %v3458_v1 = vmul.f32 %v5999_v6, %v3027_v18  ;;  %v6097_v61 = vpop.permute.xlu0 %3349 }
 0x42f   : > { %v4018_v24 = vpop.f32.mrf.mxu0  ;;  %v3561_v4 = vmul.f32 %v4017_v43, %v3460_v16 }
 0x430   : > { %v3604_v33 = vadd.f32 %v3603_v52, %v3557_v53  ;;  %v3504_v37 = vadd.f32 %v3503_v44, %v3457_v59  ;;  %4114 = vxpose.xlu1.b32.start [1/16] (narrow) %v4113_v0, 16  ;;  %v3559_v41 = vmul.f32 %v3458_v1, %v3027_v18  ;;  %v3461_v22 = vmul.f32 %v4018_v24, %v6021_v21 }
 0x431   : > { %v3030_v40 = vpop.f32.mrf.mxu0  ;;  %v4119_v21 = vpack.i.bf16 %v4018_v24, %v6001_v26 }
 0x432   : > { %v3605_v46 = vadd.f32 %v3604_v33, %v3558_v25  ;;  %v3505_v63 = vadd.f32 %v3504_v37, %v3458_v1  ;;  %v4115_v57 = vpack.i.bf16 %v3030_v40, %v6004_v14  ;;  %v3459_v6 = vmul.f32 %v6006_v32, %v3030_v40  ;;  %v3355_v32 = vpop.permute.xlu1 %3354  ;;  %v3360_v3 = vpop.permute.xlu0 %3359 }
 0x433   : > { %v6094_v7 = vpop.f32.mrf.mxu0  ;;  %v3562_v34 = vmul.f32 %v4018_v24, %v3461_v22 }
 0x434   : > { %v3606_v15 = vadd.f32 %v3605_v46, %v3559_v41  ;;  %v3506_v49 = vadd.f32 %v3505_v63, %v3459_v6  ;;  %v3560_v48 = vmul.f32 %v3459_v6, %v3030_v40  ;;  %4116 = vxpose.xlu1.b32.cont [2/16] (narrow) %v4115_v57, 16  ;;  %v3464_v27 = vmul.f32 %v6094_v7, %v6045_v17 }
 0x435   : > { %v3043_v62 = vpop.f32.mrf.mxu0 }
 0x436   : > { %v3507_v13 = vadd.f32 %v3506_v49, %v3460_v16  ;;  %v3607_v10 = vadd.f32 %v3606_v15, %v3560_v48  ;;  %v3462_v14 = vmul.f32 %v6029_v39, %v3043_v62  ;;  %v4121_v26 = vpack.i.bf16 %v3043_v62, %v6017_v60  ;;  %v3365_v17 = vpop.permute.xlu1 %3364  ;;  %v3370_v41 = vpop.permute.xlu0 %3369 }
 0x437   : > { %v6101_v29 = vpop.f32.mrf.mxu0  ;;  %v3565_v1 = vmul.f32 %v6094_v7, %v3464_v27 }
 0x438   : > { %v3608_v45 = vadd.f32 %v3607_v10, %v3561_v4  ;;  %v3508_v42 = vadd.f32 %v3507_v13, %v3461_v22  ;;  %4118 = vxpose.xlu1.b32.cont [3/16] (narrow) %v4117_v30, 16  ;;  %v3563_v43 = vmul.f32 %v3462_v14, %v3043_v62  ;;  %v3465_v18 = vmul.f32 %v6101_v29, %v6053_v55 }
 0x439   : > { %v3046_v51 = vpop.f32.mrf.mxu0 }
 0x43a   : > { %v3609_v9 = vadd.f32 %v3608_v45, %v3562_v34  ;;  %v3509_v59 = vadd.f32 %v3508_v42, %v3462_v14  ;;  %v3463_v2 = vmul.f32 %v6037_v19, %v3046_v51  ;;  %v3566_v37 = vmul.f32 %v6101_v29, %v3465_v18  ;;  %v3375_v22 = vpop.permute.xlu1 %3374  ;;  %v3380_v14 = vpop.permute.xlu0 %3379 }
 0x43b   : > { %v6107_v39 = vpop.f32.mrf.mxu1  ;;  %v4123_v60 = vpack.i.bf16 %v3046_v51, %v6027_v38 }
 0x43c   : > { %v3610_v53 = vadd.f32 %v3609_v9, %v3563_v43  ;;  %v3510_v44 = vadd.f32 %v3509_v59, %v3463_v2  ;;  %v3564_v52 = vmul.f32 %v3463_v2, %v3046_v51  ;;  %4120 = vxpose.xlu1.b32.cont [4/16] (narrow) %v4119_v21, 16  ;;  %v3468_v40 = vmul.f32 %v6107_v39, %v6078_v50 }
 0x43d   : > { %v6112_v0 = vpop.f32.mrf.mxu1  ;;  %v4125_v50 = vpack.i.bf16 %v6094_v7, %v6010_v23  ;;  %v4127_v23 = vpack.i.bf16 %v6101_v29, %v6023_v20 }
 0x43e   : > { %v3511_v24 = vadd.f32 %v3510_v44, %v3464_v27  ;;  %v3611_v25 = vadd.f32 %v3610_v53, %v3564_v52  ;;  %v3466_v19 = vmul.f32 %v6061_v11, %v6112_v0  ;;  %v3569_v4 = vmul.f32 %v6107_v39, %v3468_v40  ;;  %v3385_v27 = vpop.permute.xlu1 %3384  ;;  %v3390_v20 = vpop.permute.xlu0 %3389 }
 0x43f   : > { %v6117_v33 = vpop.f32.mrf.mxu1  ;;  %v4129_v29 = vpack.i.bf16 %v6112_v0, %v6039_v35 }
 0x440   : > { %v3612_v55 = vadd.f32 %v3611_v25, %v3565_v1  ;;  %v3512_v16 = vadd.f32 %v3511_v24, %v3465_v18  ;;  %4122 = vxpose.xlu1.b32.cont [5/16] (narrow) %v4121_v26, 16  ;;  %v3567_v63 = vmul.f32 %v3466_v19, %v6112_v0  ;;  %v3469_v48 = vmul.f32 %v6117_v33, %v6086_v56 }
 0x441   : > { %v6123_v46 = vpop.f32.mrf.mxu1 }
 0x442   : > { %v3513_v57 = vadd.f32 %v3512_v16, %v3466_v19  ;;  %v3613_v6 = vadd.f32 %v3612_v55, %v3566_v37  ;;  %v3467_v11 = vmul.f32 %v6069_v12, %v6123_v46  ;;  %v3570_v56 = vmul.f32 %v6117_v33, %v3469_v48  ;;  %v3395_v25 = vpop.permute.xlu1 %3394 }
 0x443   : > { %v6128_v15 = vpop.f32.mrf.mxu1  ;;  %v4131_v55 = vpack.i.bf16 %v6123_v46, %v6049_v36 }
 0x444   : > { %v3614_v49 = vadd.f32 %v3613_v6, %v3567_v63  ;;  %v3568_v38 = vmul.f32 %v3467_v11, %v6123_v46  ;;  %v3514_v30 = vadd.f32 %v3513_v57, %v3467_v11  ;;  %4124 = vxpose.xlu1.b32.cont [6/16] (narrow) %v4123_v60, 16  ;;  %v3472_v7 = vmul.f32 %v6128_v15, %v3355_v32  ;;  %v3400_v57 = vpop.permute.xlu0 %3399 }
 0x445   : > { %v6135_v62 = vpop.f32.mrf.mxu1 }
 0x446   : > { %v3515_v13 = vadd.f32 %v3514_v30, %v3468_v40  ;;  %v3615_v12 = vadd.f32 %v3614_v49, %v3568_v38  ;;  %v3470_v10 = vmul.f32 %v6090_v47, %v6135_v62  ;;  %v3573_v52 = vmul.f32 %v6128_v15, %v3472_v7  ;;  %v3405_v36 = vpop.permute.xlu1 %3404 }
 0x447   : > { %v6140_v34 = vpop.f32.mrf.mxu1  ;;  %v4133_v38 = vpack.i.bf16 %v6107_v39, %v6033_v58 }
 0x448   : > { %v3616_v45 = vadd.f32 %v3615_v12, %v3569_v4  ;;  %v3516_v42 = vadd.f32 %v3515_v13, %v3469_v48  ;;  %4126 = vxpose.xlu1.b32.cont [7/16] (narrow) %v4125_v50, 16  ;;  %v3571_v51 = vmul.f32 %v3470_v10, %v6135_v62  ;;  %v3473_v53 = vmul.f32 %v6140_v34, %v3360_v3 }
 0x449   : > { %v6146_v21 = vpop.f32.mrf.mxu1 }
 0x44a   : > { %v3517_v9 = vadd.f32 %v3516_v42, %v3470_v10  ;;  %v3617_v47 = vadd.f32 %v3616_v45, %v3570_v56  ;;  %v3471_v59 = vmul.f32 %v6097_v61, %v6146_v21  ;;  %v3574_v19 = vmul.f32 %v6140_v34, %v3473_v53  ;;  %v3410_v56 = vpop.permute.xlu0 %3409 }
 0x44b   : > { %v4033_v43 = vpop.f32.mrf.mxu1 }
 0x44c   : > { %v3618_v2 = vadd.f32 %v3617_v47, %v3571_v51  ;;  %v3572_v18 = vmul.f32 %v3471_v59, %v6146_v21  ;;  %v3518_v44 = vadd.f32 %v3517_v9, %v3471_v59  ;;  %4128 = vxpose.xlu1.b32.cont [8/16] (narrow) %v4127_v23, 16  ;;  %v3476_v16 = vmul.f32 %v4033_v43, %v3375_v22  ;;  %v3415_v51 = vpop.permute.xlu1 %3414 }
 0x44d   : > { %v3091_v32 = vpop.f32.mrf.mxu1 }
 0x44e   : > { %v3519_v26 = vadd.f32 %v3518_v44, %v3472_v7  ;;  %v3619_v1 = vadd.f32 %v3618_v2, %v3572_v18  ;;  %v3474_v24 = vmul.f32 %v3365_v17, %v3091_v32  ;;  %3711 = vxpose.xlu0.b32.start [1/16] (narrow) %v3091_v32, 16  ;;  %v3577_v46 = vmul.f32 %v4033_v43, %v3476_v16 }
 0x44f   : > { %v4034_v61 = vpop.f32.mrf.mxu1 }
 0x450   : > { %v3620_v3 = vadd.f32 %v3619_v1, %v3573_v52  ;;  %v3520_v37 = vadd.f32 %v3519_v26, %v3473_v53  ;;  %4130 = vxpose.xlu1.b32.cont [9/16] (narrow) %v4129_v29, 16  ;;  %v3575_v0 = vmul.f32 %v3474_v24, %v3091_v32  ;;  %v3477_v11 = vmul.f32 %v4034_v61, %v3380_v14 }
 0x451   : > { %v3094_v60 = vpop.f32.mrf.mxu1  ;;  %v4135_v14 = vpack.i.bf16 %v6117_v33, %v6043_v8  ;;  %v4137_v8 = vpack.i.bf16 %v6135_v62, %v6059_v31  ;;  %v4139_v1 = vpack.i.bf16 %v6146_v21, %v6073_v28  ;;  %v4141_v28 = vpack.i.bf16 %v6128_v15, %v6055_v54 }
 0x452   : > { %v3521_v35 = vadd.f32 %v3520_v37, %v3474_v24  ;;  %v3621_v40 = vadd.f32 %v3620_v3, %v3574_v19  ;;  %v3475_v63 = vmul.f32 %v3370_v41, %v3094_v60  ;;  %3712 = vxpose.xlu0.b32.cont [2/16] (narrow) %v3094_v60, 16  ;;  %v3578_v13 = vmul.f32 %v4034_v61, %v3477_v11  ;;  %v3425_v24 = vpop.permute.xlu1 %3424 }
 0x453   : > { %v6159_v17 = vpop.f32.mrf.mxu1  ;;  %v4143_v54 = vpack.i.bf16 %v6140_v34, %v6066_v5 }
 0x454   : > { %v3622_v6 = vadd.f32 %v3621_v40, %v3575_v0  ;;  %v3522_v49 = vadd.f32 %v3521_v35, %v3475_v63  ;;  %v3576_v48 = vmul.f32 %v3475_v63, %v3094_v60  ;;  %4132 = vxpose.xlu1.b32.cont [10/16] (narrow) %v4131_v55, 16  ;;  %v3480_v45 = vmul.f32 %v6159_v17, %v3395_v25 }
 0x455   : > { %v3107_v30 = vpop.f32.mrf.mxu1 }
 0x456   : > { %v3523_v22 = vadd.f32 %v3522_v49, %v3476_v16  ;;  %v3623_v50 = vadd.f32 %v3622_v6, %v3576_v48  ;;  %v3478_v4 = vmul.f32 %v3385_v27, %v3107_v30  ;;  %3713 = vxpose.xlu0.b32.cont [3/16] (narrow) %v4033_v43, 16  ;;  %v3581_v2 = vmul.f32 %v6159_v17, %v3480_v45  ;;  %v3435_v49 = vpop.permute.xlu1 %3434 }
 0x457   : > { %v6163_v41 = vpop.f32.mrf.mxu1 }
 0x458   : > { %v3624_v12 = vadd.f32 %v3623_v50, %v3577_v46  ;;  %v3524_v10 = vadd.f32 %v3523_v22, %v3477_v11  ;;  %4134 = vxpose.xlu1.b32.cont [11/16] (narrow) %v4133_v38, 16  ;;  %v3579_v42 = vmul.f32 %v3478_v4, %v3107_v30  ;;  %v3481_v47 = vmul.f32 %v6163_v41, %v3400_v57 }
 0x459   : > { %v3110_v58 = vpop.f32.mrf.mxu1 }
 0x45a   : > { %v3525_v39 = vadd.f32 %v3524_v10, %v3478_v4  ;;  %v3625_v23 = vadd.f32 %v3624_v12, %v3578_v13  ;;  %v3479_v7 = vmul.f32 %v3390_v20, %v3110_v58  ;;  %3714 = vxpose.xlu0.b32.cont [4/16] (narrow) %v4034_v61, 16  ;;  %v3420_v20 = vpop.permute.xlu0 %3419  ;;  %v3582_v32 = vmul.f32 %v6163_v41, %v3481_v47 }
 0x45c   : > { %v6168_v27 = vpop.f32.mrf.mxu1  ;;  %v3626_v9 = vadd.f32 %v3625_v23, %v3579_v42  ;;  %v3526_v59 = vadd.f32 %v3525_v39, %v3479_v7  ;;  %v3580_v43 = vmul.f32 %v3479_v7, %v3110_v58  ;;  %4136 = vxpose.xlu1.b32.cont [12/16] (narrow) %v4135_v14, 16 }
 0x45d   : > { %v3484_v31 = vmul.f32 %v6168_v27, %v3415_v51 }
 0x45e   : > { %v3123_v33 = vpop.f32.mrf.mxu1  ;;  %v3527_v53 = vadd.f32 %v3526_v59, %v3480_v45  ;;  %v3627_v18 = vadd.f32 %v3626_v9, %v3580_v43  ;;  %3715 = vxpose.xlu0.b32.cont [5/16] (narrow) %v3107_v30, 16  ;;  %v3430_v21 = vpop.permute.xlu0 %3429 }
 0x45f   : > { %v3482_v44 = vmul.f32 %v3405_v36, %v3123_v33  ;;  %v3585_v40 = vmul.f32 %v6168_v27, %v3484_v31 }
 0x460   : > { %v6174_v29 = vpop.f32.mrf.mxu1  ;;  %v3628_v52 = vadd.f32 %v3627_v18, %v3581_v2  ;;  %v3528_v26 = vadd.f32 %v3527_v53, %v3481_v47  ;;  %4138 = vxpose.xlu1.b32.cont [13/16] (narrow) %v4137_v8, 16 }
 0x461   : > { %v3583_v25 = vmul.f32 %v3482_v44, %v3123_v33  ;;  %v3485_v16 = vmul.f32 %v6174_v29, %v3420_v20 }
 0x462   : > { %v3126_v62 = vpop.f32.mrf.mxu1  ;;  %v3529_v61 = vadd.f32 %v3528_v26, %v3482_v44  ;;  %v3629_v19 = vadd.f32 %v3628_v52, %v3582_v32  ;;  %3716 = vxpose.xlu0.b32.cont [6/16] (narrow) %v3110_v58, 16 }
 0x463   : > { %v3483_v3 = vmul.f32 %v3410_v56, %v3126_v62  ;;  %v3586_v48 = vmul.f32 %v6174_v29, %v3485_v16 }
 0x464   : > { %v6180_v37 = vpop.f32.mrf.mxu1  ;;  %v3630_v55 = vadd.f32 %v3629_v19, %v3583_v25  ;;  %4140 = vxpose.xlu1.b32.cont [14/16] (narrow) %v4139_v1, 16 }
 0x465   : > { %v3530_v60 = vadd.f32 %v3529_v61, %v3483_v3  ;;  %v3584_v35 = vmul.f32 %v3483_v3, %v3126_v62  ;;  %v3488_v15 = vmul.f32 %v6180_v37, %v3435_v49 }
 0x466   : > { %v3139_v0 = vpop.f32.mrf.mxu1  ;;  %3717 = vxpose.xlu0.b32.cont [7/16] (narrow) %v6159_v17, 16  ;;  %v3440_v17 = vpop.permute.xlu0 %3439 }
 0x467   : > { %v3531_v63 = vadd.f32 %v3530_v60, %v3484_v31  ;;  %v3631_v57 = vadd.f32 %v3630_v55, %v3584_v35  ;;  %v3486_v6 = vmul.f32 %v3425_v24, %v3139_v0  ;;  %v3589_v56 = vmul.f32 %v6180_v37, %v3488_v15 }
 0x468   : > { %v6187_v11 = vpop.f32.mrf.mxu1  ;;  %4142 = vxpose.xlu1.b32.cont [15/16] (narrow) %v4141_v28, 16 }
 0x469   : > { %v3632_v38 = vadd.f32 %v3631_v57, %v3585_v40  ;;  %v3532_v30 = vadd.f32 %v3531_v63, %v3485_v16  ;;  %v3587_v22 = vmul.f32 %v3486_v6, %v3139_v0  ;;  %v3489_v12 = vmul.f32 %v6187_v11, %v3440_v17 }
 0x46a   : > { %v3142_v36 = vpop.f32.mrf.mxu1  ;;  %3718 = vxpose.xlu0.b32.cont [8/16] (narrow) %v6163_v41, 16 }
 0x46b   : > { %v3533_v46 = vadd.f32 %v3532_v30, %v3486_v6  ;;  %v3633_v50 = vadd.f32 %v3632_v38, %v3586_v48  ;;  %v3487_v4 = vmul.f32 %v3430_v21, %v3142_v36  ;;  %v3590_v45 = vmul.f32 %v6187_v11, %v3489_v12 }
 0x46c   : > { %4144 = vxpose.xlu1.b32.end [16/16] (narrow) %v4143_v54, 16 }
 0x46d   : > { %v3634_v13 = vadd.f32 %v3633_v50, %v3587_v22  ;;  %v3534_v10 = vadd.f32 %v3533_v46, %v3487_v4  ;;  %v3588_v14 = vmul.f32 %v3487_v4, %v3142_v36 }
 0x46e   : > { %3719 = vxpose.xlu0.b32.cont [9/16] (narrow) %v3123_v33, 16 }
 0x46f   : > { %v3535_v5 = vadd.f32 %v3534_v10, %v3488_v15  ;;  %v3635_v34 = vadd.f32 %v3634_v13, %v3588_v14 }
 0x471   : > { %v3536_v58 = vadd.f32 %v3535_v5, %v3489_v12  ;;  %v3636_v39 = vadd.f32 %v3635_v34, %v3589_v56 }
 0x472   : > { %3720 = vxpose.xlu0.b32.cont [10/16] (narrow) %v3126_v62, 16 }
 0x473   : > { %v3537_v42 = vrot.slane %v3536_v58, 4  ;;  %v3637_v41 = vadd.f32 %v3636_v39, %v3590_v45 }
 0x475   : > { %v3538_v23 = vadd.f32 %v3537_v42, %v3536_v58  ;;  %v3638_v7 = vrot.slane %v3637_v41, 4 }
 0x476   : > { %3721 = vxpose.xlu0.b32.cont [11/16] (narrow) %v6168_v27, 16 }
 0x477   : > { %v3539_v51 = vrot.slane %v3538_v23, 2  ;;  %v3639_v9 = vadd.f32 %v3638_v7, %v3637_v41 }
 0x479   : > { %v3640_v47 = vrot.slane %v3639_v9, 2  ;;  %v3540_v59 = vadd.f32 %v3539_v51, %v3538_v23 }
 0x47a   : > { %3722 = vxpose.xlu0.b32.cont [12/16] (narrow) %v6174_v29, 16 }
 0x47b   : > { %v3541_v43 = vrot.slane %v3540_v59, 1  ;;  %v3641_v8 = vadd.f32 %v3640_v47, %v3639_v9 }
 0x47d   : > { %v3642_v33 = vrot.slane %v3641_v8, 1  ;;  %v3542_v2 = vadd.f32 %v3541_v43, %v3540_v59 }
 0x47e   : > { %3723 = vxpose.xlu0.b32.cont [13/16] (narrow) %v3139_v0, 16 }
 0x47f   : > { %v3643_v53 = vadd.f32 %v3642_v33, %v3641_v8 }
 0x481   : > { %v3645_v27 = vsel %vm3644_vm9, %v3542_v2, %v3643_v53 }
 0x482   : > { %3646 = vst [vmem:[%s266_s8] sm:$0x3] %v3645_v27  ;;  %3724 = vxpose.xlu0.b32.cont [14/16] (narrow) %v3142_v36, 16 }
 0x483   : > { %4171 = shalt.err (!%p4168_p7)
}
 0x484   : > { %s4172_s26 = scalar_lea.hbm %s6207_s13, 32  ;;  %s4176_s7 = scalar_lea.hbm %s6289_s5, 64 }
 0x485   : > { %p4173_p8 = scmp.ne.s32.totalorder %s6207_s13, %s4172_s26  ;;  %p4177_p11 = scmp.lt.s32.totalorder %s6207_s13, %s6289_s5 }
 0x486   : > { %p4178_p12 = scmp.lt.s32.totalorder %s4176_s7, %s4172_s26 }
 0x487   : > { %p4174_p9 = pnand %p4173_p8, %p4331_p5 }
 0x488   : > { %p4179_p13 = por %p4178_p12, %p4177_p11 }
 0x489   : > { %p4175_p10 = pneg %p4174_p9 }
 0x48b   : > { %p4180_p0 = pnand %p4179_p13, %p4175_p10 }
 0x48d   : > { %4183 = shalt.err (!%p4180_p0)
}
 0x48e   : > { %4057 = dma.vmem_to_hbm [thread:$0]  (%p4331_p5), %s6209_s9, 32, %s6207_s13, %s3773_s14   ;;  %3725 = vxpose.xlu0.b32.cont [15/16] (narrow) %v6180_v37, 16 }
 0x48f   : > { %s4055_s12 = smul.u32 24, %s6198_s30  ;;  %s3768_s10 = scalar_lea.sflag [#allocation4], %s6198_s30 }
 0x490   : > { %s3965_s13 = smul.u32 192, %s4314_s22  ;;  %s4260_s22 = smov [#allocation3]  }
 0x491   : > { %s259_s15 = scalar_lea.vmem [#allocation3], %s4055_s12  ;;  %s4188_s6 = sshll.u32 %s4260_s22, 4  ;;  %s4189_s6 = int_to_ptr.vmem [resolvable:$false] %s4188_s6 }
 0x492   : > { %3726 = vxpose.xlu0.b32.end [16/16] (narrow) %v6187_v11, 16  ;;  %s3786_s9 = sshll.u32 %s259_s15, 4  ;;  %s6241_s23 = scalar_lea.hbm %s6288_s4, %s3965_s13  ;;  %s6236_s9 = int_to_ptr.vmem [resolvable:$true] %s3786_s9 }
 0x493   : > { %s4184_s26 = scalar_lea.vmem %s6236_s9, 384  ;;  %s4190_s17 = scalar_lea.vmem %s4189_s6, 768 }
 0x494   : > { %p4185_p1 = scmp.ne.s32.totalorder %s6236_s9, %s4184_s26  ;;  %p4191_p4 = scmp.lt.s32.totalorder %s6236_s9, %s4189_s6 }
 0x495   : > { %p4192_p7 = scmp.lt.s32.totalorder %s4190_s17, %s4184_s26 }
 0x496   : > { %p4186_p2 = pnand %p4185_p1, %p4331_p5 }
 0x497   : > { %p4193_p8 = por %p4192_p7, %p4191_p4 }
 0x498   : > { %p4187_p3 = pneg %p4186_p2 }
 0x49a   : > { %p4194_p9 = pnand %p4193_p8, %p4187_p3 }
 0x4ac   : > { %v4145_v18 = vpop.trf.xlu1 }
 0x4ad   : > { %v4149_v44 = vunpack.i.h.bf16 %v4145_v18  ;;  %v4146_v20 = vunpack.i.l.bf16 %v4145_v18 }
 0x4af   : > { %v3961_v29 = vpack.c.bf16 %v4149_v44, %v4146_v20 }
 0x4b0   : > { %v4150_v32 = vpop.trf.xlu1 }
 0x4b1   : > { %3763 = vst [vmem:[%s259_s15] sm:$0xff] %v3961_v29  ;;  %v4154_v52 = vunpack.i.h.bf16 %v4150_v32  ;;  %v4151_v26 = vunpack.i.l.bf16 %v4150_v32 }
 0x4b3   : > { %v3963_v1 = vpack.c.bf16 %v4154_v52, %v4151_v26 }
 0x4b5   : > { %3765 = vst [vmem:[%s259_s15 + $0xc] sm:$0xff] %v3963_v1 }
 0x4d2   : > { %v3727_v31 = vpop.trf.xlu0 }
 0x4d3   : > { %v3962_v62 = vpack.c.bf16 %v3727_v31, %v3727_v31 }
 0x4d5   : > { %3764 = vst [vmem:[%s259_s15 + $0x8] sm:$0xf] %v3962_v62 }
 0x4d6   : > { %v3728_v24 = vpop.trf.xlu0 }
 0x4d7   : > { %v3964_v61 = vpack.c.bf16 %v3728_v24, %v3728_v24 }
 0x4d9   : > { %3766 = vst [vmem:[%s259_s15 + $0x14] sm:$0xf] %v3964_v61 }
 0x4da   : > { %4197 = shalt.err (!%p4194_p9)
}
 0x4db   : > { %s4198_s7 = scalar_lea.hbm %s6241_s23, 384  ;;  %s4202_s12 = scalar_lea.hbm %s6288_s4, 768 }
 0x4dc   : > { %p4199_p10 = scmp.ne.s32.totalorder %s6241_s23, %s4198_s7  ;;  %p4203_p13 = scmp.lt.s32.totalorder %s6241_s23, %s6288_s4 }
 0x4dd   : > { %p4204_p0 = scmp.lt.s32.totalorder %s4202_s12, %s4198_s7 }
 0x4de   : > { %p4200_p11 = pnand %p4199_p10, %p4331_p5 }
 0x4df   : > { %p4205_p1 = por %p4204_p0, %p4203_p13 }
 0x4e0   : > { %p4201_p12 = pneg %p4200_p11 }
 0x4e2   : > { %p4206_p2 = pnand %p4205_p1, %p4201_p12 }
 0x4e4   : > { %4209 = shalt.err (!%p4206_p2)
}
 0x4e5   : > { %s4261_s14 = smov 192   ;;  %s4262_s16 = smov 384  }
 0x4e6   : > { %4056 = dma.vmem_to_hbm [thread:$0]  (%p4331_p5), %s6236_s9, 384, %s6241_s23, %s3768_s10, %s4261_s14, %s4262_s16, %s4252_s25  }
 0x4e7 PF: > { %p4067_p3 = scmp.ge.s32.totalorder %s4248_s21, 2  ;;  %s3814_s26 = sand.u32 1, %s4236_s18  }
 0x4e8   : > { %s3815_s22 = scalar_lea.sflag [#allocation4], %s3814_s26 }
 0x4e9   : > { %p4061_p4 = pnand %p4067_p3, %p4335_p6 }
 0x4eb   : > { %p4062_p7 = pneg %p4061_p4 }
 0x4ed   : > { %4227 = dma.done.wait (%p4062_p7), %s3815_s22, 384  }
 0x4ee   : > { %4229 = vsyncadd (%p4062_p7), %s3815_s22, 4294966912  ;;  %s3824_s6 = scalar_lea.sflag [#allocation6], %s3814_s26 }
 0x4ef   : > { %4231 = dma.done.wait (%p4062_p7), %s3824_s6, 32  }
 0x4f0   : > { %4233 = vsyncadd (%p4062_p7), %s3824_s6, 4294967264  ;;  %p19_p5 = scmp.ge.s32.totalorder %s4318_s24, 4   ;;  %s6292_s18 = smov %s4240_s19 }
 0x4f1   : > { %s6293_s19 = smov %s4244_s20  ;;  %s6294_s20 = smov %s4329_s27 }
 0x4f2   : > { %s6295_s21 = smov %s4318_s24  ;;  %21 = sbr.rel (!%p19_p5) target bundleno = 5 (0x5), region = 94 }
 0x4f7   :  { %3829 = vsyncpa [#allocation4], 1 }
 0x4f8   :  { %3831 = vsyncpa [#allocation4 + $0x1], 1 }
 0x4f9   :  { %3832 = vsyncpa [#allocation6], 1 }
 0x4fa   :  { %3834 = vsyncpa [#allocation6 + $0x1], 1 }

</bundles_post_ra>
